<compile_context>
chip_gen: v5e
topology: v5e:2x2
jax: 0.10.0
libtpu: 0.0.40
codegen_flags: <defaults>
</compile_context>

<pallas_src>
import functools

import jax
import jax.numpy as jnp
import numpy as np
from jax import lax
from jax.experimental import pallas as pl
from jax.experimental.pallas import tpu as pltpu

cfg = {
    "d_model": 32,
    "hidden_size": 32,
    "num_layers": 2,
    "LSTM_dropout": 0.0,   # TODO(synk): dropout between LSTM layers is inactive (eval mode / p=0.0)
    "time_step": 8,
}


# ---------------------------------------------------------------------------
# Fused kernel: [LSTM layer 0 .. L-1] + output slice + Linear + ReLU.
# Everything (inputs, weights, states, scratch) lives in VMEM; no grid.
# ---------------------------------------------------------------------------
def _lstm_cell_step(gates, c, H):
    """PyTorch gate order (i, f, g, o). gates: (Bp, 4H) float32."""
    sg = jax.nn.sigmoid(gates)          # one EUP pass over the full (Bp, 4H) vreg
    i_g = sg[:, 0:H]
    f_g = sg[:, H:2 * H]
    o_g = sg[:, 3 * H:4 * H]
    g_g = jnp.tanh(gates[:, 2 * H:3 * H])
    c_new = f_g * c + i_g * g_g
    h_new = o_g * jnp.tanh(c_new)
    return h_new, c_new


def _make_fused_kernel(T, Bp, H, TS, t_off, L):
    """Build the fused kernel for L stacked LSTM layers + final Linear/ReLU."""

    def kernel(*refs):
        x_ref = refs[0]
        layer_refs = refs[1:1 + 3 * L]          # (w_ih, w_hh, b) per layer
        wlast_ref = refs[1 + 3 * L]
        blast_ref = refs[2 + 3 * L]
        o_ref = refs[3 + 3 * L]
        gx_sc = refs[4 + 3 * L]                 # (T*Bp, 4H)  input-projection gates
        h_sc = refs[5 + 3 * L]                  # (T*Bp, H)   layer output / staging

        src = x_ref
        for l in range(L):
            wih_ref = layer_refs[3 * l + 0]
            whh_ref = layer_refs[3 * l + 1]
            b_ref = layer_refs[3 * l + 2]
            last = (l == L - 1)

            # Hoisted input projection for ALL time steps: one MXU push per layer,
            # bias folded in once (no per-step broadcast).
            gx_sc[...] = (jnp.dot(src[...], wih_ref[...],
                                  preferred_element_type=jnp.float32)
                          + b_ref[...])

            h = jnp.zeros((Bp, H), jnp.float32)
            c = jnp.zeros((Bp, H), jnp.float32)

            # Fully unrolled serial recurrence: only h @ W_hh on the critical path.
            for t in range(T):
                rows = slice(t * Bp, (t + 1) * Bp)      # tile-aligned (Bp = 8)
                gates = gx_sc[rows, :] + jnp.dot(
                    h, whh_ref[...], preferred_element_type=jnp.float32)
                h, c = _lstm_cell_step(gates, c, H)
                if not last:
                    h_sc[rows, :] = h                   # feed next layer (stays in VMEM)
                elif t_off <= t < t_off + TS:
                    # stage only the needed time slice (reuse h_sc as staging buffer)
                    sel = slice((t - t_off) * Bp, (t - t_off + 1) * Bp)
                    h_sc[sel, :] = h

            src = h_sc

        # Fused final Linear + ReLU on the selected (TS*Bp, H) slice only.
        y = (jnp.dot(h_sc[0:TS * Bp, :], wlast_ref[...],
                     preferred_element_type=jnp.float32)
             + blast_ref[...])
        o_ref[...] = jnp.maximum(y, 0.0).astype(o_ref.dtype)

    return kernel


# ---------------------------------------------------------------------------
# Module forward (glue in plain JAX; the whole hot path is one Pallas kernel).
# ---------------------------------------------------------------------------
@jax.jit
def lstm_module_forward(params, x1, x2):
    D = cfg["d_model"]
    H = cfg["hidden_size"]
    TS = cfg["time_step"]
    t_off = 12
    L = len(params["lstm"])

    x = jnp.concatenate([x1, x2], axis=1)              # (B, T, D) batch_first like torch.cat(dim=1)
    B, T, _ = x.shape
    Bp = max(8, ((B + 7) // 8) * 8)                     # pad batch to a full sublane group

    xt = jnp.transpose(x, (1, 0, 2))                    # (T, B, D) time-major
    xt = jnp.pad(xt, ((0, 0), (0, Bp - B), (0, 0)))     # (T, Bp, D); padded rows are discarded later
    x2d = xt.reshape(T * Bp, D)                         # row index = t*Bp + b

    flat_weights = []
    for layer in params["lstm"]:
        flat_weights += [layer["w_ih"], layer["w_hh"], layer["b"]]

    kernel = _make_fused_kernel(T, Bp, H, TS, t_off, L)
    y = pl.pallas_call(
        kernel,
        out_shape=jax.ShapeDtypeStruct((TS * Bp, D), jnp.float32),
        scratch_shapes=[
            pltpu.VMEM((T * Bp, 4 * H), jnp.float32),   # per-layer input-projection gates (~96 KiB)
            pltpu.VMEM((T * Bp, H), jnp.float32),       # layer output sequence / output staging
        ],
    )(x2d, *flat_weights, params["w_last"], params["b_last"])

    y = y.reshape(TS, Bp, D)[:, :B, :]                  # drop batch padding
    return jnp.transpose(y, (1, 0, 2))                  # (B, time_step, d_model)


# ---------------------------------------------------------------------------
# Pure-JAX reference (lax.scan) for correctness checking.
# ---------------------------------------------------------------------------
def lstm_module_ref(params, x1, x2):
    x = jnp.concatenate([x1, x2], axis=1)
    h_seq = jnp.transpose(x, (1, 0, 2))
    for layer in params["lstm"]:
        B = h_seq.shape[1]
        H = layer["w_hh"].shape[0]
        w_ih, w_hh, b = layer["w_ih"], layer["w_hh"], layer["b"][0]

        def step(carry, x_t, w_ih=w_ih, w_hh=w_hh, b=b, H=H):
            h, c = carry
            gates = x_t @ w_ih + h @ w_hh + b
            i = jax.nn.sigmoid(gates[:, 0:H])
            f = jax.nn.sigmoid(gates[:, H:2 * H])
            g = jnp.tanh(gates[:, 2 * H:3 * H])
            o = jax.nn.sigmoid(gates[:, 3 * H:4 * H])
            c = f * c + i * g
            h = o * jnp.tanh(c)
            return (h, c), h

        init = (jnp.zeros((B, H), jnp.float32), jnp.zeros((B, H), jnp.float32))
        _, hs = lax.scan(step, init, h_seq)
        h_seq = hs
    out = jnp.transpose(h_seq, (1, 0, 2))[:, 12:12 + cfg["time_step"], :]
    y = out @ params["w_last"] + params["b_last"][0]
    return jnp.maximum(y, 0.0)


def init_params(key):
    D, H, L = cfg["d_model"], cfg["hidden_size"], cfg["num_layers"]
    k_lstm = 1.0 / np.sqrt(H)
    params = {"lstm": []}
    for layer_idx in range(L):
        in_size = D if layer_idx == 0 else H
        key, k1, k2, k3, k4 = jax.random.split(key, 5)
        # Stored transposed relative to PyTorch: w_ih (in, 4H), w_hh (H, 4H);
        # b = b_ih + b_hh folded into a single (1, 4H) bias.
        w_ih = jax.random.uniform(k1, (in_size, 4 * H), jnp.float32, -k_lstm, k_lstm)
        w_hh = jax.random.uniform(k2, (H, 4 * H), jnp.float32, -k_lstm, k_lstm)
        b_ih = jax.random.uniform(k3, (4 * H,), jnp.float32, -k_lstm, k_lstm)
        b_hh = jax.random.uniform(k4, (4 * H,), jnp.float32, -k_lstm, k_lstm)
        params["lstm"].append({"w_ih": w_ih, "w_hh": w_hh, "b": (b_ih + b_hh)[None, :]})
    key, k5, k6 = jax.random.split(key, 3)
    k_lin = 1.0 / np.sqrt(H)
    params["w_last"] = jax.random.uniform(k5, (H, D), jnp.float32, -k_lin, k_lin)
    params["b_last"] = jax.random.uniform(k6, (1, D), jnp.float32, -k_lin, k_lin)
    return params


if __name__ == "__main__":
    key = jax.random.PRNGKey(0)
    key, kx1, kx2, kp = jax.random.split(key, 4)
    B, T_half, D = 2, 12, cfg["d_model"]
    x1 = jax.random.normal(kx1, (B, T_half, D), jnp.float32)
    x2 = jax.random.normal(kx2, (B, T_half, D), jnp.float32)
    params = init_params(kp)

    out = lstm_module_forward(params, x1, x2)
    out = jax.block_until_ready(out)

    ref = jax.block_until_ready(lstm_module_ref(params, x1, x2))
    assert out.shape == (B, cfg["time_step"], cfg["d_model"]), out.shape
    np.testing.assert_allclose(np.asarray(out), np.asarray(ref), rtol=1e-4, atol=1e-4)

    print("KERNEL_OK")
</pallas_src>

<mosaic_0001>
module attributes {stable_mosaic.version = 11 : i64} {
  func.func @kernel(%arg0: memref<192x32xf32, #tpu.memory_space<vmem>>, %arg1: memref<32x128xf32, #tpu.memory_space<vmem>>, %arg2: memref<32x128xf32, #tpu.memory_space<vmem>>, %arg3: memref<1x128xf32, #tpu.memory_space<vmem>>, %arg4: memref<32x128xf32, #tpu.memory_space<vmem>>, %arg5: memref<32x128xf32, #tpu.memory_space<vmem>>, %arg6: memref<1x128xf32, #tpu.memory_space<vmem>>, %arg7: memref<32x32xf32, #tpu.memory_space<vmem>>, %arg8: memref<1x32xf32, #tpu.memory_space<vmem>>, %arg9: memref<64x32xf32, #tpu.memory_space<vmem>>, %arg10: memref<192x128xf32, #tpu.memory_space<vmem>>, %arg11: memref<192x32xf32, #tpu.memory_space<vmem>>) attributes {dimension_semantics = [], scalar_prefetch = 0 : i64, scratch_operands = 2 : i64, tpu.core_type = #tpu.core_type<tc>} {
    %c0 = arith.constant 0 : index
    %c0_0 = arith.constant 0 : index
    %0 = vector.load %arg0[%c0, %c0_0] : memref<192x32xf32, #tpu.memory_space<vmem>>, vector<192x32xf32>
    %c0_1 = arith.constant 0 : index
    %c0_2 = arith.constant 0 : index
    %1 = vector.load %arg1[%c0_1, %c0_2] : memref<32x128xf32, #tpu.memory_space<vmem>>, vector<32x128xf32>
    %cst = arith.constant dense<0.000000e+00> : vector<192x128xf32>
    %2 = tpu.matmul %0, %1, %cst {dimension_numbers = #tpu.dot_dimension_numbers<[1], [0], [0], [1], [0, 0, 1, 1], [], []>} : vector<192x32xf32>, vector<32x128xf32>, vector<192x128xf32> -> vector<192x128xf32>
    %c0_3 = arith.constant 0 : index
    %c0_4 = arith.constant 0 : index
    %3 = vector.load %arg3[%c0_3, %c0_4] : memref<1x128xf32, #tpu.memory_space<vmem>>, vector<1x128xf32>
    %4 = vector.broadcast %3 : vector<1x128xf32> to vector<192x128xf32>
    %5 = arith.addf %2, %4 : vector<192x128xf32>
    %c0_5 = arith.constant 0 : index
    %c0_6 = arith.constant 0 : index
    %6 = vector.load %arg10[%c0_5, %c0_6] : memref<192x128xf32, #tpu.memory_space<vmem>>, vector<192x128xf32>
    tpu.vector_store %arg10[%c0_5, %c0_6], %5 {strides = array<i32>} : memref<192x128xf32, #tpu.memory_space<vmem>>, vector<192x128xf32>,
    %cst_7 = arith.constant 0.000000e+00 : f32
    %7 = vector.broadcast %cst_7 : f32 to vector<8x32xf32>
    %cst_8 = arith.constant 0.000000e+00 : f32
    %8 = vector.broadcast %cst_8 : f32 to vector<8x32xf32>
    %c0_9 = arith.constant 0 : index
    %c0_10 = arith.constant 0 : index
    %9 = vector.load %arg10[%c0_9, %c0_10] : memref<192x128xf32, #tpu.memory_space<vmem>>, vector<8x128xf32>
    %c0_11 = arith.constant 0 : index
    %c0_12 = arith.constant 0 : index
    %10 = vector.load %arg2[%c0_11, %c0_12] : memref<32x128xf32, #tpu.memory_space<vmem>>, vector<32x128xf32>
    %cst_13 = arith.constant dense<0.000000e+00> : vector<8x128xf32>
    %11 = tpu.matmul %7, %10, %cst_13 {dimension_numbers = #tpu.dot_dimension_numbers<[1], [0], [0], [1], [0, 0, 1, 1], [], []>} : vector<8x32xf32>, vector<32x128xf32>, vector<8x128xf32> -> vector<8x128xf32>
    %12 = arith.addf %9, %11 : vector<8x128xf32>
    %13 = arith.negf %12 : vector<8x128xf32>
    %14 = math.exp %13 : vector<8x128xf32>
    %cst_14 = arith.constant 1.000000e+00 : f32
    %15 = vector.broadcast %cst_14 : f32 to vector<8x128xf32>
    %16 = arith.addf %15, %14 : vector<8x128xf32>
    %17 = arith.divf %15, %16 : vector<8x128xf32>
    %18 = vector.extract_strided_slice %17 {offsets = [0, 0], sizes = [8, 32], strides = [1, 1]} : vector<8x128xf32> to vector<8x32xf32>
    %19 = vector.extract_strided_slice %17 {offsets = [0, 32], sizes = [8, 32], strides = [1, 1]} : vector<8x128xf32> to vector<8x32xf32>
    %20 = vector.extract_strided_slice %17 {offsets = [0, 96], sizes = [8, 32], strides = [1, 1]} : vector<8x128xf32> to vector<8x32xf32>
    %21 = vector.extract_strided_slice %12 {offsets = [0, 64], sizes = [8, 32], strides = [1, 1]} : vector<8x128xf32> to vector<8x32xf32>
    %22 = math.tanh %21 : vector<8x32xf32>
    %23 = arith.mulf %19, %8 : vector<8x32xf32>
    %24 = arith.mulf %18, %22 : vector<8x32xf32>
    %25 = arith.addf %23, %24 : vector<8x32xf32>
    %26 = math.tanh %25 : vector<8x32xf32>
    %27 = arith.mulf %20, %26 : vector<8x32xf32>
    %c0_15 = arith.constant 0 : index
    %c0_16 = arith.constant 0 : index
    %28 = vector.load %arg11[%c0_15, %c0_16] : memref<192x32xf32, #tpu.memory_space<vmem>>, vector<8x32xf32>
    tpu.vector_store %arg11[%c0_15, %c0_16], %27 {strides = array<i32>} : memref<192x32xf32, #tpu.memory_space<vmem>>, vector<8x32xf32>,
    %c8 = arith.constant 8 : index
    %c0_17 = arith.constant 0 : index
    %29 = vector.load %arg10[%c8, %c0_17] : memref<192x128xf32, #tpu.memory_space<vmem>>, vector<8x128xf32>
    %c0_18 = arith.constant 0 : index
    %c0_19 = arith.constant 0 : index
    %30 = vector.load %arg2[%c0_18, %c0_19] : memref<32x128xf32, #tpu.memory_space<vmem>>, vector<32x128xf32>
    %cst_20 = arith.constant dense<0.000000e+00> : vector<8x128xf32>
    %31 = tpu.matmul %27, %30, %cst_20 {dimension_numbers = #tpu.dot_dimension_numbers<[1], [0], [0], [1], [0, 0, 1, 1], [], []>} : vector<8x32xf32>, vector<32x128xf32>, vector<8x128xf32> -> vector<8x128xf32>
    %32 = arith.addf %29, %31 : vector<8x128xf32>
    %33 = arith.negf %32 : vector<8x128xf32>
    %34 = math.exp %33 : vector<8x128xf32>
    %cst_21 = arith.constant 1.000000e+00 : f32
    %35 = vector.broadcast %cst_21 : f32 to vector<8x128xf32>
    %36 = arith.addf %35, %34 : vector<8x128xf32>
    %37 = arith.divf %35, %36 : vector<8x128xf32>
    %38 = vector.extract_strided_slice %37 {offsets = [0, 0], sizes = [8, 32], strides = [1, 1]} : vector<8x128xf32> to vector<8x32xf32>
    %39 = vector.extract_strided_slice %37 {offsets = [0, 32], sizes = [8, 32], strides = [1, 1]} : vector<8x128xf32> to vector<8x32xf32>
    %40 = vector.extract_strided_slice %37 {offsets = [0, 96], sizes = [8, 32], strides = [1, 1]} : vector<8x128xf32> to vector<8x32xf32>
    %41 = vector.extract_strided_slice %32 {offsets = [0, 64], sizes = [8, 32], strides = [1, 1]} : vector<8x128xf32> to vector<8x32xf32>
    %42 = math.tanh %41 : vector<8x32xf32>
    %43 = arith.mulf %39, %25 : vector<8x32xf32>
    %44 = arith.mulf %38, %42 : vector<8x32xf32>
    %45 = arith.addf %43, %44 : vector<8x32xf32>
    %46 = math.tanh %45 : vector<8x32xf32>
    %47 = arith.mulf %40, %46 : vector<8x32xf32>
    %c8_22 = arith.constant 8 : index
    %c0_23 = arith.constant 0 : index
    %48 = vector.load %arg11[%c8_22, %c0_23] : memref<192x32xf32, #tpu.memory_space<vmem>>, vector<8x32xf32>
    tpu.vector_store %arg11[%c8_22, %c0_23], %47 {strides = array<i32>} : memref<192x32xf32, #tpu.memory_space<vmem>>, vector<8x32xf32>,
    %c16 = arith.constant 16 : index
    %c0_24 = arith.constant 0 : index
    %49 = vector.load %arg10[%c16, %c0_24] : memref<192x128xf32, #tpu.memory_space<vmem>>, vector<8x128xf32>
    %c0_25 = arith.constant 0 : index
    %c0_26 = arith.constant 0 : index
    %50 = vector.load %arg2[%c0_25, %c0_26] : memref<32x128xf32, #tpu.memory_space<vmem>>, vector<32x128xf32>
    %cst_27 = arith.constant dense<0.000000e+00> : vector<8x128xf32>
    %51 = tpu.matmul %47, %50, %cst_27 {dimension_numbers = #tpu.dot_dimension_numbers<[1], [0], [0], [1], [0, 0, 1, 1], [], []>} : vector<8x32xf32>, vector<32x128xf32>, vector<8x128xf32> -> vector<8x128xf32>
    %52 = arith.addf %49, %51 : vector<8x128xf32>
    %53 = arith.negf %52 : vector<8x128xf32>
    %54 = math.exp %53 : vector<8x128xf32>
    %cst_28 = arith.constant 1.000000e+00 : f32
    %55 = vector.broadcast %cst_28 : f32 to vector<8x128xf32>
    %56 = arith.addf %55, %54 : vector<8x128xf32>
    %57 = arith.divf %55, %56 : vector<8x128xf32>
    %58 = vector.extract_strided_slice %57 {offsets = [0, 0], sizes = [8, 32], strides = [1, 1]} : vector<8x128xf32> to vector<8x32xf32>
    %59 = vector.extract_strided_slice %57 {offsets = [0, 32], sizes = [8, 32], strides = [1, 1]} : vector<8x128xf32> to vector<8x32xf32>
    %60 = vector.extract_strided_slice %57 {offsets = [0, 96], sizes = [8, 32], strides = [1, 1]} : vector<8x128xf32> to vector<8x32xf32>
    %61 = vector.extract_strided_slice %52 {offsets = [0, 64], sizes = [8, 32], strides = [1, 1]} : vector<8x128xf32> to vector<8x32xf32>
    %62 = math.tanh %61 : vector<8x32xf32>
    %63 = arith.mulf %59, %45 : vector<8x32xf32>
    %64 = arith.mulf %58, %62 : vector<8x32xf32>
    %65 = arith.addf %63, %64 : vector<8x32xf32>
    %66 = math.tanh %65 : vector<8x32xf32>
    %67 = arith.mulf %60, %66 : vector<8x32xf32>
    %c16_29 = arith.constant 16 : index
    %c0_30 = arith.constant 0 : index
    %68 = vector.load %arg11[%c16_29, %c0_30] : memref<192x32xf32, #tpu.memory_space<vmem>>, vector<8x32xf32>
    tpu.vector_store %arg11[%c16_29, %c0_30], %67 {strides = array<i32>} : memref<192x32xf32, #tpu.memory_space<vmem>>, vector<8x32xf32>,
    %c24 = arith.constant 24 : index
    %c0_31 = arith.constant 0 : index
    %69 = vector.load %arg10[%c24, %c0_31] : memref<192x128xf32, #tpu.memory_space<vmem>>, vector<8x128xf32>
    %c0_32 = arith.constant 0 : index
    %c0_33 = arith.constant 0 : index
    %70 = vector.load %arg2[%c0_32, %c0_33] : memref<32x128xf32, #tpu.memory_space<vmem>>, vector<32x128xf32>
    %cst_34 = arith.constant dense<0.000000e+00> : vector<8x128xf32>
    %71 = tpu.matmul %67, %70, %cst_34 {dimension_numbers = #tpu.dot_dimension_numbers<[1], [0], [0], [1], [0, 0, 1, 1], [], []>} : vector<8x32xf32>, vector<32x128xf32>, vector<8x128xf32> -> vector<8x128xf32>
    %72 = arith.addf %69, %71 : vector<8x128xf32>
    %73 = arith.negf %72 : vector<8x128xf32>
    %74 = math.exp %73 : vector<8x128xf32>
    %cst_35 = arith.constant 1.000000e+00 : f32
    %75 = vector.broadcast %cst_35 : f32 to vector<8x128xf32>
    %76 = arith.addf %75, %74 : vector<8x128xf32>
    %77 = arith.divf %75, %76 : vector<8x128xf32>
    %78 = vector.extract_strided_slice %77 {offsets = [0, 0], sizes = [8, 32], strides = [1, 1]} : vector<8x128xf32> to vector<8x32xf32>
    %79 = vector.extract_strided_slice %77 {offsets = [0, 32], sizes = [8, 32], strides = [1, 1]} : vector<8x128xf32> to vector<8x32xf32>
    %80 = vector.extract_strided_slice %77 {offsets = [0, 96], sizes = [8, 32], strides = [1, 1]} : vector<8x128xf32> to vector<8x32xf32>
    %81 = vector.extract_strided_slice %72 {offsets = [0, 64], sizes = [8, 32], strides = [1, 1]} : vector<8x128xf32> to vector<8x32xf32>
    %82 = math.tanh %81 : vector<8x32xf32>
    %83 = arith.mulf %79, %65 : vector<8x32xf32>
    %84 = arith.mulf %78, %82 : vector<8x32xf32>
    %85 = arith.addf %83, %84 : vector<8x32xf32>
    %86 = math.tanh %85 : vector<8x32xf32>
    %87 = arith.mulf %80, %86 : vector<8x32xf32>
    %c24_36 = arith.constant 24 : index
    %c0_37 = arith.constant 0 : index
    %88 = vector.load %arg11[%c24_36, %c0_37] : memref<192x32xf32, #tpu.memory_space<vmem>>, vector<8x32xf32>
    tpu.vector_store %arg11[%c24_36, %c0_37], %87 {strides = array<i32>} : memref<192x32xf32, #tpu.memory_space<vmem>>, vector<8x32xf32>,
    %c32 = arith.constant 32 : index
    %c0_38 = arith.constant 0 : index
    %89 = vector.load %arg10[%c32, %c0_38] : memref<192x128xf32, #tpu.memory_space<vmem>>, vector<8x128xf32>
    %c0_39 = arith.constant 0 : index
    %c0_40 = arith.constant 0 : index
    %90 = vector.load %arg2[%c0_39, %c0_40] : memref<32x128xf32, #tpu.memory_space<vmem>>, vector<32x128xf32>
    %cst_41 = arith.constant dense<0.000000e+00> : vector<8x128xf32>
    %91 = tpu.matmul %87, %90, %cst_41 {dimension_numbers = #tpu.dot_dimension_numbers<[1], [0], [0], [1], [0, 0, 1, 1], [], []>} : vector<8x32xf32>, vector<32x128xf32>, vector<8x128xf32> -> vector<8x128xf32>
    %92 = arith.addf %89, %91 : vector<8x128xf32>
    %93 = arith.negf %92 : vector<8x128xf32>
    %94 = math.exp %93 : vector<8x128xf32>
    %cst_42 = arith.constant 1.000000e+00 : f32
    %95 = vector.broadcast %cst_42 : f32 to vector<8x128xf32>
    %96 = arith.addf %95, %94 : vector<8x128xf32>
    %97 = arith.divf %95, %96 : vector<8x128xf32>
    %98 = vector.extract_strided_slice %97 {offsets = [0, 0], sizes = [8, 32], strides = [1, 1]} : vector<8x128xf32> to vector<8x32xf32>
    %99 = vector.extract_strided_slice %97 {offsets = [0, 32], sizes = [8, 32], strides = [1, 1]} : vector<8x128xf32> to vector<8x32xf32>
    %100 = vector.extract_strided_slice %97 {offsets = [0, 96], sizes = [8, 32], strides = [1, 1]} : vector<8x128xf32> to vector<8x32xf32>
    %101 = vector.extract_strided_slice %92 {offsets = [0, 64], sizes = [8, 32], strides = [1, 1]} : vector<8x128xf32> to vector<8x32xf32>
    %102 = math.tanh %101 : vector<8x32xf32>
    %103 = arith.mulf %99, %85 : vector<8x32xf32>
    %104 = arith.mulf %98, %102 : vector<8x32xf32>
    %105 = arith.addf %103, %104 : vector<8x32xf32>
    %106 = math.tanh %105 : vector<8x32xf32>
    %107 = arith.mulf %100, %106 : vector<8x32xf32>
    %c32_43 = arith.constant 32 : index
    %c0_44 = arith.constant 0 : index
    %108 = vector.load %arg11[%c32_43, %c0_44] : memref<192x32xf32, #tpu.memory_space<vmem>>, vector<8x32xf32>
    tpu.vector_store %arg11[%c32_43, %c0_44], %107 {strides = array<i32>} : memref<192x32xf32, #tpu.memory_space<vmem>>, vector<8x32xf32>,
    %c40 = arith.constant 40 : index
    %c0_45 = arith.constant 0 : index
    %109 = vector.load %arg10[%c40, %c0_45] : memref<192x128xf32, #tpu.memory_space<vmem>>, vector<8x128xf32>
    %c0_46 = arith.constant 0 : index
    %c0_47 = arith.constant 0 : index
    %110 = vector.load %arg2[%c0_46, %c0_47] : memref<32x128xf32, #tpu.memory_space<vmem>>, vector<32x128xf32>
    %cst_48 = arith.constant dense<0.000000e+00> : vector<8x128xf32>
    %111 = tpu.matmul %107, %110, %cst_48 {dimension_numbers = #tpu.dot_dimension_numbers<[1], [0], [0], [1], [0, 0, 1, 1], [], []>} : vector<8x32xf32>, vector<32x128xf32>, vector<8x128xf32> -> vector<8x128xf32>
    %112 = arith.addf %109, %111 : vector<8x128xf32>
    %113 = arith.negf %112 : vector<8x128xf32>
    %114 = math.exp %113 : vector<8x128xf32>
    %cst_49 = arith.constant 1.000000e+00 : f32
    %115 = vector.broadcast %cst_49 : f32 to vector<8x128xf32>
    %116 = arith.addf %115, %114 : vector<8x128xf32>
    %117 = arith.divf %115, %116 : vector<8x128xf32>
    %118 = vector.extract_strided_slice %117 {offsets = [0, 0], sizes = [8, 32], strides = [1, 1]} : vector<8x128xf32> to vector<8x32xf32>
    %119 = vector.extract_strided_slice %117 {offsets = [0, 32], sizes = [8, 32], strides = [1, 1]} : vector<8x128xf32> to vector<8x32xf32>
    %120 = vector.extract_strided_slice %117 {offsets = [0, 96], sizes = [8, 32], strides = [1, 1]} : vector<8x128xf32> to vector<8x32xf32>
    %121 = vector.extract_strided_slice %112 {offsets = [0, 64], sizes = [8, 32], strides = [1, 1]} : vector<8x128xf32> to vector<8x32xf32>
    %122 = math.tanh %121 : vector<8x32xf32>
    %123 = arith.mulf %119, %105 : vector<8x32xf32>
    %124 = arith.mulf %118, %122 : vector<8x32xf32>
    %125 = arith.addf %123, %124 : vector<8x32xf32>
    %126 = math.tanh %125 : vector<8x32xf32>
    %127 = arith.mulf %120, %126 : vector<8x32xf32>
    %c40_50 = arith.constant 40 : index
    %c0_51 = arith.constant 0 : index
    %128 = vector.load %arg11[%c40_50, %c0_51] : memref<192x32xf32, #tpu.memory_space<vmem>>, vector<8x32xf32>
    tpu.vector_store %arg11[%c40_50, %c0_51], %127 {strides = array<i32>} : memref<192x32xf32, #tpu.memory_space<vmem>>, vector<8x32xf32>,
    %c48 = arith.constant 48 : index
    %c0_52 = arith.constant 0 : index
    %129 = vector.load %arg10[%c48, %c0_52] : memref<192x128xf32, #tpu.memory_space<vmem>>, vector<8x128xf32>
    %c0_53 = arith.constant 0 : index
    %c0_54 = arith.constant 0 : index
    %130 = vector.load %arg2[%c0_53, %c0_54] : memref<32x128xf32, #tpu.memory_space<vmem>>, vector<32x128xf32>
    %cst_55 = arith.constant dense<0.000000e+00> : vector<8x128xf32>
    %131 = tpu.matmul %127, %130, %cst_55 {dimension_numbers = #tpu.dot_dimension_numbers<[1], [0], [0], [1], [0, 0, 1, 1], [], []>} : vector<8x32xf32>, vector<32x128xf32>, vector<8x128xf32> -> vector<8x128xf32>
    %132 = arith.addf %129, %131 : vector<8x128xf32>
    %133 = arith.negf %132 : vector<8x128xf32>
    %134 = math.exp %133 : vector<8x128xf32>
    %cst_56 = arith.constant 1.000000e+00 : f32
    %135 = vector.broadcast %cst_56 : f32 to vector<8x128xf32>
    %136 = arith.addf %135, %134 : vector<8x128xf32>
    %137 = arith.divf %135, %136 : vector<8x128xf32>
    %138 = vector.extract_strided_slice %137 {offsets = [0, 0], sizes = [8, 32], strides = [1, 1]} : vector<8x128xf32> to vector<8x32xf32>
    %139 = vector.extract_strided_slice %137 {offsets = [0, 32], sizes = [8, 32], strides = [1, 1]} : vector<8x128xf32> to vector<8x32xf32>
    %140 = vector.extract_strided_slice %137 {offsets = [0, 96], sizes = [8, 32], strides = [1, 1]} : vector<8x128xf32> to vector<8x32xf32>
    %141 = vector.extract_strided_slice %132 {offsets = [0, 64], sizes = [8, 32], strides = [1, 1]} : vector<8x128xf32> to vector<8x32xf32>
    %142 = math.tanh %141 : vector<8x32xf32>
    %143 = arith.mulf %139, %125 : vector<8x32xf32>
    %144 = arith.mulf %138, %142 : vector<8x32xf32>
    %145 = arith.addf %143, %144 : vector<8x32xf32>
    %146 = math.tanh %145 : vector<8x32xf32>
    %147 = arith.mulf %140, %146 : vector<8x32xf32>
    %c48_57 = arith.constant 48 : index
    %c0_58 = arith.constant 0 : index
    %148 = vector.load %arg11[%c48_57, %c0_58] : memref<192x32xf32, #tpu.memory_space<vmem>>, vector<8x32xf32>
    tpu.vector_store %arg11[%c48_57, %c0_58], %147 {strides = array<i32>} : memref<192x32xf32, #tpu.memory_space<vmem>>, vector<8x32xf32>,
    %c56 = arith.constant 56 : index
    %c0_59 = arith.constant 0 : index
    %149 = vector.load %arg10[%c56, %c0_59] : memref<192x128xf32, #tpu.memory_space<vmem>>, vector<8x128xf32>
    %c0_60 = arith.constant 0 : index
    %c0_61 = arith.constant 0 : index
    %150 = vector.load %arg2[%c0_60, %c0_61] : memref<32x128xf32, #tpu.memory_space<vmem>>, vector<32x128xf32>
    %cst_62 = arith.constant dense<0.000000e+00> : vector<8x128xf32>
    %151 = tpu.matmul %147, %150, %cst_62 {dimension_numbers = #tpu.dot_dimension_numbers<[1], [0], [0], [1], [0, 0, 1, 1], [], []>} : vector<8x32xf32>, vector<32x128xf32>, vector<8x128xf32> -> vector<8x128xf32>
    %152 = arith.addf %149, %151 : vector<8x128xf32>
    %153 = arith.negf %152 : vector<8x128xf32>
    %154 = math.exp %153 : vector<8x128xf32>
    %cst_63 = arith.constant 1.000000e+00 : f32
    %155 = vector.broadcast %cst_63 : f32 to vector<8x128xf32>
    %156 = arith.addf %155, %154 : vector<8x128xf32>
    %157 = arith.divf %155, %156 : vector<8x128xf32>
    %158 = vector.extract_strided_slice %157 {offsets = [0, 0], sizes = [8, 32], strides = [1, 1]} : vector<8x128xf32> to vector<8x32xf32>
    %159 = vector.extract_strided_slice %157 {offsets = [0, 32], sizes = [8, 32], strides = [1, 1]} : vector<8x128xf32> to vector<8x32xf32>
    %160 = vector.extract_strided_slice %157 {offsets = [0, 96], sizes = [8, 32], strides = [1, 1]} : vector<8x128xf32> to vector<8x32xf32>
    %161 = vector.extract_strided_slice %152 {offsets = [0, 64], sizes = [8, 32], strides = [1, 1]} : vector<8x128xf32> to vector<8x32xf32>
    %162 = math.tanh %161 : vector<8x32xf32>
    %163 = arith.mulf %159, %145 : vector<8x32xf32>
    %164 = arith.mulf %158, %162 : vector<8x32xf32>
    %165 = arith.addf %163, %164 : vector<8x32xf32>
    %166 = math.tanh %165 : vector<8x32xf32>
    %167 = arith.mulf %160, %166 : vector<8x32xf32>
    %c56_64 = arith.constant 56 : index
    %c0_65 = arith.constant 0 : index
    %168 = vector.load %arg11[%c56_64, %c0_65] : memref<192x32xf32, #tpu.memory_space<vmem>>, vector<8x32xf32>
    tpu.vector_store %arg11[%c56_64, %c0_65], %167 {strides = array<i32>} : memref<192x32xf32, #tpu.memory_space<vmem>>, vector<8x32xf32>,
    %c64 = arith.constant 64 : index
    %c0_66 = arith.constant 0 : index
    %169 = vector.load %arg10[%c64, %c0_66] : memref<192x128xf32, #tpu.memory_space<vmem>>, vector<8x128xf32>
    %c0_67 = arith.constant 0 : index
    %c0_68 = arith.constant 0 : index
    %170 = vector.load %arg2[%c0_67, %c0_68] : memref<32x128xf32, #tpu.memory_space<vmem>>, vector<32x128xf32>
    %cst_69 = arith.constant dense<0.000000e+00> : vector<8x128xf32>
    %171 = tpu.matmul %167, %170, %cst_69 {dimension_numbers = #tpu.dot_dimension_numbers<[1], [0], [0], [1], [0, 0, 1, 1], [], []>} : vector<8x32xf32>, vector<32x128xf32>, vector<8x128xf32> -> vector<8x128xf32>
    %172 = arith.addf %169, %171 : vector<8x128xf32>
    %173 = arith.negf %172 : vector<8x128xf32>
    %174 = math.exp %173 : vector<8x128xf32>
    %cst_70 = arith.constant 1.000000e+00 : f32
    %175 = vector.broadcast %cst_70 : f32 to vector<8x128xf32>
    %176 = arith.addf %175, %174 : vector<8x128xf32>
    %177 = arith.divf %175, %176 : vector<8x128xf32>
    %178 = vector.extract_strided_slice %177 {offsets = [0, 0], sizes = [8, 32], strides = [1, 1]} : vector<8x128xf32> to vector<8x32xf32>
    %179 = vector.extract_strided_slice %177 {offsets = [0, 32], sizes = [8, 32], strides = [1, 1]} : vector<8x128xf32> to vector<8x32xf32>
    %180 = vector.extract_strided_slice %177 {offsets = [0, 96], sizes = [8, 32], strides = [1, 1]} : vector<8x128xf32> to vector<8x32xf32>
    %181 = vector.extract_strided_slice %172 {offsets = [0, 64], sizes = [8, 32], strides = [1, 1]} : vector<8x128xf32> to vector<8x32xf32>
    %182 = math.tanh %181 : vector<8x32xf32>
    %183 = arith.mulf %179, %165 : vector<8x32xf32>
    %184 = arith.mulf %178, %182 : vector<8x32xf32>
    %185 = arith.addf %183, %184 : vector<8x32xf32>
    %186 = math.tanh %185 : vector<8x32xf32>
    %187 = arith.mulf %180, %186 : vector<8x32xf32>
    %c64_71 = arith.constant 64 : index
    %c0_72 = arith.constant 0 : index
    %188 = vector.load %arg11[%c64_71, %c0_72] : memref<192x32xf32, #tpu.memory_space<vmem>>, vector<8x32xf32>
    tpu.vector_store %arg11[%c64_71, %c0_72], %187 {strides = array<i32>} : memref<192x32xf32, #tpu.memory_space<vmem>>, vector<8x32xf32>,
    %c72 = arith.constant 72 : index
    %c0_73 = arith.constant 0 : index
    %189 = vector.load %arg10[%c72, %c0_73] : memref<192x128xf32, #tpu.memory_space<vmem>>, vector<8x128xf32>
    %c0_74 = arith.constant 0 : index
    %c0_75 = arith.constant 0 : index
    %190 = vector.load %arg2[%c0_74, %c0_75] : memref<32x128xf32, #tpu.memory_space<vmem>>, vector<32x128xf32>
    %cst_76 = arith.constant dense<0.000000e+00> : vector<8x128xf32>
    %191 = tpu.matmul %187, %190, %cst_76 {dimension_numbers = #tpu.dot_dimension_numbers<[1], [0], [0], [1], [0, 0, 1, 1], [], []>} : vector<8x32xf32>, vector<32x128xf32>, vector<8x128xf32> -> vector<8x128xf32>
    %192 = arith.addf %189, %191 : vector<8x128xf32>
    %193 = arith.negf %192 : vector<8x128xf32>
    %194 = math.exp %193 : vector<8x128xf32>
    %cst_77 = arith.constant 1.000000e+00 : f32
    %195 = vector.broadcast %cst_77 : f32 to vector<8x128xf32>
    %196 = arith.addf %195, %194 : vector<8x128xf32>
    %197 = arith.divf %195, %196 : vector<8x128xf32>
    %198 = vector.extract_strided_slice %197 {offsets = [0, 0], sizes = [8, 32], strides = [1, 1]} : vector<8x128xf32> to vector<8x32xf32>
    %199 = vector.extract_strided_slice %197 {offsets = [0, 32], sizes = [8, 32], strides = [1, 1]} : vector<8x128xf32> to vector<8x32xf32>
    %200 = vector.extract_strided_slice %197 {offsets = [0, 96], sizes = [8, 32], strides = [1, 1]} : vector<8x128xf32> to vector<8x32xf32>
    %201 = vector.extract_strided_slice %192 {offsets = [0, 64], sizes = [8, 32], strides = [1, 1]} : vector<8x128xf32> to vector<8x32xf32>
    %202 = math.tanh %201 : vector<8x32xf32>
    %203 = arith.mulf %199, %185 : vector<8x32xf32>
    %204 = arith.mulf %198, %202 : vector<8x32xf32>
    %205 = arith.addf %203, %204 : vector<8x32xf32>
    %206 = math.tanh %205 : vector<8x32xf32>
    %207 = arith.mulf %200, %206 : vector<8x32xf32>
    %c72_78 = arith.constant 72 : index
    %c0_79 = arith.constant 0 : index
    %208 = vector.load %arg11[%c72_78, %c0_79] : memref<192x32xf32, #tpu.memory_space<vmem>>, vector<8x32xf32>
    tpu.vector_store %arg11[%c72_78, %c0_79], %207 {strides = array<i32>} : memref<192x32xf32, #tpu.memory_space<vmem>>, vector<8x32xf32>,
    %c80 = arith.constant 80 : index
    %c0_80 = arith.constant 0 : index
    %209 = vector.load %arg10[%c80, %c0_80] : memref<192x128xf32, #tpu.memory_space<vmem>>, vector<8x128xf32>
    %c0_81 = arith.constant 0 : index
    %c0_82 = arith.constant 0 : index
    %210 = vector.load %arg2[%c0_81, %c0_82] : memref<32x128xf32, #tpu.memory_space<vmem>>, vector<32x128xf32>
    %cst_83 = arith.constant dense<0.000000e+00> : vector<8x128xf32>
    %211 = tpu.matmul %207, %210, %cst_83 {dimension_numbers = #tpu.dot_dimension_numbers<[1], [0], [0], [1], [0, 0, 1, 1], [], []>} : vector<8x32xf32>, vector<32x128xf32>, vector<8x128xf32> -> vector<8x128xf32>
    %212 = arith.addf %209, %211 : vector<8x128xf32>
    %213 = arith.negf %212 : vector<8x128xf32>
    %214 = math.exp %213 : vector<8x128xf32>
    %cst_84 = arith.constant 1.000000e+00 : f32
    %215 = vector.broadcast %cst_84 : f32 to vector<8x128xf32>
    %216 = arith.addf %215, %214 : vector<8x128xf32>
    %217 = arith.divf %215, %216 : vector<8x128xf32>
    %218 = vector.extract_strided_slice %217 {offsets = [0, 0], sizes = [8, 32], strides = [1, 1]} : vector<8x128xf32> to vector<8x32xf32>
    %219 = vector.extract_strided_slice %217 {offsets = [0, 32], sizes = [8, 32], strides = [1, 1]} : vector<8x128xf32> to vector<8x32xf32>
    %220 = vector.extract_strided_slice %217 {offsets = [0, 96], sizes = [8, 32], strides = [1, 1]} : vector<8x128xf32> to vector<8x32xf32>
    %221 = vector.extract_strided_slice %212 {offsets = [0, 64], sizes = [8, 32], strides = [1, 1]} : vector<8x128xf32> to vector<8x32xf32>
    %222 = math.tanh %221 : vector<8x32xf32>
    %223 = arith.mulf %219, %205 : vector<8x32xf32>
    %224 = arith.mulf %218, %222 : vector<8x32xf32>
    %225 = arith.addf %223, %224 : vector<8x32xf32>
    %226 = math.tanh %225 : vector<8x32xf32>
    %227 = arith.mulf %220, %226 : vector<8x32xf32>
    %c80_85 = arith.constant 80 : index
    %c0_86 = arith.constant 0 : index
    %228 = vector.load %arg11[%c80_85, %c0_86] : memref<192x32xf32, #tpu.memory_space<vmem>>, vector<8x32xf32>
    tpu.vector_store %arg11[%c80_85, %c0_86], %227 {strides = array<i32>} : memref<192x32xf32, #tpu.memory_space<vmem>>, vector<8x32xf32>,
    %c88 = arith.constant 88 : index
    %c0_87 = arith.constant 0 : index
    %229 = vector.load %arg10[%c88, %c0_87] : memref<192x128xf32, #tpu.memory_space<vmem>>, vector<8x128xf32>
    %c0_88 = arith.constant 0 : index
    %c0_89 = arith.constant 0 : index
    %230 = vector.load %arg2[%c0_88, %c0_89] : memref<32x128xf32, #tpu.memory_space<vmem>>, vector<32x128xf32>
    %cst_90 = arith.constant dense<0.000000e+00> : vector<8x128xf32>
    %231 = tpu.matmul %227, %230, %cst_90 {dimension_numbers = #tpu.dot_dimension_numbers<[1], [0], [0], [1], [0, 0, 1, 1], [], []>} : vector<8x32xf32>, vector<32x128xf32>, vector<8x128xf32> -> vector<8x128xf32>
    %232 = arith.addf %229, %231 : vector<8x128xf32>
    %233 = arith.negf %232 : vector<8x128xf32>
    %234 = math.exp %233 : vector<8x128xf32>
    %cst_91 = arith.constant 1.000000e+00 : f32
    %235 = vector.broadcast %cst_91 : f32 to vector<8x128xf32>
    %236 = arith.addf %235, %234 : vector<8x128xf32>
    %237 = arith.divf %235, %236 : vector<8x128xf32>
    %238 = vector.extract_strided_slice %237 {offsets = [0, 0], sizes = [8, 32], strides = [1, 1]} : vector<8x128xf32> to vector<8x32xf32>
    %239 = vector.extract_strided_slice %237 {offsets = [0, 32], sizes = [8, 32], strides = [1, 1]} : vector<8x128xf32> to vector<8x32xf32>
    %240 = vector.extract_strided_slice %237 {offsets = [0, 96], sizes = [8, 32], strides = [1, 1]} : vector<8x128xf32> to vector<8x32xf32>
    %241 = vector.extract_strided_slice %232 {offsets = [0, 64], sizes = [8, 32], strides = [1, 1]} : vector<8x128xf32> to vector<8x32xf32>
    %242 = math.tanh %241 : vector<8x32xf32>
    %243 = arith.mulf %239, %225 : vector<8x32xf32>
    %244 = arith.mulf %238, %242 : vector<8x32xf32>
    %245 = arith.addf %243, %244 : vector<8x32xf32>
    %246 = math.tanh %245 : vector<8x32xf32>
    %247 = arith.mulf %240, %246 : vector<8x32xf32>
    %c88_92 = arith.constant 88 : index
    %c0_93 = arith.constant 0 : index
    %248 = vector.load %arg11[%c88_92, %c0_93] : memref<192x32xf32, #tpu.memory_space<vmem>>, vector<8x32xf32>
    tpu.vector_store %arg11[%c88_92, %c0_93], %247 {strides = array<i32>} : memref<192x32xf32, #tpu.memory_space<vmem>>, vector<8x32xf32>,
    %c96 = arith.constant 96 : index
    %c0_94 = arith.constant 0 : index
    %249 = vector.load %arg10[%c96, %c0_94] : memref<192x128xf32, #tpu.memory_space<vmem>>, vector<8x128xf32>
    %c0_95 = arith.constant 0 : index
    %c0_96 = arith.constant 0 : index
    %250 = vector.load %arg2[%c0_95, %c0_96] : memref<32x128xf32, #tpu.memory_space<vmem>>, vector<32x128xf32>
    %cst_97 = arith.constant dense<0.000000e+00> : vector<8x128xf32>
    %251 = tpu.matmul %247, %250, %cst_97 {dimension_numbers = #tpu.dot_dimension_numbers<[1], [0], [0], [1], [0, 0, 1, 1], [], []>} : vector<8x32xf32>, vector<32x128xf32>, vector<8x128xf32> -> vector<8x128xf32>
    %252 = arith.addf %249, %251 : vector<8x128xf32>
    %253 = arith.negf %252 : vector<8x128xf32>
    %254 = math.exp %253 : vector<8x128xf32>
    %cst_98 = arith.constant 1.000000e+00 : f32
    %255 = vector.broadcast %cst_98 : f32 to vector<8x128xf32>
    %256 = arith.addf %255, %254 : vector<8x128xf32>
    %257 = arith.divf %255, %256 : vector<8x128xf32>
    %258 = vector.extract_strided_slice %257 {offsets = [0, 0], sizes = [8, 32], strides = [1, 1]} : vector<8x128xf32> to vector<8x32xf32>
    %259 = vector.extract_strided_slice %257 {offsets = [0, 32], sizes = [8, 32], strides = [1, 1]} : vector<8x128xf32> to vector<8x32xf32>
    %260 = vector.extract_strided_slice %257 {offsets = [0, 96], sizes = [8, 32], strides = [1, 1]} : vector<8x128xf32> to vector<8x32xf32>
    %261 = vector.extract_strided_slice %252 {offsets = [0, 64], sizes = [8, 32], strides = [1, 1]} : vector<8x128xf32> to vector<8x32xf32>
    %262 = math.tanh %261 : vector<8x32xf32>
    %263 = arith.mulf %259, %245 : vector<8x32xf32>
    %264 = arith.mulf %258, %262 : vector<8x32xf32>
    %265 = arith.addf %263, %264 : vector<8x32xf32>
    %266 = math.tanh %265 : vector<8x32xf32>
    %267 = arith.mulf %260, %266 : vector<8x32xf32>
    %c96_99 = arith.constant 96 : index
    %c0_100 = arith.constant 0 : index
    %268 = vector.load %arg11[%c96_99, %c0_100] : memref<192x32xf32, #tpu.memory_space<vmem>>, vector<8x32xf32>
    tpu.vector_store %arg11[%c96_99, %c0_100], %267 {strides = array<i32>} : memref<192x32xf32, #tpu.memory_space<vmem>>, vector<8x32xf32>,
    %c104 = arith.constant 104 : index
    %c0_101 = arith.constant 0 : index
    %269 = vector.load %arg10[%c104, %c0_101] : memref<192x128xf32, #tpu.memory_space<vmem>>, vector<8x128xf32>
    %c0_102 = arith.constant 0 : index
    %c0_103 = arith.constant 0 : index
    %270 = vector.load %arg2[%c0_102, %c0_103] : memref<32x128xf32, #tpu.memory_space<vmem>>, vector<32x128xf32>
    %cst_104 = arith.constant dense<0.000000e+00> : vector<8x128xf32>
    %271 = tpu.matmul %267, %270, %cst_104 {dimension_numbers = #tpu.dot_dimension_numbers<[1], [0], [0], [1], [0, 0, 1, 1], [], []>} : vector<8x32xf32>, vector<32x128xf32>, vector<8x128xf32> -> vector<8x128xf32>
    %272 = arith.addf %269, %271 : vector<8x128xf32>
    %273 = arith.negf %272 : vector<8x128xf32>
    %274 = math.exp %273 : vector<8x128xf32>
    %cst_105 = arith.constant 1.000000e+00 : f32
    %275 = vector.broadcast %cst_105 : f32 to vector<8x128xf32>
    %276 = arith.addf %275, %274 : vector<8x128xf32>
    %277 = arith.divf %275, %276 : vector<8x128xf32>
    %278 = vector.extract_strided_slice %277 {offsets = [0, 0], sizes = [8, 32], strides = [1, 1]} : vector<8x128xf32> to vector<8x32xf32>
    %279 = vector.extract_strided_slice %277 {offsets = [0, 32], sizes = [8, 32], strides = [1, 1]} : vector<8x128xf32> to vector<8x32xf32>
    %280 = vector.extract_strided_slice %277 {offsets = [0, 96], sizes = [8, 32], strides = [1, 1]} : vector<8x128xf32> to vector<8x32xf32>
    %281 = vector.extract_strided_slice %272 {offsets = [0, 64], sizes = [8, 32], strides = [1, 1]} : vector<8x128xf32> to vector<8x32xf32>
    %282 = math.tanh %281 : vector<8x32xf32>
    %283 = arith.mulf %279, %265 : vector<8x32xf32>
    %284 = arith.mulf %278, %282 : vector<8x32xf32>
    %285 = arith.addf %283, %284 : vector<8x32xf32>
    %286 = math.tanh %285 : vector<8x32xf32>
    %287 = arith.mulf %280, %286 : vector<8x32xf32>
    %c104_106 = arith.constant 104 : index
    %c0_107 = arith.constant 0 : index
    %288 = vector.load %arg11[%c104_106, %c0_107] : memref<192x32xf32, #tpu.memory_space<vmem>>, vector<8x32xf32>
    tpu.vector_store %arg11[%c104_106, %c0_107], %287 {strides = array<i32>} : memref<192x32xf32, #tpu.memory_space<vmem>>, vector<8x32xf32>,
    %c112 = arith.constant 112 : index
    %c0_108 = arith.constant 0 : index
    %289 = vector.load %arg10[%c112, %c0_108] : memref<192x128xf32, #tpu.memory_space<vmem>>, vector<8x128xf32>
    %c0_109 = arith.constant 0 : index
    %c0_110 = arith.constant 0 : index
    %290 = vector.load %arg2[%c0_109, %c0_110] : memref<32x128xf32, #tpu.memory_space<vmem>>, vector<32x128xf32>
    %cst_111 = arith.constant dense<0.000000e+00> : vector<8x128xf32>
    %291 = tpu.matmul %287, %290, %cst_111 {dimension_numbers = #tpu.dot_dimension_numbers<[1], [0], [0], [1], [0, 0, 1, 1], [], []>} : vector<8x32xf32>, vector<32x128xf32>, vector<8x128xf32> -> vector<8x128xf32>
    %292 = arith.addf %289, %291 : vector<8x128xf32>
    %293 = arith.negf %292 : vector<8x128xf32>
    %294 = math.exp %293 : vector<8x128xf32>
    %cst_112 = arith.constant 1.000000e+00 : f32
    %295 = vector.broadcast %cst_112 : f32 to vector<8x128xf32>
    %296 = arith.addf %295, %294 : vector<8x128xf32>
    %297 = arith.divf %295, %296 : vector<8x128xf32>
    %298 = vector.extract_strided_slice %297 {offsets = [0, 0], sizes = [8, 32], strides = [1, 1]} : vector<8x128xf32> to vector<8x32xf32>
    %299 = vector.extract_strided_slice %297 {offsets = [0, 32], sizes = [8, 32], strides = [1, 1]} : vector<8x128xf32> to vector<8x32xf32>
    %300 = vector.extract_strided_slice %297 {offsets = [0, 96], sizes = [8, 32], strides = [1, 1]} : vector<8x128xf32> to vector<8x32xf32>
    %301 = vector.extract_strided_slice %292 {offsets = [0, 64], sizes = [8, 32], strides = [1, 1]} : vector<8x128xf32> to vector<8x32xf32>
    %302 = math.tanh %301 : vector<8x32xf32>
    %303 = arith.mulf %299, %285 : vector<8x32xf32>
    %304 = arith.mulf %298, %302 : vector<8x32xf32>
    %305 = arith.addf %303, %304 : vector<8x32xf32>
    %306 = math.tanh %305 : vector<8x32xf32>
    %307 = arith.mulf %300, %306 : vector<8x32xf32>
    %c112_113 = arith.constant 112 : index
    %c0_114 = arith.constant 0 : index
    %308 = vector.load %arg11[%c112_113, %c0_114] : memref<192x32xf32, #tpu.memory_space<vmem>>, vector<8x32xf32>
    tpu.vector_store %arg11[%c112_113, %c0_114], %307 {strides = array<i32>} : memref<192x32xf32, #tpu.memory_space<vmem>>, vector<8x32xf32>,
    %c120 = arith.constant 120 : index
    %c0_115 = arith.constant 0 : index
    %309 = vector.load %arg10[%c120, %c0_115] : memref<192x128xf32, #tpu.memory_space<vmem>>, vector<8x128xf32>
    %c0_116 = arith.constant 0 : index
    %c0_117 = arith.constant 0 : index
    %310 = vector.load %arg2[%c0_116, %c0_117] : memref<32x128xf32, #tpu.memory_space<vmem>>, vector<32x128xf32>
    %cst_118 = arith.constant dense<0.000000e+00> : vector<8x128xf32>
    %311 = tpu.matmul %307, %310, %cst_118 {dimension_numbers = #tpu.dot_dimension_numbers<[1], [0], [0], [1], [0, 0, 1, 1], [], []>} : vector<8x32xf32>, vector<32x128xf32>, vector<8x128xf32> -> vector<8x128xf32>
    %312 = arith.addf %309, %311 : vector<8x128xf32>
    %313 = arith.negf %312 : vector<8x128xf32>
    %314 = math.exp %313 : vector<8x128xf32>
    %cst_119 = arith.constant 1.000000e+00 : f32
    %315 = vector.broadcast %cst_119 : f32 to vector<8x128xf32>
    %316 = arith.addf %315, %314 : vector<8x128xf32>
    %317 = arith.divf %315, %316 : vector<8x128xf32>
    %318 = vector.extract_strided_slice %317 {offsets = [0, 0], sizes = [8, 32], strides = [1, 1]} : vector<8x128xf32> to vector<8x32xf32>
    %319 = vector.extract_strided_slice %317 {offsets = [0, 32], sizes = [8, 32], strides = [1, 1]} : vector<8x128xf32> to vector<8x32xf32>
    %320 = vector.extract_strided_slice %317 {offsets = [0, 96], sizes = [8, 32], strides = [1, 1]} : vector<8x128xf32> to vector<8x32xf32>
    %321 = vector.extract_strided_slice %312 {offsets = [0, 64], sizes = [8, 32], strides = [1, 1]} : vector<8x128xf32> to vector<8x32xf32>
    %322 = math.tanh %321 : vector<8x32xf32>
    %323 = arith.mulf %319, %305 : vector<8x32xf32>
    %324 = arith.mulf %318, %322 : vector<8x32xf32>
    %325 = arith.addf %323, %324 : vector<8x32xf32>
    %326 = math.tanh %325 : vector<8x32xf32>
    %327 = arith.mulf %320, %326 : vector<8x32xf32>
    %c120_120 = arith.constant 120 : index
    %c0_121 = arith.constant 0 : index
    %328 = vector.load %arg11[%c120_120, %c0_121] : memref<192x32xf32, #tpu.memory_space<vmem>>, vector<8x32xf32>
    tpu.vector_store %arg11[%c120_120, %c0_121], %327 {strides = array<i32>} : memref<192x32xf32, #tpu.memory_space<vmem>>, vector<8x32xf32>,
    %c128 = arith.constant 128 : index
    %c0_122 = arith.constant 0 : index
    %329 = vector.load %arg10[%c128, %c0_122] : memref<192x128xf32, #tpu.memory_space<vmem>>, vector<8x128xf32>
    %c0_123 = arith.constant 0 : index
    %c0_124 = arith.constant 0 : index
    %330 = vector.load %arg2[%c0_123, %c0_124] : memref<32x128xf32, #tpu.memory_space<vmem>>, vector<32x128xf32>
    %cst_125 = arith.constant dense<0.000000e+00> : vector<8x128xf32>
    %331 = tpu.matmul %327, %330, %cst_125 {dimension_numbers = #tpu.dot_dimension_numbers<[1], [0], [0], [1], [0, 0, 1, 1], [], []>} : vector<8x32xf32>, vector<32x128xf32>, vector<8x128xf32> -> vector<8x128xf32>
    %332 = arith.addf %329, %331 : vector<8x128xf32>
    %333 = arith.negf %332 : vector<8x128xf32>
    %334 = math.exp %333 : vector<8x128xf32>
    %cst_126 = arith.constant 1.000000e+00 : f32
    %335 = vector.broadcast %cst_126 : f32 to vector<8x128xf32>
    %336 = arith.addf %335, %334 : vector<8x128xf32>
    %337 = arith.divf %335, %336 : vector<8x128xf32>
    %338 = vector.extract_strided_slice %337 {offsets = [0, 0], sizes = [8, 32], strides = [1, 1]} : vector<8x128xf32> to vector<8x32xf32>
    %339 = vector.extract_strided_slice %337 {offsets = [0, 32], sizes = [8, 32], strides = [1, 1]} : vector<8x128xf32> to vector<8x32xf32>
    %340 = vector.extract_strided_slice %337 {offsets = [0, 96], sizes = [8, 32], strides = [1, 1]} : vector<8x128xf32> to vector<8x32xf32>
    %341 = vector.extract_strided_slice %332 {offsets = [0, 64], sizes = [8, 32], strides = [1, 1]} : vector<8x128xf32> to vector<8x32xf32>
    %342 = math.tanh %341 : vector<8x32xf32>
    %343 = arith.mulf %339, %325 : vector<8x32xf32>
    %344 = arith.mulf %338, %342 : vector<8x32xf32>
    %345 = arith.addf %343, %344 : vector<8x32xf32>
    %346 = math.tanh %345 : vector<8x32xf32>
    %347 = arith.mulf %340, %346 : vector<8x32xf32>
    %c128_127 = arith.constant 128 : index
    %c0_128 = arith.constant 0 : index
    %348 = vector.load %arg11[%c128_127, %c0_128] : memref<192x32xf32, #tpu.memory_space<vmem>>, vector<8x32xf32>
    tpu.vector_store %arg11[%c128_127, %c0_128], %347 {strides = array<i32>} : memref<192x32xf32, #tpu.memory_space<vmem>>, vector<8x32xf32>,
    %c136 = arith.constant 136 : index
    %c0_129 = arith.constant 0 : index
    %349 = vector.load %arg10[%c136, %c0_129] : memref<192x128xf32, #tpu.memory_space<vmem>>, vector<8x128xf32>
    %c0_130 = arith.constant 0 : index
    %c0_131 = arith.constant 0 : index
    %350 = vector.load %arg2[%c0_130, %c0_131] : memref<32x128xf32, #tpu.memory_space<vmem>>, vector<32x128xf32>
    %cst_132 = arith.constant dense<0.000000e+00> : vector<8x128xf32>
    %351 = tpu.matmul %347, %350, %cst_132 {dimension_numbers = #tpu.dot_dimension_numbers<[1], [0], [0], [1], [0, 0, 1, 1], [], []>} : vector<8x32xf32>, vector<32x128xf32>, vector<8x128xf32> -> vector<8x128xf32>
    %352 = arith.addf %349, %351 : vector<8x128xf32>
    %353 = arith.negf %352 : vector<8x128xf32>
    %354 = math.exp %353 : vector<8x128xf32>
    %cst_133 = arith.constant 1.000000e+00 : f32
    %355 = vector.broadcast %cst_133 : f32 to vector<8x128xf32>
    %356 = arith.addf %355, %354 : vector<8x128xf32>
    %357 = arith.divf %355, %356 : vector<8x128xf32>
    %358 = vector.extract_strided_slice %357 {offsets = [0, 0], sizes = [8, 32], strides = [1, 1]} : vector<8x128xf32> to vector<8x32xf32>
    %359 = vector.extract_strided_slice %357 {offsets = [0, 32], sizes = [8, 32], strides = [1, 1]} : vector<8x128xf32> to vector<8x32xf32>
    %360 = vector.extract_strided_slice %357 {offsets = [0, 96], sizes = [8, 32], strides = [1, 1]} : vector<8x128xf32> to vector<8x32xf32>
    %361 = vector.extract_strided_slice %352 {offsets = [0, 64], sizes = [8, 32], strides = [1, 1]} : vector<8x128xf32> to vector<8x32xf32>
    %362 = math.tanh %361 : vector<8x32xf32>
    %363 = arith.mulf %359, %345 : vector<8x32xf32>
    %364 = arith.mulf %358, %362 : vector<8x32xf32>
    %365 = arith.addf %363, %364 : vector<8x32xf32>
    %366 = math.tanh %365 : vector<8x32xf32>
    %367 = arith.mulf %360, %366 : vector<8x32xf32>
    %c136_134 = arith.constant 136 : index
    %c0_135 = arith.constant 0 : index
    %368 = vector.load %arg11[%c136_134, %c0_135] : memref<192x32xf32, #tpu.memory_space<vmem>>, vector<8x32xf32>
    tpu.vector_store %arg11[%c136_134, %c0_135], %367 {strides = array<i32>} : memref<192x32xf32, #tpu.memory_space<vmem>>, vector<8x32xf32>,
    %c144 = arith.constant 144 : index
    %c0_136 = arith.constant 0 : index
    %369 = vector.load %arg10[%c144, %c0_136] : memref<192x128xf32, #tpu.memory_space<vmem>>, vector<8x128xf32>
    %c0_137 = arith.constant 0 : index
    %c0_138 = arith.constant 0 : index
    %370 = vector.load %arg2[%c0_137, %c0_138] : memref<32x128xf32, #tpu.memory_space<vmem>>, vector<32x128xf32>
    %cst_139 = arith.constant dense<0.000000e+00> : vector<8x128xf32>
    %371 = tpu.matmul %367, %370, %cst_139 {dimension_numbers = #tpu.dot_dimension_numbers<[1], [0], [0], [1], [0, 0, 1, 1], [], []>} : vector<8x32xf32>, vector<32x128xf32>, vector<8x128xf32> -> vector<8x128xf32>
    %372 = arith.addf %369, %371 : vector<8x128xf32>
    %373 = arith.negf %372 : vector<8x128xf32>
    %374 = math.exp %373 : vector<8x128xf32>
    %cst_140 = arith.constant 1.000000e+00 : f32
    %375 = vector.broadcast %cst_140 : f32 to vector<8x128xf32>
    %376 = arith.addf %375, %374 : vector<8x128xf32>
    %377 = arith.divf %375, %376 : vector<8x128xf32>
    %378 = vector.extract_strided_slice %377 {offsets = [0, 0], sizes = [8, 32], strides = [1, 1]} : vector<8x128xf32> to vector<8x32xf32>
    %379 = vector.extract_strided_slice %377 {offsets = [0, 32], sizes = [8, 32], strides = [1, 1]} : vector<8x128xf32> to vector<8x32xf32>
    %380 = vector.extract_strided_slice %377 {offsets = [0, 96], sizes = [8, 32], strides = [1, 1]} : vector<8x128xf32> to vector<8x32xf32>
    %381 = vector.extract_strided_slice %372 {offsets = [0, 64], sizes = [8, 32], strides = [1, 1]} : vector<8x128xf32> to vector<8x32xf32>
    %382 = math.tanh %381 : vector<8x32xf32>
    %383 = arith.mulf %379, %365 : vector<8x32xf32>
    %384 = arith.mulf %378, %382 : vector<8x32xf32>
    %385 = arith.addf %383, %384 : vector<8x32xf32>
    %386 = math.tanh %385 : vector<8x32xf32>
    %387 = arith.mulf %380, %386 : vector<8x32xf32>
    %c144_141 = arith.constant 144 : index
    %c0_142 = arith.constant 0 : index
    %388 = vector.load %arg11[%c144_141, %c0_142] : memref<192x32xf32, #tpu.memory_space<vmem>>, vector<8x32xf32>
    tpu.vector_store %arg11[%c144_141, %c0_142], %387 {strides = array<i32>} : memref<192x32xf32, #tpu.memory_space<vmem>>, vector<8x32xf32>,
    %c152 = arith.constant 152 : index
    %c0_143 = arith.constant 0 : index
    %389 = vector.load %arg10[%c152, %c0_143] : memref<192x128xf32, #tpu.memory_space<vmem>>, vector<8x128xf32>
    %c0_144 = arith.constant 0 : index
    %c0_145 = arith.constant 0 : index
    %390 = vector.load %arg2[%c0_144, %c0_145] : memref<32x128xf32, #tpu.memory_space<vmem>>, vector<32x128xf32>
    %cst_146 = arith.constant dense<0.000000e+00> : vector<8x128xf32>
    %391 = tpu.matmul %387, %390, %cst_146 {dimension_numbers = #tpu.dot_dimension_numbers<[1], [0], [0], [1], [0, 0, 1, 1], [], []>} : vector<8x32xf32>, vector<32x128xf32>, vector<8x128xf32> -> vector<8x128xf32>
    %392 = arith.addf %389, %391 : vector<8x128xf32>
    %393 = arith.negf %392 : vector<8x128xf32>
    %394 = math.exp %393 : vector<8x128xf32>
    %cst_147 = arith.constant 1.000000e+00 : f32
    %395 = vector.broadcast %cst_147 : f32 to vector<8x128xf32>
    %396 = arith.addf %395, %394 : vector<8x128xf32>
    %397 = arith.divf %395, %396 : vector<8x128xf32>
    %398 = vector.extract_strided_slice %397 {offsets = [0, 0], sizes = [8, 32], strides = [1, 1]} : vector<8x128xf32> to vector<8x32xf32>
    %399 = vector.extract_strided_slice %397 {offsets = [0, 32], sizes = [8, 32], strides = [1, 1]} : vector<8x128xf32> to vector<8x32xf32>
    %400 = vector.extract_strided_slice %397 {offsets = [0, 96], sizes = [8, 32], strides = [1, 1]} : vector<8x128xf32> to vector<8x32xf32>
    %401 = vector.extract_strided_slice %392 {offsets = [0, 64], sizes = [8, 32], strides = [1, 1]} : vector<8x128xf32> to vector<8x32xf32>
    %402 = math.tanh %401 : vector<8x32xf32>
    %403 = arith.mulf %399, %385 : vector<8x32xf32>
    %404 = arith.mulf %398, %402 : vector<8x32xf32>
    %405 = arith.addf %403, %404 : vector<8x32xf32>
    %406 = math.tanh %405 : vector<8x32xf32>
    %407 = arith.mulf %400, %406 : vector<8x32xf32>
    %c152_148 = arith.constant 152 : index
    %c0_149 = arith.constant 0 : index
    %408 = vector.load %arg11[%c152_148, %c0_149] : memref<192x32xf32, #tpu.memory_space<vmem>>, vector<8x32xf32>
    tpu.vector_store %arg11[%c152_148, %c0_149], %407 {strides = array<i32>} : memref<192x32xf32, #tpu.memory_space<vmem>>, vector<8x32xf32>,
    %c160 = arith.constant 160 : index
    %c0_150 = arith.constant 0 : index
    %409 = vector.load %arg10[%c160, %c0_150] : memref<192x128xf32, #tpu.memory_space<vmem>>, vector<8x128xf32>
    %c0_151 = arith.constant 0 : index
    %c0_152 = arith.constant 0 : index
    %410 = vector.load %arg2[%c0_151, %c0_152] : memref<32x128xf32, #tpu.memory_space<vmem>>, vector<32x128xf32>
    %cst_153 = arith.constant dense<0.000000e+00> : vector<8x128xf32>
    %411 = tpu.matmul %407, %410, %cst_153 {dimension_numbers = #tpu.dot_dimension_numbers<[1], [0], [0], [1], [0, 0, 1, 1], [], []>} : vector<8x32xf32>, vector<32x128xf32>, vector<8x128xf32> -> vector<8x128xf32>
    %412 = arith.addf %409, %411 : vector<8x128xf32>
    %413 = arith.negf %412 : vector<8x128xf32>
    %414 = math.exp %413 : vector<8x128xf32>
    %cst_154 = arith.constant 1.000000e+00 : f32
    %415 = vector.broadcast %cst_154 : f32 to vector<8x128xf32>
    %416 = arith.addf %415, %414 : vector<8x128xf32>
    %417 = arith.divf %415, %416 : vector<8x128xf32>
    %418 = vector.extract_strided_slice %417 {offsets = [0, 0], sizes = [8, 32], strides = [1, 1]} : vector<8x128xf32> to vector<8x32xf32>
    %419 = vector.extract_strided_slice %417 {offsets = [0, 32], sizes = [8, 32], strides = [1, 1]} : vector<8x128xf32> to vector<8x32xf32>
    %420 = vector.extract_strided_slice %417 {offsets = [0, 96], sizes = [8, 32], strides = [1, 1]} : vector<8x128xf32> to vector<8x32xf32>
    %421 = vector.extract_strided_slice %412 {offsets = [0, 64], sizes = [8, 32], strides = [1, 1]} : vector<8x128xf32> to vector<8x32xf32>
    %422 = math.tanh %421 : vector<8x32xf32>
    %423 = arith.mulf %419, %405 : vector<8x32xf32>
    %424 = arith.mulf %418, %422 : vector<8x32xf32>
    %425 = arith.addf %423, %424 : vector<8x32xf32>
    %426 = math.tanh %425 : vector<8x32xf32>
    %427 = arith.mulf %420, %426 : vector<8x32xf32>
    %c160_155 = arith.constant 160 : index
    %c0_156 = arith.constant 0 : index
    %428 = vector.load %arg11[%c160_155, %c0_156] : memref<192x32xf32, #tpu.memory_space<vmem>>, vector<8x32xf32>
    tpu.vector_store %arg11[%c160_155, %c0_156], %427 {strides = array<i32>} : memref<192x32xf32, #tpu.memory_space<vmem>>, vector<8x32xf32>,
    %c168 = arith.constant 168 : index
    %c0_157 = arith.constant 0 : index
    %429 = vector.load %arg10[%c168, %c0_157] : memref<192x128xf32, #tpu.memory_space<vmem>>, vector<8x128xf32>
    %c0_158 = arith.constant 0 : index
    %c0_159 = arith.constant 0 : index
    %430 = vector.load %arg2[%c0_158, %c0_159] : memref<32x128xf32, #tpu.memory_space<vmem>>, vector<32x128xf32>
    %cst_160 = arith.constant dense<0.000000e+00> : vector<8x128xf32>
    %431 = tpu.matmul %427, %430, %cst_160 {dimension_numbers = #tpu.dot_dimension_numbers<[1], [0], [0], [1], [0, 0, 1, 1], [], []>} : vector<8x32xf32>, vector<32x128xf32>, vector<8x128xf32> -> vector<8x128xf32>
    %432 = arith.addf %429, %431 : vector<8x128xf32>
    %433 = arith.negf %432 : vector<8x128xf32>
    %434 = math.exp %433 : vector<8x128xf32>
    %cst_161 = arith.constant 1.000000e+00 : f32
    %435 = vector.broadcast %cst_161 : f32 to vector<8x128xf32>
    %436 = arith.addf %435, %434 : vector<8x128xf32>
    %437 = arith.divf %435, %436 : vector<8x128xf32>
    %438 = vector.extract_strided_slice %437 {offsets = [0, 0], sizes = [8, 32], strides = [1, 1]} : vector<8x128xf32> to vector<8x32xf32>
    %439 = vector.extract_strided_slice %437 {offsets = [0, 32], sizes = [8, 32], strides = [1, 1]} : vector<8x128xf32> to vector<8x32xf32>
    %440 = vector.extract_strided_slice %437 {offsets = [0, 96], sizes = [8, 32], strides = [1, 1]} : vector<8x128xf32> to vector<8x32xf32>
    %441 = vector.extract_strided_slice %432 {offsets = [0, 64], sizes = [8, 32], strides = [1, 1]} : vector<8x128xf32> to vector<8x32xf32>
    %442 = math.tanh %441 : vector<8x32xf32>
    %443 = arith.mulf %439, %425 : vector<8x32xf32>
    %444 = arith.mulf %438, %442 : vector<8x32xf32>
    %445 = arith.addf %443, %444 : vector<8x32xf32>
    %446 = math.tanh %445 : vector<8x32xf32>
    %447 = arith.mulf %440, %446 : vector<8x32xf32>
    %c168_162 = arith.constant 168 : index
    %c0_163 = arith.constant 0 : index
    %448 = vector.load %arg11[%c168_162, %c0_163] : memref<192x32xf32, #tpu.memory_space<vmem>>, vector<8x32xf32>
    tpu.vector_store %arg11[%c168_162, %c0_163], %447 {strides = array<i32>} : memref<192x32xf32, #tpu.memory_space<vmem>>, vector<8x32xf32>,
    %c176 = arith.constant 176 : index
    %c0_164 = arith.constant 0 : index
    %449 = vector.load %arg10[%c176, %c0_164] : memref<192x128xf32, #tpu.memory_space<vmem>>, vector<8x128xf32>
    %c0_165 = arith.constant 0 : index
    %c0_166 = arith.constant 0 : index
    %450 = vector.load %arg2[%c0_165, %c0_166] : memref<32x128xf32, #tpu.memory_space<vmem>>, vector<32x128xf32>
    %cst_167 = arith.constant dense<0.000000e+00> : vector<8x128xf32>
    %451 = tpu.matmul %447, %450, %cst_167 {dimension_numbers = #tpu.dot_dimension_numbers<[1], [0], [0], [1], [0, 0, 1, 1], [], []>} : vector<8x32xf32>, vector<32x128xf32>, vector<8x128xf32> -> vector<8x128xf32>
    %452 = arith.addf %449, %451 : vector<8x128xf32>
    %453 = arith.negf %452 : vector<8x128xf32>
    %454 = math.exp %453 : vector<8x128xf32>
    %cst_168 = arith.constant 1.000000e+00 : f32
    %455 = vector.broadcast %cst_168 : f32 to vector<8x128xf32>
    %456 = arith.addf %455, %454 : vector<8x128xf32>
    %457 = arith.divf %455, %456 : vector<8x128xf32>
    %458 = vector.extract_strided_slice %457 {offsets = [0, 0], sizes = [8, 32], strides = [1, 1]} : vector<8x128xf32> to vector<8x32xf32>
    %459 = vector.extract_strided_slice %457 {offsets = [0, 32], sizes = [8, 32], strides = [1, 1]} : vector<8x128xf32> to vector<8x32xf32>
    %460 = vector.extract_strided_slice %457 {offsets = [0, 96], sizes = [8, 32], strides = [1, 1]} : vector<8x128xf32> to vector<8x32xf32>
    %461 = vector.extract_strided_slice %452 {offsets = [0, 64], sizes = [8, 32], strides = [1, 1]} : vector<8x128xf32> to vector<8x32xf32>
    %462 = math.tanh %461 : vector<8x32xf32>
    %463 = arith.mulf %459, %445 : vector<8x32xf32>
    %464 = arith.mulf %458, %462 : vector<8x32xf32>
    %465 = arith.addf %463, %464 : vector<8x32xf32>
    %466 = math.tanh %465 : vector<8x32xf32>
    %467 = arith.mulf %460, %466 : vector<8x32xf32>
    %c176_169 = arith.constant 176 : index
    %c0_170 = arith.constant 0 : index
    %468 = vector.load %arg11[%c176_169, %c0_170] : memref<192x32xf32, #tpu.memory_space<vmem>>, vector<8x32xf32>
    tpu.vector_store %arg11[%c176_169, %c0_170], %467 {strides = array<i32>} : memref<192x32xf32, #tpu.memory_space<vmem>>, vector<8x32xf32>,
    %c184 = arith.constant 184 : index
    %c0_171 = arith.constant 0 : index
    %469 = vector.load %arg10[%c184, %c0_171] : memref<192x128xf32, #tpu.memory_space<vmem>>, vector<8x128xf32>
    %c0_172 = arith.constant 0 : index
    %c0_173 = arith.constant 0 : index
    %470 = vector.load %arg2[%c0_172, %c0_173] : memref<32x128xf32, #tpu.memory_space<vmem>>, vector<32x128xf32>
    %cst_174 = arith.constant dense<0.000000e+00> : vector<8x128xf32>
    %471 = tpu.matmul %467, %470, %cst_174 {dimension_numbers = #tpu.dot_dimension_numbers<[1], [0], [0], [1], [0, 0, 1, 1], [], []>} : vector<8x32xf32>, vector<32x128xf32>, vector<8x128xf32> -> vector<8x128xf32>
    %472 = arith.addf %469, %471 : vector<8x128xf32>
    %473 = arith.negf %472 : vector<8x128xf32>
    %474 = math.exp %473 : vector<8x128xf32>
    %cst_175 = arith.constant 1.000000e+00 : f32
    %475 = vector.broadcast %cst_175 : f32 to vector<8x128xf32>
    %476 = arith.addf %475, %474 : vector<8x128xf32>
    %477 = arith.divf %475, %476 : vector<8x128xf32>
    %478 = vector.extract_strided_slice %477 {offsets = [0, 0], sizes = [8, 32], strides = [1, 1]} : vector<8x128xf32> to vector<8x32xf32>
    %479 = vector.extract_strided_slice %477 {offsets = [0, 32], sizes = [8, 32], strides = [1, 1]} : vector<8x128xf32> to vector<8x32xf32>
    %480 = vector.extract_strided_slice %477 {offsets = [0, 96], sizes = [8, 32], strides = [1, 1]} : vector<8x128xf32> to vector<8x32xf32>
    %481 = vector.extract_strided_slice %472 {offsets = [0, 64], sizes = [8, 32], strides = [1, 1]} : vector<8x128xf32> to vector<8x32xf32>
    %482 = math.tanh %481 : vector<8x32xf32>
    %483 = arith.mulf %479, %465 : vector<8x32xf32>
    %484 = arith.mulf %478, %482 : vector<8x32xf32>
    %485 = arith.addf %483, %484 : vector<8x32xf32>
    %486 = math.tanh %485 : vector<8x32xf32>
    %487 = arith.mulf %480, %486 : vector<8x32xf32>
    %c184_176 = arith.constant 184 : index
    %c0_177 = arith.constant 0 : index
    %488 = vector.load %arg11[%c184_176, %c0_177] : memref<192x32xf32, #tpu.memory_space<vmem>>, vector<8x32xf32>
    tpu.vector_store %arg11[%c184_176, %c0_177], %487 {strides = array<i32>} : memref<192x32xf32, #tpu.memory_space<vmem>>, vector<8x32xf32>,
    %c0_178 = arith.constant 0 : index
    %c0_179 = arith.constant 0 : index
    %489 = vector.load %arg11[%c0_178, %c0_179] : memref<192x32xf32, #tpu.memory_space<vmem>>, vector<192x32xf32>
    %c0_180 = arith.constant 0 : index
    %c0_181 = arith.constant 0 : index
    %490 = vector.load %arg4[%c0_180, %c0_181] : memref<32x128xf32, #tpu.memory_space<vmem>>, vector<32x128xf32>
    %cst_182 = arith.constant dense<0.000000e+00> : vector<192x128xf32>
    %491 = tpu.matmul %489, %490, %cst_182 {dimension_numbers = #tpu.dot_dimension_numbers<[1], [0], [0], [1], [0, 0, 1, 1], [], []>} : vector<192x32xf32>, vector<32x128xf32>, vector<192x128xf32> -> vector<192x128xf32>
    %c0_183 = arith.constant 0 : index
    %c0_184 = arith.constant 0 : index
    %492 = vector.load %arg6[%c0_183, %c0_184] : memref<1x128xf32, #tpu.memory_space<vmem>>, vector<1x128xf32>
    %493 = vector.broadcast %492 : vector<1x128xf32> to vector<192x128xf32>
    %494 = arith.addf %491, %493 : vector<192x128xf32>
    %c0_185 = arith.constant 0 : index
    %c0_186 = arith.constant 0 : index
    %495 = vector.load %arg10[%c0_185, %c0_186] : memref<192x128xf32, #tpu.memory_space<vmem>>, vector<192x128xf32>
    tpu.vector_store %arg10[%c0_185, %c0_186], %494 {strides = array<i32>} : memref<192x128xf32, #tpu.memory_space<vmem>>, vector<192x128xf32>,
    %cst_187 = arith.constant 0.000000e+00 : f32
    %496 = vector.broadcast %cst_187 : f32 to vector<8x32xf32>
    %cst_188 = arith.constant 0.000000e+00 : f32
    %497 = vector.broadcast %cst_188 : f32 to vector<8x32xf32>
    %c0_189 = arith.constant 0 : index
    %c0_190 = arith.constant 0 : index
    %498 = vector.load %arg10[%c0_189, %c0_190] : memref<192x128xf32, #tpu.memory_space<vmem>>, vector<8x128xf32>
    %c0_191 = arith.constant 0 : index
    %c0_192 = arith.constant 0 : index
    %499 = vector.load %arg5[%c0_191, %c0_192] : memref<32x128xf32, #tpu.memory_space<vmem>>, vector<32x128xf32>
    %cst_193 = arith.constant dense<0.000000e+00> : vector<8x128xf32>
    %500 = tpu.matmul %496, %499, %cst_193 {dimension_numbers = #tpu.dot_dimension_numbers<[1], [0], [0], [1], [0, 0, 1, 1], [], []>} : vector<8x32xf32>, vector<32x128xf32>, vector<8x128xf32> -> vector<8x128xf32>
    %501 = arith.addf %498, %500 : vector<8x128xf32>
    %502 = arith.negf %501 : vector<8x128xf32>
    %503 = math.exp %502 : vector<8x128xf32>
    %cst_194 = arith.constant 1.000000e+00 : f32
    %504 = vector.broadcast %cst_194 : f32 to vector<8x128xf32>
    %505 = arith.addf %504, %503 : vector<8x128xf32>
    %506 = arith.divf %504, %505 : vector<8x128xf32>
    %507 = vector.extract_strided_slice %506 {offsets = [0, 0], sizes = [8, 32], strides = [1, 1]} : vector<8x128xf32> to vector<8x32xf32>
    %508 = vector.extract_strided_slice %506 {offsets = [0, 32], sizes = [8, 32], strides = [1, 1]} : vector<8x128xf32> to vector<8x32xf32>
    %509 = vector.extract_strided_slice %506 {offsets = [0, 96], sizes = [8, 32], strides = [1, 1]} : vector<8x128xf32> to vector<8x32xf32>
    %510 = vector.extract_strided_slice %501 {offsets = [0, 64], sizes = [8, 32], strides = [1, 1]} : vector<8x128xf32> to vector<8x32xf32>
    %511 = math.tanh %510 : vector<8x32xf32>
    %512 = arith.mulf %508, %497 : vector<8x32xf32>
    %513 = arith.mulf %507, %511 : vector<8x32xf32>
    %514 = arith.addf %512, %513 : vector<8x32xf32>
    %515 = math.tanh %514 : vector<8x32xf32>
    %516 = arith.mulf %509, %515 : vector<8x32xf32>
    %c8_195 = arith.constant 8 : index
    %c0_196 = arith.constant 0 : index
    %517 = vector.load %arg10[%c8_195, %c0_196] : memref<192x128xf32, #tpu.memory_space<vmem>>, vector<8x128xf32>
    %c0_197 = arith.constant 0 : index
    %c0_198 = arith.constant 0 : index
    %518 = vector.load %arg5[%c0_197, %c0_198] : memref<32x128xf32, #tpu.memory_space<vmem>>, vector<32x128xf32>
    %cst_199 = arith.constant dense<0.000000e+00> : vector<8x128xf32>
    %519 = tpu.matmul %516, %518, %cst_199 {dimension_numbers = #tpu.dot_dimension_numbers<[1], [0], [0], [1], [0, 0, 1, 1], [], []>} : vector<8x32xf32>, vector<32x128xf32>, vector<8x128xf32> -> vector<8x128xf32>
    %520 = arith.addf %517, %519 : vector<8x128xf32>
    %521 = arith.negf %520 : vector<8x128xf32>
    %522 = math.exp %521 : vector<8x128xf32>
    %cst_200 = arith.constant 1.000000e+00 : f32
    %523 = vector.broadcast %cst_200 : f32 to vector<8x128xf32>
    %524 = arith.addf %523, %522 : vector<8x128xf32>
    %525 = arith.divf %523, %524 : vector<8x128xf32>
    %526 = vector.extract_strided_slice %525 {offsets = [0, 0], sizes = [8, 32], strides = [1, 1]} : vector<8x128xf32> to vector<8x32xf32>
    %527 = vector.extract_strided_slice %525 {offsets = [0, 32], sizes = [8, 32], strides = [1, 1]} : vector<8x128xf32> to vector<8x32xf32>
    %528 = vector.extract_strided_slice %525 {offsets = [0, 96], sizes = [8, 32], strides = [1, 1]} : vector<8x128xf32> to vector<8x32xf32>
    %529 = vector.extract_strided_slice %520 {offsets = [0, 64], sizes = [8, 32], strides = [1, 1]} : vector<8x128xf32> to vector<8x32xf32>
    %530 = math.tanh %529 : vector<8x32xf32>
    %531 = arith.mulf %527, %514 : vector<8x32xf32>
    %532 = arith.mulf %526, %530 : vector<8x32xf32>
    %533 = arith.addf %531, %532 : vector<8x32xf32>
    %534 = math.tanh %533 : vector<8x32xf32>
    %535 = arith.mulf %528, %534 : vector<8x32xf32>
    %c16_201 = arith.constant 16 : index
    %c0_202 = arith.constant 0 : index
    %536 = vector.load %arg10[%c16_201, %c0_202] : memref<192x128xf32, #tpu.memory_space<vmem>>, vector<8x128xf32>
    %c0_203 = arith.constant 0 : index
    %c0_204 = arith.constant 0 : index
    %537 = vector.load %arg5[%c0_203, %c0_204] : memref<32x128xf32, #tpu.memory_space<vmem>>, vector<32x128xf32>
    %cst_205 = arith.constant dense<0.000000e+00> : vector<8x128xf32>
    %538 = tpu.matmul %535, %537, %cst_205 {dimension_numbers = #tpu.dot_dimension_numbers<[1], [0], [0], [1], [0, 0, 1, 1], [], []>} : vector<8x32xf32>, vector<32x128xf32>, vector<8x128xf32> -> vector<8x128xf32>
    %539 = arith.addf %536, %538 : vector<8x128xf32>
    %540 = arith.negf %539 : vector<8x128xf32>
    %541 = math.exp %540 : vector<8x128xf32>
    %cst_206 = arith.constant 1.000000e+00 : f32
    %542 = vector.broadcast %cst_206 : f32 to vector<8x128xf32>
    %543 = arith.addf %542, %541 : vector<8x128xf32>
    %544 = arith.divf %542, %543 : vector<8x128xf32>
    %545 = vector.extract_strided_slice %544 {offsets = [0, 0], sizes = [8, 32], strides = [1, 1]} : vector<8x128xf32> to vector<8x32xf32>
    %546 = vector.extract_strided_slice %544 {offsets = [0, 32], sizes = [8, 32], strides = [1, 1]} : vector<8x128xf32> to vector<8x32xf32>
    %547 = vector.extract_strided_slice %544 {offsets = [0, 96], sizes = [8, 32], strides = [1, 1]} : vector<8x128xf32> to vector<8x32xf32>
    %548 = vector.extract_strided_slice %539 {offsets = [0, 64], sizes = [8, 32], strides = [1, 1]} : vector<8x128xf32> to vector<8x32xf32>
    %549 = math.tanh %548 : vector<8x32xf32>
    %550 = arith.mulf %546, %533 : vector<8x32xf32>
    %551 = arith.mulf %545, %549 : vector<8x32xf32>
    %552 = arith.addf %550, %551 : vector<8x32xf32>
    %553 = math.tanh %552 : vector<8x32xf32>
    %554 = arith.mulf %547, %553 : vector<8x32xf32>
    %c24_207 = arith.constant 24 : index
    %c0_208 = arith.constant 0 : index
    %555 = vector.load %arg10[%c24_207, %c0_208] : memref<192x128xf32, #tpu.memory_space<vmem>>, vector<8x128xf32>
    %c0_209 = arith.constant 0 : index
    %c0_210 = arith.constant 0 : index
    %556 = vector.load %arg5[%c0_209, %c0_210] : memref<32x128xf32, #tpu.memory_space<vmem>>, vector<32x128xf32>
    %cst_211 = arith.constant dense<0.000000e+00> : vector<8x128xf32>
    %557 = tpu.matmul %554, %556, %cst_211 {dimension_numbers = #tpu.dot_dimension_numbers<[1], [0], [0], [1], [0, 0, 1, 1], [], []>} : vector<8x32xf32>, vector<32x128xf32>, vector<8x128xf32> -> vector<8x128xf32>
    %558 = arith.addf %555, %557 : vector<8x128xf32>
    %559 = arith.negf %558 : vector<8x128xf32>
    %560 = math.exp %559 : vector<8x128xf32>
    %cst_212 = arith.constant 1.000000e+00 : f32
    %561 = vector.broadcast %cst_212 : f32 to vector<8x128xf32>
    %562 = arith.addf %561, %560 : vector<8x128xf32>
    %563 = arith.divf %561, %562 : vector<8x128xf32>
    %564 = vector.extract_strided_slice %563 {offsets = [0, 0], sizes = [8, 32], strides = [1, 1]} : vector<8x128xf32> to vector<8x32xf32>
    %565 = vector.extract_strided_slice %563 {offsets = [0, 32], sizes = [8, 32], strides = [1, 1]} : vector<8x128xf32> to vector<8x32xf32>
    %566 = vector.extract_strided_slice %563 {offsets = [0, 96], sizes = [8, 32], strides = [1, 1]} : vector<8x128xf32> to vector<8x32xf32>
    %567 = vector.extract_strided_slice %558 {offsets = [0, 64], sizes = [8, 32], strides = [1, 1]} : vector<8x128xf32> to vector<8x32xf32>
    %568 = math.tanh %567 : vector<8x32xf32>
    %569 = arith.mulf %565, %552 : vector<8x32xf32>
    %570 = arith.mulf %564, %568 : vector<8x32xf32>
    %571 = arith.addf %569, %570 : vector<8x32xf32>
    %572 = math.tanh %571 : vector<8x32xf32>
    %573 = arith.mulf %566, %572 : vector<8x32xf32>
    %c32_213 = arith.constant 32 : index
    %c0_214 = arith.constant 0 : index
    %574 = vector.load %arg10[%c32_213, %c0_214] : memref<192x128xf32, #tpu.memory_space<vmem>>, vector<8x128xf32>
    %c0_215 = arith.constant 0 : index
    %c0_216 = arith.constant 0 : index
    %575 = vector.load %arg5[%c0_215, %c0_216] : memref<32x128xf32, #tpu.memory_space<vmem>>, vector<32x128xf32>
    %cst_217 = arith.constant dense<0.000000e+00> : vector<8x128xf32>
    %576 = tpu.matmul %573, %575, %cst_217 {dimension_numbers = #tpu.dot_dimension_numbers<[1], [0], [0], [1], [0, 0, 1, 1], [], []>} : vector<8x32xf32>, vector<32x128xf32>, vector<8x128xf32> -> vector<8x128xf32>
    %577 = arith.addf %574, %576 : vector<8x128xf32>
    %578 = arith.negf %577 : vector<8x128xf32>
    %579 = math.exp %578 : vector<8x128xf32>
    %cst_218 = arith.constant 1.000000e+00 : f32
    %580 = vector.broadcast %cst_218 : f32 to vector<8x128xf32>
    %581 = arith.addf %580, %579 : vector<8x128xf32>
    %582 = arith.divf %580, %581 : vector<8x128xf32>
    %583 = vector.extract_strided_slice %582 {offsets = [0, 0], sizes = [8, 32], strides = [1, 1]} : vector<8x128xf32> to vector<8x32xf32>
    %584 = vector.extract_strided_slice %582 {offsets = [0, 32], sizes = [8, 32], strides = [1, 1]} : vector<8x128xf32> to vector<8x32xf32>
    %585 = vector.extract_strided_slice %582 {offsets = [0, 96], sizes = [8, 32], strides = [1, 1]} : vector<8x128xf32> to vector<8x32xf32>
    %586 = vector.extract_strided_slice %577 {offsets = [0, 64], sizes = [8, 32], strides = [1, 1]} : vector<8x128xf32> to vector<8x32xf32>
    %587 = math.tanh %586 : vector<8x32xf32>
    %588 = arith.mulf %584, %571 : vector<8x32xf32>
    %589 = arith.mulf %583, %587 : vector<8x32xf32>
    %590 = arith.addf %588, %589 : vector<8x32xf32>
    %591 = math.tanh %590 : vector<8x32xf32>
    %592 = arith.mulf %585, %591 : vector<8x32xf32>
    %c40_219 = arith.constant 40 : index
    %c0_220 = arith.constant 0 : index
    %593 = vector.load %arg10[%c40_219, %c0_220] : memref<192x128xf32, #tpu.memory_space<vmem>>, vector<8x128xf32>
    %c0_221 = arith.constant 0 : index
    %c0_222 = arith.constant 0 : index
    %594 = vector.load %arg5[%c0_221, %c0_222] : memref<32x128xf32, #tpu.memory_space<vmem>>, vector<32x128xf32>
    %cst_223 = arith.constant dense<0.000000e+00> : vector<8x128xf32>
    %595 = tpu.matmul %592, %594, %cst_223 {dimension_numbers = #tpu.dot_dimension_numbers<[1], [0], [0], [1], [0, 0, 1, 1], [], []>} : vector<8x32xf32>, vector<32x128xf32>, vector<8x128xf32> -> vector<8x128xf32>
    %596 = arith.addf %593, %595 : vector<8x128xf32>
    %597 = arith.negf %596 : vector<8x128xf32>
    %598 = math.exp %597 : vector<8x128xf32>
    %cst_224 = arith.constant 1.000000e+00 : f32
    %599 = vector.broadcast %cst_224 : f32 to vector<8x128xf32>
    %600 = arith.addf %599, %598 : vector<8x128xf32>
    %601 = arith.divf %599, %600 : vector<8x128xf32>
    %602 = vector.extract_strided_slice %601 {offsets = [0, 0], sizes = [8, 32], strides = [1, 1]} : vector<8x128xf32> to vector<8x32xf32>
    %603 = vector.extract_strided_slice %601 {offsets = [0, 32], sizes = [8, 32], strides = [1, 1]} : vector<8x128xf32> to vector<8x32xf32>
    %604 = vector.extract_strided_slice %601 {offsets = [0, 96], sizes = [8, 32], strides = [1, 1]} : vector<8x128xf32> to vector<8x32xf32>
    %605 = vector.extract_strided_slice %596 {offsets = [0, 64], sizes = [8, 32], strides = [1, 1]} : vector<8x128xf32> to vector<8x32xf32>
    %606 = math.tanh %605 : vector<8x32xf32>
    %607 = arith.mulf %603, %590 : vector<8x32xf32>
    %608 = arith.mulf %602, %606 : vector<8x32xf32>
    %609 = arith.addf %607, %608 : vector<8x32xf32>
    %610 = math.tanh %609 : vector<8x32xf32>
    %611 = arith.mulf %604, %610 : vector<8x32xf32>
    %c48_225 = arith.constant 48 : index
    %c0_226 = arith.constant 0 : index
    %612 = vector.load %arg10[%c48_225, %c0_226] : memref<192x128xf32, #tpu.memory_space<vmem>>, vector<8x128xf32>
    %c0_227 = arith.constant 0 : index
    %c0_228 = arith.constant 0 : index
    %613 = vector.load %arg5[%c0_227, %c0_228] : memref<32x128xf32, #tpu.memory_space<vmem>>, vector<32x128xf32>
    %cst_229 = arith.constant dense<0.000000e+00> : vector<8x128xf32>
    %614 = tpu.matmul %611, %613, %cst_229 {dimension_numbers = #tpu.dot_dimension_numbers<[1], [0], [0], [1], [0, 0, 1, 1], [], []>} : vector<8x32xf32>, vector<32x128xf32>, vector<8x128xf32> -> vector<8x128xf32>
    %615 = arith.addf %612, %614 : vector<8x128xf32>
    %616 = arith.negf %615 : vector<8x128xf32>
    %617 = math.exp %616 : vector<8x128xf32>
    %cst_230 = arith.constant 1.000000e+00 : f32
    %618 = vector.broadcast %cst_230 : f32 to vector<8x128xf32>
    %619 = arith.addf %618, %617 : vector<8x128xf32>
    %620 = arith.divf %618, %619 : vector<8x128xf32>
    %621 = vector.extract_strided_slice %620 {offsets = [0, 0], sizes = [8, 32], strides = [1, 1]} : vector<8x128xf32> to vector<8x32xf32>
    %622 = vector.extract_strided_slice %620 {offsets = [0, 32], sizes = [8, 32], strides = [1, 1]} : vector<8x128xf32> to vector<8x32xf32>
    %623 = vector.extract_strided_slice %620 {offsets = [0, 96], sizes = [8, 32], strides = [1, 1]} : vector<8x128xf32> to vector<8x32xf32>
    %624 = vector.extract_strided_slice %615 {offsets = [0, 64], sizes = [8, 32], strides = [1, 1]} : vector<8x128xf32> to vector<8x32xf32>
    %625 = math.tanh %624 : vector<8x32xf32>
    %626 = arith.mulf %622, %609 : vector<8x32xf32>
    %627 = arith.mulf %621, %625 : vector<8x32xf32>
    %628 = arith.addf %626, %627 : vector<8x32xf32>
    %629 = math.tanh %628 : vector<8x32xf32>
    %630 = arith.mulf %623, %629 : vector<8x32xf32>
    %c56_231 = arith.constant 56 : index
    %c0_232 = arith.constant 0 : index
    %631 = vector.load %arg10[%c56_231, %c0_232] : memref<192x128xf32, #tpu.memory_space<vmem>>, vector<8x128xf32>
    %c0_233 = arith.constant 0 : index
    %c0_234 = arith.constant 0 : index
    %632 = vector.load %arg5[%c0_233, %c0_234] : memref<32x128xf32, #tpu.memory_space<vmem>>, vector<32x128xf32>
    %cst_235 = arith.constant dense<0.000000e+00> : vector<8x128xf32>
    %633 = tpu.matmul %630, %632, %cst_235 {dimension_numbers = #tpu.dot_dimension_numbers<[1], [0], [0], [1], [0, 0, 1, 1], [], []>} : vector<8x32xf32>, vector<32x128xf32>, vector<8x128xf32> -> vector<8x128xf32>
    %634 = arith.addf %631, %633 : vector<8x128xf32>
    %635 = arith.negf %634 : vector<8x128xf32>
    %636 = math.exp %635 : vector<8x128xf32>
    %cst_236 = arith.constant 1.000000e+00 : f32
    %637 = vector.broadcast %cst_236 : f32 to vector<8x128xf32>
    %638 = arith.addf %637, %636 : vector<8x128xf32>
    %639 = arith.divf %637, %638 : vector<8x128xf32>
    %640 = vector.extract_strided_slice %639 {offsets = [0, 0], sizes = [8, 32], strides = [1, 1]} : vector<8x128xf32> to vector<8x32xf32>
    %641 = vector.extract_strided_slice %639 {offsets = [0, 32], sizes = [8, 32], strides = [1, 1]} : vector<8x128xf32> to vector<8x32xf32>
    %642 = vector.extract_strided_slice %639 {offsets = [0, 96], sizes = [8, 32], strides = [1, 1]} : vector<8x128xf32> to vector<8x32xf32>
    %643 = vector.extract_strided_slice %634 {offsets = [0, 64], sizes = [8, 32], strides = [1, 1]} : vector<8x128xf32> to vector<8x32xf32>
    %644 = math.tanh %643 : vector<8x32xf32>
    %645 = arith.mulf %641, %628 : vector<8x32xf32>
    %646 = arith.mulf %640, %644 : vector<8x32xf32>
    %647 = arith.addf %645, %646 : vector<8x32xf32>
    %648 = math.tanh %647 : vector<8x32xf32>
    %649 = arith.mulf %642, %648 : vector<8x32xf32>
    %c64_237 = arith.constant 64 : index
    %c0_238 = arith.constant 0 : index
    %650 = vector.load %arg10[%c64_237, %c0_238] : memref<192x128xf32, #tpu.memory_space<vmem>>, vector<8x128xf32>
    %c0_239 = arith.constant 0 : index
    %c0_240 = arith.constant 0 : index
    %651 = vector.load %arg5[%c0_239, %c0_240] : memref<32x128xf32, #tpu.memory_space<vmem>>, vector<32x128xf32>
    %cst_241 = arith.constant dense<0.000000e+00> : vector<8x128xf32>
    %652 = tpu.matmul %649, %651, %cst_241 {dimension_numbers = #tpu.dot_dimension_numbers<[1], [0], [0], [1], [0, 0, 1, 1], [], []>} : vector<8x32xf32>, vector<32x128xf32>, vector<8x128xf32> -> vector<8x128xf32>
    %653 = arith.addf %650, %652 : vector<8x128xf32>
    %654 = arith.negf %653 : vector<8x128xf32>
    %655 = math.exp %654 : vector<8x128xf32>
    %cst_242 = arith.constant 1.000000e+00 : f32
    %656 = vector.broadcast %cst_242 : f32 to vector<8x128xf32>
    %657 = arith.addf %656, %655 : vector<8x128xf32>
    %658 = arith.divf %656, %657 : vector<8x128xf32>
    %659 = vector.extract_strided_slice %658 {offsets = [0, 0], sizes = [8, 32], strides = [1, 1]} : vector<8x128xf32> to vector<8x32xf32>
    %660 = vector.extract_strided_slice %658 {offsets = [0, 32], sizes = [8, 32], strides = [1, 1]} : vector<8x128xf32> to vector<8x32xf32>
    %661 = vector.extract_strided_slice %658 {offsets = [0, 96], sizes = [8, 32], strides = [1, 1]} : vector<8x128xf32> to vector<8x32xf32>
    %662 = vector.extract_strided_slice %653 {offsets = [0, 64], sizes = [8, 32], strides = [1, 1]} : vector<8x128xf32> to vector<8x32xf32>
    %663 = math.tanh %662 : vector<8x32xf32>
    %664 = arith.mulf %660, %647 : vector<8x32xf32>
    %665 = arith.mulf %659, %663 : vector<8x32xf32>
    %666 = arith.addf %664, %665 : vector<8x32xf32>
    %667 = math.tanh %666 : vector<8x32xf32>
    %668 = arith.mulf %661, %667 : vector<8x32xf32>
    %c72_243 = arith.constant 72 : index
    %c0_244 = arith.constant 0 : index
    %669 = vector.load %arg10[%c72_243, %c0_244] : memref<192x128xf32, #tpu.memory_space<vmem>>, vector<8x128xf32>
    %c0_245 = arith.constant 0 : index
    %c0_246 = arith.constant 0 : index
    %670 = vector.load %arg5[%c0_245, %c0_246] : memref<32x128xf32, #tpu.memory_space<vmem>>, vector<32x128xf32>
    %cst_247 = arith.constant dense<0.000000e+00> : vector<8x128xf32>
    %671 = tpu.matmul %668, %670, %cst_247 {dimension_numbers = #tpu.dot_dimension_numbers<[1], [0], [0], [1], [0, 0, 1, 1], [], []>} : vector<8x32xf32>, vector<32x128xf32>, vector<8x128xf32> -> vector<8x128xf32>
    %672 = arith.addf %669, %671 : vector<8x128xf32>
    %673 = arith.negf %672 : vector<8x128xf32>
    %674 = math.exp %673 : vector<8x128xf32>
    %cst_248 = arith.constant 1.000000e+00 : f32
    %675 = vector.broadcast %cst_248 : f32 to vector<8x128xf32>
    %676 = arith.addf %675, %674 : vector<8x128xf32>
    %677 = arith.divf %675, %676 : vector<8x128xf32>
    %678 = vector.extract_strided_slice %677 {offsets = [0, 0], sizes = [8, 32], strides = [1, 1]} : vector<8x128xf32> to vector<8x32xf32>
    %679 = vector.extract_strided_slice %677 {offsets = [0, 32], sizes = [8, 32], strides = [1, 1]} : vector<8x128xf32> to vector<8x32xf32>
    %680 = vector.extract_strided_slice %677 {offsets = [0, 96], sizes = [8, 32], strides = [1, 1]} : vector<8x128xf32> to vector<8x32xf32>
    %681 = vector.extract_strided_slice %672 {offsets = [0, 64], sizes = [8, 32], strides = [1, 1]} : vector<8x128xf32> to vector<8x32xf32>
    %682 = math.tanh %681 : vector<8x32xf32>
    %683 = arith.mulf %679, %666 : vector<8x32xf32>
    %684 = arith.mulf %678, %682 : vector<8x32xf32>
    %685 = arith.addf %683, %684 : vector<8x32xf32>
    %686 = math.tanh %685 : vector<8x32xf32>
    %687 = arith.mulf %680, %686 : vector<8x32xf32>
    %c80_249 = arith.constant 80 : index
    %c0_250 = arith.constant 0 : index
    %688 = vector.load %arg10[%c80_249, %c0_250] : memref<192x128xf32, #tpu.memory_space<vmem>>, vector<8x128xf32>
    %c0_251 = arith.constant 0 : index
    %c0_252 = arith.constant 0 : index
    %689 = vector.load %arg5[%c0_251, %c0_252] : memref<32x128xf32, #tpu.memory_space<vmem>>, vector<32x128xf32>
    %cst_253 = arith.constant dense<0.000000e+00> : vector<8x128xf32>
    %690 = tpu.matmul %687, %689, %cst_253 {dimension_numbers = #tpu.dot_dimension_numbers<[1], [0], [0], [1], [0, 0, 1, 1], [], []>} : vector<8x32xf32>, vector<32x128xf32>, vector<8x128xf32> -> vector<8x128xf32>
    %691 = arith.addf %688, %690 : vector<8x128xf32>
    %692 = arith.negf %691 : vector<8x128xf32>
    %693 = math.exp %692 : vector<8x128xf32>
    %cst_254 = arith.constant 1.000000e+00 : f32
    %694 = vector.broadcast %cst_254 : f32 to vector<8x128xf32>
    %695 = arith.addf %694, %693 : vector<8x128xf32>
    %696 = arith.divf %694, %695 : vector<8x128xf32>
    %697 = vector.extract_strided_slice %696 {offsets = [0, 0], sizes = [8, 32], strides = [1, 1]} : vector<8x128xf32> to vector<8x32xf32>
    %698 = vector.extract_strided_slice %696 {offsets = [0, 32], sizes = [8, 32], strides = [1, 1]} : vector<8x128xf32> to vector<8x32xf32>
    %699 = vector.extract_strided_slice %696 {offsets = [0, 96], sizes = [8, 32], strides = [1, 1]} : vector<8x128xf32> to vector<8x32xf32>
    %700 = vector.extract_strided_slice %691 {offsets = [0, 64], sizes = [8, 32], strides = [1, 1]} : vector<8x128xf32> to vector<8x32xf32>
    %701 = math.tanh %700 : vector<8x32xf32>
    %702 = arith.mulf %698, %685 : vector<8x32xf32>
    %703 = arith.mulf %697, %701 : vector<8x32xf32>
    %704 = arith.addf %702, %703 : vector<8x32xf32>
    %705 = math.tanh %704 : vector<8x32xf32>
    %706 = arith.mulf %699, %705 : vector<8x32xf32>
    %c88_255 = arith.constant 88 : index
    %c0_256 = arith.constant 0 : index
    %707 = vector.load %arg10[%c88_255, %c0_256] : memref<192x128xf32, #tpu.memory_space<vmem>>, vector<8x128xf32>
    %c0_257 = arith.constant 0 : index
    %c0_258 = arith.constant 0 : index
    %708 = vector.load %arg5[%c0_257, %c0_258] : memref<32x128xf32, #tpu.memory_space<vmem>>, vector<32x128xf32>
    %cst_259 = arith.constant dense<0.000000e+00> : vector<8x128xf32>
    %709 = tpu.matmul %706, %708, %cst_259 {dimension_numbers = #tpu.dot_dimension_numbers<[1], [0], [0], [1], [0, 0, 1, 1], [], []>} : vector<8x32xf32>, vector<32x128xf32>, vector<8x128xf32> -> vector<8x128xf32>
    %710 = arith.addf %707, %709 : vector<8x128xf32>
    %711 = arith.negf %710 : vector<8x128xf32>
    %712 = math.exp %711 : vector<8x128xf32>
    %cst_260 = arith.constant 1.000000e+00 : f32
    %713 = vector.broadcast %cst_260 : f32 to vector<8x128xf32>
    %714 = arith.addf %713, %712 : vector<8x128xf32>
    %715 = arith.divf %713, %714 : vector<8x128xf32>
    %716 = vector.extract_strided_slice %715 {offsets = [0, 0], sizes = [8, 32], strides = [1, 1]} : vector<8x128xf32> to vector<8x32xf32>
    %717 = vector.extract_strided_slice %715 {offsets = [0, 32], sizes = [8, 32], strides = [1, 1]} : vector<8x128xf32> to vector<8x32xf32>
    %718 = vector.extract_strided_slice %715 {offsets = [0, 96], sizes = [8, 32], strides = [1, 1]} : vector<8x128xf32> to vector<8x32xf32>
    %719 = vector.extract_strided_slice %710 {offsets = [0, 64], sizes = [8, 32], strides = [1, 1]} : vector<8x128xf32> to vector<8x32xf32>
    %720 = math.tanh %719 : vector<8x32xf32>
    %721 = arith.mulf %717, %704 : vector<8x32xf32>
    %722 = arith.mulf %716, %720 : vector<8x32xf32>
    %723 = arith.addf %721, %722 : vector<8x32xf32>
    %724 = math.tanh %723 : vector<8x32xf32>
    %725 = arith.mulf %718, %724 : vector<8x32xf32>
    %c96_261 = arith.constant 96 : index
    %c0_262 = arith.constant 0 : index
    %726 = vector.load %arg10[%c96_261, %c0_262] : memref<192x128xf32, #tpu.memory_space<vmem>>, vector<8x128xf32>
    %c0_263 = arith.constant 0 : index
    %c0_264 = arith.constant 0 : index
    %727 = vector.load %arg5[%c0_263, %c0_264] : memref<32x128xf32, #tpu.memory_space<vmem>>, vector<32x128xf32>
    %cst_265 = arith.constant dense<0.000000e+00> : vector<8x128xf32>
    %728 = tpu.matmul %725, %727, %cst_265 {dimension_numbers = #tpu.dot_dimension_numbers<[1], [0], [0], [1], [0, 0, 1, 1], [], []>} : vector<8x32xf32>, vector<32x128xf32>, vector<8x128xf32> -> vector<8x128xf32>
    %729 = arith.addf %726, %728 : vector<8x128xf32>
    %730 = arith.negf %729 : vector<8x128xf32>
    %731 = math.exp %730 : vector<8x128xf32>
    %cst_266 = arith.constant 1.000000e+00 : f32
    %732 = vector.broadcast %cst_266 : f32 to vector<8x128xf32>
    %733 = arith.addf %732, %731 : vector<8x128xf32>
    %734 = arith.divf %732, %733 : vector<8x128xf32>
    %735 = vector.extract_strided_slice %734 {offsets = [0, 0], sizes = [8, 32], strides = [1, 1]} : vector<8x128xf32> to vector<8x32xf32>
    %736 = vector.extract_strided_slice %734 {offsets = [0, 32], sizes = [8, 32], strides = [1, 1]} : vector<8x128xf32> to vector<8x32xf32>
    %737 = vector.extract_strided_slice %734 {offsets = [0, 96], sizes = [8, 32], strides = [1, 1]} : vector<8x128xf32> to vector<8x32xf32>
    %738 = vector.extract_strided_slice %729 {offsets = [0, 64], sizes = [8, 32], strides = [1, 1]} : vector<8x128xf32> to vector<8x32xf32>
    %739 = math.tanh %738 : vector<8x32xf32>
    %740 = arith.mulf %736, %723 : vector<8x32xf32>
    %741 = arith.mulf %735, %739 : vector<8x32xf32>
    %742 = arith.addf %740, %741 : vector<8x32xf32>
    %743 = math.tanh %742 : vector<8x32xf32>
    %744 = arith.mulf %737, %743 : vector<8x32xf32>
    %c0_267 = arith.constant 0 : index
    %c0_268 = arith.constant 0 : index
    %745 = vector.load %arg11[%c0_267, %c0_268] : memref<192x32xf32, #tpu.memory_space<vmem>>, vector<8x32xf32>
    tpu.vector_store %arg11[%c0_267, %c0_268], %744 {strides = array<i32>} : memref<192x32xf32, #tpu.memory_space<vmem>>, vector<8x32xf32>,
    %c104_269 = arith.constant 104 : index
    %c0_270 = arith.constant 0 : index
    %746 = vector.load %arg10[%c104_269, %c0_270] : memref<192x128xf32, #tpu.memory_space<vmem>>, vector<8x128xf32>
    %c0_271 = arith.constant 0 : index
    %c0_272 = arith.constant 0 : index
    %747 = vector.load %arg5[%c0_271, %c0_272] : memref<32x128xf32, #tpu.memory_space<vmem>>, vector<32x128xf32>
    %cst_273 = arith.constant dense<0.000000e+00> : vector<8x128xf32>
    %748 = tpu.matmul %744, %747, %cst_273 {dimension_numbers = #tpu.dot_dimension_numbers<[1], [0], [0], [1], [0, 0, 1, 1], [], []>} : vector<8x32xf32>, vector<32x128xf32>, vector<8x128xf32> -> vector<8x128xf32>
    %749 = arith.addf %746, %748 : vector<8x128xf32>
    %750 = arith.negf %749 : vector<8x128xf32>
    %751 = math.exp %750 : vector<8x128xf32>
    %cst_274 = arith.constant 1.000000e+00 : f32
    %752 = vector.broadcast %cst_274 : f32 to vector<8x128xf32>
    %753 = arith.addf %752, %751 : vector<8x128xf32>
    %754 = arith.divf %752, %753 : vector<8x128xf32>
    %755 = vector.extract_strided_slice %754 {offsets = [0, 0], sizes = [8, 32], strides = [1, 1]} : vector<8x128xf32> to vector<8x32xf32>
    %756 = vector.extract_strided_slice %754 {offsets = [0, 32], sizes = [8, 32], strides = [1, 1]} : vector<8x128xf32> to vector<8x32xf32>
    %757 = vector.extract_strided_slice %754 {offsets = [0, 96], sizes = [8, 32], strides = [1, 1]} : vector<8x128xf32> to vector<8x32xf32>
    %758 = vector.extract_strided_slice %749 {offsets = [0, 64], sizes = [8, 32], strides = [1, 1]} : vector<8x128xf32> to vector<8x32xf32>
    %759 = math.tanh %758 : vector<8x32xf32>
    %760 = arith.mulf %756, %742 : vector<8x32xf32>
    %761 = arith.mulf %755, %759 : vector<8x32xf32>
    %762 = arith.addf %760, %761 : vector<8x32xf32>
    %763 = math.tanh %762 : vector<8x32xf32>
    %764 = arith.mulf %757, %763 : vector<8x32xf32>
    %c8_275 = arith.constant 8 : index
    %c0_276 = arith.constant 0 : index
    %765 = vector.load %arg11[%c8_275, %c0_276] : memref<192x32xf32, #tpu.memory_space<vmem>>, vector<8x32xf32>
    tpu.vector_store %arg11[%c8_275, %c0_276], %764 {strides = array<i32>} : memref<192x32xf32, #tpu.memory_space<vmem>>, vector<8x32xf32>,
    %c112_277 = arith.constant 112 : index
    %c0_278 = arith.constant 0 : index
    %766 = vector.load %arg10[%c112_277, %c0_278] : memref<192x128xf32, #tpu.memory_space<vmem>>, vector<8x128xf32>
    %c0_279 = arith.constant 0 : index
    %c0_280 = arith.constant 0 : index
    %767 = vector.load %arg5[%c0_279, %c0_280] : memref<32x128xf32, #tpu.memory_space<vmem>>, vector<32x128xf32>
    %cst_281 = arith.constant dense<0.000000e+00> : vector<8x128xf32>
    %768 = tpu.matmul %764, %767, %cst_281 {dimension_numbers = #tpu.dot_dimension_numbers<[1], [0], [0], [1], [0, 0, 1, 1], [], []>} : vector<8x32xf32>, vector<32x128xf32>, vector<8x128xf32> -> vector<8x128xf32>
    %769 = arith.addf %766, %768 : vector<8x128xf32>
    %770 = arith.negf %769 : vector<8x128xf32>
    %771 = math.exp %770 : vector<8x128xf32>
    %cst_282 = arith.constant 1.000000e+00 : f32
    %772 = vector.broadcast %cst_282 : f32 to vector<8x128xf32>
    %773 = arith.addf %772, %771 : vector<8x128xf32>
    %774 = arith.divf %772, %773 : vector<8x128xf32>
    %775 = vector.extract_strided_slice %774 {offsets = [0, 0], sizes = [8, 32], strides = [1, 1]} : vector<8x128xf32> to vector<8x32xf32>
    %776 = vector.extract_strided_slice %774 {offsets = [0, 32], sizes = [8, 32], strides = [1, 1]} : vector<8x128xf32> to vector<8x32xf32>
    %777 = vector.extract_strided_slice %774 {offsets = [0, 96], sizes = [8, 32], strides = [1, 1]} : vector<8x128xf32> to vector<8x32xf32>
    %778 = vector.extract_strided_slice %769 {offsets = [0, 64], sizes = [8, 32], strides = [1, 1]} : vector<8x128xf32> to vector<8x32xf32>
    %779 = math.tanh %778 : vector<8x32xf32>
    %780 = arith.mulf %776, %762 : vector<8x32xf32>
    %781 = arith.mulf %775, %779 : vector<8x32xf32>
    %782 = arith.addf %780, %781 : vector<8x32xf32>
    %783 = math.tanh %782 : vector<8x32xf32>
    %784 = arith.mulf %777, %783 : vector<8x32xf32>
    %c16_283 = arith.constant 16 : index
    %c0_284 = arith.constant 0 : index
    %785 = vector.load %arg11[%c16_283, %c0_284] : memref<192x32xf32, #tpu.memory_space<vmem>>, vector<8x32xf32>
    tpu.vector_store %arg11[%c16_283, %c0_284], %784 {strides = array<i32>} : memref<192x32xf32, #tpu.memory_space<vmem>>, vector<8x32xf32>,
    %c120_285 = arith.constant 120 : index
    %c0_286 = arith.constant 0 : index
    %786 = vector.load %arg10[%c120_285, %c0_286] : memref<192x128xf32, #tpu.memory_space<vmem>>, vector<8x128xf32>
    %c0_287 = arith.constant 0 : index
    %c0_288 = arith.constant 0 : index
    %787 = vector.load %arg5[%c0_287, %c0_288] : memref<32x128xf32, #tpu.memory_space<vmem>>, vector<32x128xf32>
    %cst_289 = arith.constant dense<0.000000e+00> : vector<8x128xf32>
    %788 = tpu.matmul %784, %787, %cst_289 {dimension_numbers = #tpu.dot_dimension_numbers<[1], [0], [0], [1], [0, 0, 1, 1], [], []>} : vector<8x32xf32>, vector<32x128xf32>, vector<8x128xf32> -> vector<8x128xf32>
    %789 = arith.addf %786, %788 : vector<8x128xf32>
    %790 = arith.negf %789 : vector<8x128xf32>
    %791 = math.exp %790 : vector<8x128xf32>
    %cst_290 = arith.constant 1.000000e+00 : f32
    %792 = vector.broadcast %cst_290 : f32 to vector<8x128xf32>
    %793 = arith.addf %792, %791 : vector<8x128xf32>
    %794 = arith.divf %792, %793 : vector<8x128xf32>
    %795 = vector.extract_strided_slice %794 {offsets = [0, 0], sizes = [8, 32], strides = [1, 1]} : vector<8x128xf32> to vector<8x32xf32>
    %796 = vector.extract_strided_slice %794 {offsets = [0, 32], sizes = [8, 32], strides = [1, 1]} : vector<8x128xf32> to vector<8x32xf32>
    %797 = vector.extract_strided_slice %794 {offsets = [0, 96], sizes = [8, 32], strides = [1, 1]} : vector<8x128xf32> to vector<8x32xf32>
    %798 = vector.extract_strided_slice %789 {offsets = [0, 64], sizes = [8, 32], strides = [1, 1]} : vector<8x128xf32> to vector<8x32xf32>
    %799 = math.tanh %798 : vector<8x32xf32>
    %800 = arith.mulf %796, %782 : vector<8x32xf32>
    %801 = arith.mulf %795, %799 : vector<8x32xf32>
    %802 = arith.addf %800, %801 : vector<8x32xf32>
    %803 = math.tanh %802 : vector<8x32xf32>
    %804 = arith.mulf %797, %803 : vector<8x32xf32>
    %c24_291 = arith.constant 24 : index
    %c0_292 = arith.constant 0 : index
    %805 = vector.load %arg11[%c24_291, %c0_292] : memref<192x32xf32, #tpu.memory_space<vmem>>, vector<8x32xf32>
    tpu.vector_store %arg11[%c24_291, %c0_292], %804 {strides = array<i32>} : memref<192x32xf32, #tpu.memory_space<vmem>>, vector<8x32xf32>,
    %c128_293 = arith.constant 128 : index
    %c0_294 = arith.constant 0 : index
    %806 = vector.load %arg10[%c128_293, %c0_294] : memref<192x128xf32, #tpu.memory_space<vmem>>, vector<8x128xf32>
    %c0_295 = arith.constant 0 : index
    %c0_296 = arith.constant 0 : index
    %807 = vector.load %arg5[%c0_295, %c0_296] : memref<32x128xf32, #tpu.memory_space<vmem>>, vector<32x128xf32>
    %cst_297 = arith.constant dense<0.000000e+00> : vector<8x128xf32>
    %808 = tpu.matmul %804, %807, %cst_297 {dimension_numbers = #tpu.dot_dimension_numbers<[1], [0], [0], [1], [0, 0, 1, 1], [], []>} : vector<8x32xf32>, vector<32x128xf32>, vector<8x128xf32> -> vector<8x128xf32>
    %809 = arith.addf %806, %808 : vector<8x128xf32>
    %810 = arith.negf %809 : vector<8x128xf32>
    %811 = math.exp %810 : vector<8x128xf32>
    %cst_298 = arith.constant 1.000000e+00 : f32
    %812 = vector.broadcast %cst_298 : f32 to vector<8x128xf32>
    %813 = arith.addf %812, %811 : vector<8x128xf32>
    %814 = arith.divf %812, %813 : vector<8x128xf32>
    %815 = vector.extract_strided_slice %814 {offsets = [0, 0], sizes = [8, 32], strides = [1, 1]} : vector<8x128xf32> to vector<8x32xf32>
    %816 = vector.extract_strided_slice %814 {offsets = [0, 32], sizes = [8, 32], strides = [1, 1]} : vector<8x128xf32> to vector<8x32xf32>
    %817 = vector.extract_strided_slice %814 {offsets = [0, 96], sizes = [8, 32], strides = [1, 1]} : vector<8x128xf32> to vector<8x32xf32>
    %818 = vector.extract_strided_slice %809 {offsets = [0, 64], sizes = [8, 32], strides = [1, 1]} : vector<8x128xf32> to vector<8x32xf32>
    %819 = math.tanh %818 : vector<8x32xf32>
    %820 = arith.mulf %816, %802 : vector<8x32xf32>
    %821 = arith.mulf %815, %819 : vector<8x32xf32>
    %822 = arith.addf %820, %821 : vector<8x32xf32>
    %823 = math.tanh %822 : vector<8x32xf32>
    %824 = arith.mulf %817, %823 : vector<8x32xf32>
    %c32_299 = arith.constant 32 : index
    %c0_300 = arith.constant 0 : index
    %825 = vector.load %arg11[%c32_299, %c0_300] : memref<192x32xf32, #tpu.memory_space<vmem>>, vector<8x32xf32>
    tpu.vector_store %arg11[%c32_299, %c0_300], %824 {strides = array<i32>} : memref<192x32xf32, #tpu.memory_space<vmem>>, vector<8x32xf32>,
    %c136_301 = arith.constant 136 : index
    %c0_302 = arith.constant 0 : index
    %826 = vector.load %arg10[%c136_301, %c0_302] : memref<192x128xf32, #tpu.memory_space<vmem>>, vector<8x128xf32>
    %c0_303 = arith.constant 0 : index
    %c0_304 = arith.constant 0 : index
    %827 = vector.load %arg5[%c0_303, %c0_304] : memref<32x128xf32, #tpu.memory_space<vmem>>, vector<32x128xf32>
    %cst_305 = arith.constant dense<0.000000e+00> : vector<8x128xf32>
    %828 = tpu.matmul %824, %827, %cst_305 {dimension_numbers = #tpu.dot_dimension_numbers<[1], [0], [0], [1], [0, 0, 1, 1], [], []>} : vector<8x32xf32>, vector<32x128xf32>, vector<8x128xf32> -> vector<8x128xf32>
    %829 = arith.addf %826, %828 : vector<8x128xf32>
    %830 = arith.negf %829 : vector<8x128xf32>
    %831 = math.exp %830 : vector<8x128xf32>
    %cst_306 = arith.constant 1.000000e+00 : f32
    %832 = vector.broadcast %cst_306 : f32 to vector<8x128xf32>
    %833 = arith.addf %832, %831 : vector<8x128xf32>
    %834 = arith.divf %832, %833 : vector<8x128xf32>
    %835 = vector.extract_strided_slice %834 {offsets = [0, 0], sizes = [8, 32], strides = [1, 1]} : vector<8x128xf32> to vector<8x32xf32>
    %836 = vector.extract_strided_slice %834 {offsets = [0, 32], sizes = [8, 32], strides = [1, 1]} : vector<8x128xf32> to vector<8x32xf32>
    %837 = vector.extract_strided_slice %834 {offsets = [0, 96], sizes = [8, 32], strides = [1, 1]} : vector<8x128xf32> to vector<8x32xf32>
    %838 = vector.extract_strided_slice %829 {offsets = [0, 64], sizes = [8, 32], strides = [1, 1]} : vector<8x128xf32> to vector<8x32xf32>
    %839 = math.tanh %838 : vector<8x32xf32>
    %840 = arith.mulf %836, %822 : vector<8x32xf32>
    %841 = arith.mulf %835, %839 : vector<8x32xf32>
    %842 = arith.addf %840, %841 : vector<8x32xf32>
    %843 = math.tanh %842 : vector<8x32xf32>
    %844 = arith.mulf %837, %843 : vector<8x32xf32>
    %c40_307 = arith.constant 40 : index
    %c0_308 = arith.constant 0 : index
    %845 = vector.load %arg11[%c40_307, %c0_308] : memref<192x32xf32, #tpu.memory_space<vmem>>, vector<8x32xf32>
    tpu.vector_store %arg11[%c40_307, %c0_308], %844 {strides = array<i32>} : memref<192x32xf32, #tpu.memory_space<vmem>>, vector<8x32xf32>,
    %c144_309 = arith.constant 144 : index
    %c0_310 = arith.constant 0 : index
    %846 = vector.load %arg10[%c144_309, %c0_310] : memref<192x128xf32, #tpu.memory_space<vmem>>, vector<8x128xf32>
    %c0_311 = arith.constant 0 : index
    %c0_312 = arith.constant 0 : index
    %847 = vector.load %arg5[%c0_311, %c0_312] : memref<32x128xf32, #tpu.memory_space<vmem>>, vector<32x128xf32>
    %cst_313 = arith.constant dense<0.000000e+00> : vector<8x128xf32>
    %848 = tpu.matmul %844, %847, %cst_313 {dimension_numbers = #tpu.dot_dimension_numbers<[1], [0], [0], [1], [0, 0, 1, 1], [], []>} : vector<8x32xf32>, vector<32x128xf32>, vector<8x128xf32> -> vector<8x128xf32>
    %849 = arith.addf %846, %848 : vector<8x128xf32>
    %850 = arith.negf %849 : vector<8x128xf32>
    %851 = math.exp %850 : vector<8x128xf32>
    %cst_314 = arith.constant 1.000000e+00 : f32
    %852 = vector.broadcast %cst_314 : f32 to vector<8x128xf32>
    %853 = arith.addf %852, %851 : vector<8x128xf32>
    %854 = arith.divf %852, %853 : vector<8x128xf32>
    %855 = vector.extract_strided_slice %854 {offsets = [0, 0], sizes = [8, 32], strides = [1, 1]} : vector<8x128xf32> to vector<8x32xf32>
    %856 = vector.extract_strided_slice %854 {offsets = [0, 32], sizes = [8, 32], strides = [1, 1]} : vector<8x128xf32> to vector<8x32xf32>
    %857 = vector.extract_strided_slice %854 {offsets = [0, 96], sizes = [8, 32], strides = [1, 1]} : vector<8x128xf32> to vector<8x32xf32>
    %858 = vector.extract_strided_slice %849 {offsets = [0, 64], sizes = [8, 32], strides = [1, 1]} : vector<8x128xf32> to vector<8x32xf32>
    %859 = math.tanh %858 : vector<8x32xf32>
    %860 = arith.mulf %856, %842 : vector<8x32xf32>
    %861 = arith.mulf %855, %859 : vector<8x32xf32>
    %862 = arith.addf %860, %861 : vector<8x32xf32>
    %863 = math.tanh %862 : vector<8x32xf32>
    %864 = arith.mulf %857, %863 : vector<8x32xf32>
    %c48_315 = arith.constant 48 : index
    %c0_316 = arith.constant 0 : index
    %865 = vector.load %arg11[%c48_315, %c0_316] : memref<192x32xf32, #tpu.memory_space<vmem>>, vector<8x32xf32>
    tpu.vector_store %arg11[%c48_315, %c0_316], %864 {strides = array<i32>} : memref<192x32xf32, #tpu.memory_space<vmem>>, vector<8x32xf32>,
    %c152_317 = arith.constant 152 : index
    %c0_318 = arith.constant 0 : index
    %866 = vector.load %arg10[%c152_317, %c0_318] : memref<192x128xf32, #tpu.memory_space<vmem>>, vector<8x128xf32>
    %c0_319 = arith.constant 0 : index
    %c0_320 = arith.constant 0 : index
    %867 = vector.load %arg5[%c0_319, %c0_320] : memref<32x128xf32, #tpu.memory_space<vmem>>, vector<32x128xf32>
    %cst_321 = arith.constant dense<0.000000e+00> : vector<8x128xf32>
    %868 = tpu.matmul %864, %867, %cst_321 {dimension_numbers = #tpu.dot_dimension_numbers<[1], [0], [0], [1], [0, 0, 1, 1], [], []>} : vector<8x32xf32>, vector<32x128xf32>, vector<8x128xf32> -> vector<8x128xf32>
    %869 = arith.addf %866, %868 : vector<8x128xf32>
    %870 = arith.negf %869 : vector<8x128xf32>
    %871 = math.exp %870 : vector<8x128xf32>
    %cst_322 = arith.constant 1.000000e+00 : f32
    %872 = vector.broadcast %cst_322 : f32 to vector<8x128xf32>
    %873 = arith.addf %872, %871 : vector<8x128xf32>
    %874 = arith.divf %872, %873 : vector<8x128xf32>
    %875 = vector.extract_strided_slice %874 {offsets = [0, 0], sizes = [8, 32], strides = [1, 1]} : vector<8x128xf32> to vector<8x32xf32>
    %876 = vector.extract_strided_slice %874 {offsets = [0, 32], sizes = [8, 32], strides = [1, 1]} : vector<8x128xf32> to vector<8x32xf32>
    %877 = vector.extract_strided_slice %874 {offsets = [0, 96], sizes = [8, 32], strides = [1, 1]} : vector<8x128xf32> to vector<8x32xf32>
    %878 = vector.extract_strided_slice %869 {offsets = [0, 64], sizes = [8, 32], strides = [1, 1]} : vector<8x128xf32> to vector<8x32xf32>
    %879 = math.tanh %878 : vector<8x32xf32>
    %880 = arith.mulf %876, %862 : vector<8x32xf32>
    %881 = arith.mulf %875, %879 : vector<8x32xf32>
    %882 = arith.addf %880, %881 : vector<8x32xf32>
    %883 = math.tanh %882 : vector<8x32xf32>
    %884 = arith.mulf %877, %883 : vector<8x32xf32>
    %c56_323 = arith.constant 56 : index
    %c0_324 = arith.constant 0 : index
    %885 = vector.load %arg11[%c56_323, %c0_324] : memref<192x32xf32, #tpu.memory_space<vmem>>, vector<8x32xf32>
    tpu.vector_store %arg11[%c56_323, %c0_324], %884 {strides = array<i32>} : memref<192x32xf32, #tpu.memory_space<vmem>>, vector<8x32xf32>,
    %c0_325 = arith.constant 0 : index
    %c0_326 = arith.constant 0 : index
    %886 = vector.load %arg11[%c0_325, %c0_326] : memref<192x32xf32, #tpu.memory_space<vmem>>, vector<64x32xf32>
    %c0_327 = arith.constant 0 : index
    %c0_328 = arith.constant 0 : index
    %887 = vector.load %arg7[%c0_327, %c0_328] : memref<32x32xf32, #tpu.memory_space<vmem>>, vector<32x32xf32>
    %cst_329 = arith.constant dense<0.000000e+00> : vector<64x32xf32>
    %888 = tpu.matmul %886, %887, %cst_329 {dimension_numbers = #tpu.dot_dimension_numbers<[1], [0], [0], [1], [0, 0, 1, 1], [], []>} : vector<64x32xf32>, vector<32x32xf32>, vector<64x32xf32> -> vector<64x32xf32>
    %c0_330 = arith.constant 0 : index
    %c0_331 = arith.constant 0 : index
    %889 = vector.load %arg8[%c0_330, %c0_331] : memref<1x32xf32, #tpu.memory_space<vmem>>, vector<1x32xf32>
    %890 = vector.broadcast %889 : vector<1x32xf32> to vector<64x32xf32>
    %891 = arith.addf %888, %890 : vector<64x32xf32>
    %cst_332 = arith.constant 0.000000e+00 : f32
    %892 = vector.broadcast %cst_332 : f32 to vector<64x32xf32>
    %893 = arith.maximumf %891, %892 : vector<64x32xf32>
    %c0_333 = arith.constant 0 : index
    %c0_334 = arith.constant 0 : index
    %894 = vector.load %arg9[%c0_333, %c0_334] : memref<64x32xf32, #tpu.memory_space<vmem>>, vector<64x32xf32>
    tpu.vector_store %arg9[%c0_333, %c0_334], %893 {strides = array<i32>} : memref<64x32xf32, #tpu.memory_space<vmem>>, vector<64x32xf32>,
    return
  }
}

</mosaic_0001>

<bundles_post_ra>
// kernel: lstm_module_forward.1
= control target key start
LH: loop header
LB: loop body
LE: loop exit
PB: predicated region body
PF: predicated region fallthrough
CT: control target
= control target key end

     0   :  { %vm64_vm0 = vcmask 261120   ;;  %v4082_v9 = vmov 0.0   ;;  %s4083_s28 = smov 64   ;;  %s4084_s29 = smov 32   ;;  %s5044_s1 = inlined_call_operand.vmem [shape: f32[32,128], index: 1, kind: input, shape index: {}]   ;;  %s5045_s2 = inlined_call_operand.vmem [shape: f32[32,128], index: 2, kind: input, shape index: {}]   ;;  %s5046_s0 = inlined_call_operand.vmem [shape: f32[192,32], index: 0, kind: input, shape index: {}]   ;;  %s5047_s3 = inlined_call_operand.vmem [shape: f32[1,128], index: 3, kind: input, shape index: {}]   ;;  %s5048_s4 = inlined_call_operand.vmem [shape: f32[32,128], index: 4, kind: input, shape index: {}]   ;;  %s5049_s6 = inlined_call_operand.vmem [shape: f32[1,128], index: 6, kind: input, shape index: {}]   ;;  %s5050_s5 = inlined_call_operand.vmem [shape: f32[32,128], index: 5, kind: input, shape index: {}]   ;;  %s5051_s7 = inlined_call_operand.vmem [shape: f32[32,32], index: 7, kind: input, shape index: {}]   ;;  %s5052_s8 = inlined_call_operand.vmem [shape: f32[1,32], index: 8, kind: input, shape index: {}]   ;;  %s5053_s9 = inlined_call_operand.vmem [shape: f32[64,32], index: 9, kind: output, shape index: {}]  }
   0x1   :  { %v59_v0 = vld [vmem:[%s5044_s1 + $0x18] sm:$0xff]  ;;  %v58_v1 = vld [vmem:[%s5044_s1 + $0x10] sm:$0xff]  ;;  %v57_v4 = vld [vmem:[%s5044_s1 + $0x8] sm:$0xff] }
   0x2   :  { %v4144_v2 = vld [vmem:[%s5045_s2 + $0x18] sm:$0xff]  ;;  %149 = vmatpush.msra.mxu0 %v59_v0  ;;  %v4150_v3 = vld [vmem:[%s5045_s2 + $0x10] sm:$0xff]  ;;  %v4158_v5 = vld [vmem:[%s5045_s2 + $0x8] sm:$0xff] }
   0x3   :  { %270 = vmatpush.msra.mxu1 %v4144_v2  ;;  %410 = vmatpush.msra.mxu3 %v4144_v2  ;;  %v56_v6 = vld [vmem:[%s5044_s1] sm:$0xff]  ;;  %v33_v31 = vld [vmem:[%s5046_s0 + $0x8] sm:$0xff]  ;;  %v34_v32 = vld [vmem:[%s5046_s0 + $0x10] sm:$0xff] }
   0x4   :  { %550 = vmatpush.msra.mxu2 %v4144_v2  ;;  %150 = vmatpush.msra.mxu0 %v58_v1  ;;  %v4169_v7 = vld [vmem:[%s5045_s2] sm:$0xff]  ;;  %v35_v33 = vld [vmem:[%s5046_s0 + $0x18] sm:$0xff]  ;;  %v37_v38 = vld [vmem:[%s5046_s0 + $0x28] sm:$0xff] }
   0x5   :  { %271 = vmatpush.msra.mxu1 %v4150_v3  ;;  %411 = vmatpush.msra.mxu3 %v4150_v3  ;;  %v32_v8 = vld [vmem:[%s5046_s0] sm:$0xff]  ;;  %v38_v40 = vld [vmem:[%s5046_s0 + $0x30] sm:$0xff]  ;;  %v39_v41 = vld [vmem:[%s5046_s0 + $0x38] sm:$0xff] }
   0x6   :  { %551 = vmatpush.msra.mxu2 %v4150_v3  ;;  %151 = vmatpush.msra.mxu0 %v57_v4  ;;  %v4207_v10 = vld [vmem:[%s5047_s3] ss:$0 sm:$0xff]  ;;  %v41_v43 = vld [vmem:[%s5046_s0 + $0x48] sm:$0xff]  ;;  %v42_v44 = vld [vmem:[%s5046_s0 + $0x50] sm:$0xff] }
   0x7   :  { %272 = vmatpush.msra.mxu1 %v4158_v5  ;;  %412 = vmatpush.msra.mxu3 %v4158_v5  ;;  %v36_v36 = vld [vmem:[%s5046_s0 + $0x20] sm:$0xff]  ;;  %v43_v45 = vld [vmem:[%s5046_s0 + $0x58] sm:$0xff]  ;;  %v45_v47 = vld [vmem:[%s5046_s0 + $0x68] sm:$0xff] }
   0x8   :  { %552 = vmatpush.msra.mxu2 %v4158_v5  ;;  %152 = vmatpush.msra.mxu0 %v56_v6  ;;  %v40_v42 = vld [vmem:[%s5046_s0 + $0x40] sm:$0xff]  ;;  %v46_v50 = vld [vmem:[%s5046_s0 + $0x70] sm:$0xff]  ;;  %v47_v51 = vld [vmem:[%s5046_s0 + $0x78] sm:$0xff] }
   0x9   :  { %273 = vmatpush.msra.mxu1 %v4169_v7  ;;  %3575 = vmatmul.msk.f32.vlgmr.msra.gmra.mxu0 %vm64_vm0, %v32_v8  ;;  %v44_v46 = vld [vmem:[%s5046_s0 + $0x60] sm:$0xff]  ;;  %v49_v55 = vld [vmem:[%s5046_s0 + $0x88] sm:$0xff]  ;;  %v50_v56 = vld [vmem:[%s5046_s0 + $0x90] sm:$0xff] }
   0xa   :  { %274 = vmatmul.f32.vlgmr.msra.gmra.mxu1 %v4082_v9  ;;  %340 = vmatpush.msrb.mxu0 %v4144_v2  ;;  %v48_v53 = vld [vmem:[%s5046_s0 + $0x80] sm:$0xff]  ;;  %v51_v58 = vld [vmem:[%s5046_s0 + $0x98] sm:$0xff]  ;;  %v53_v62 = vld [vmem:[%s5046_s0 + $0xa8] sm:$0xff] }
   0xb   :  { %413 = vmatpush.msra.mxu3 %v4169_v7  ;;  %480 = vmatpush.msrb.mxu1 %v4144_v2  ;;  %v52_v60 = vld [vmem:[%s5046_s0 + $0xa0] sm:$0xff]  ;;  %v54_v0 = vld [vmem:[%s5046_s0 + $0xb0] sm:$0xff]  ;;  %v55_v4 = vld [vmem:[%s5046_s0 + $0xb8] sm:$0xff] }
   0xc   :  { %553 = vmatpush.msra.mxu2 %v4169_v7  ;;  %341 = vmatpush.msrb.mxu0 %v4150_v3 }
   0xd   :  { %620 = vmatpush.msrb.mxu3 %v4144_v2  ;;  %481 = vmatpush.msrb.mxu1 %v4150_v3 }
   0xe   :  { %760 = vmatpush.msrb.mxu2 %v4144_v2  ;;  %342 = vmatpush.msrb.mxu0 %v4158_v5 }
   0xf   :  { %621 = vmatpush.msrb.mxu3 %v4150_v3  ;;  %482 = vmatpush.msrb.mxu1 %v4158_v5 }
  0x10   :  { %761 = vmatpush.msrb.mxu2 %v4150_v3  ;;  %343 = vmatpush.msrb.mxu0 %v4169_v7 }
  0x11   :  { %622 = vmatpush.msrb.mxu3 %v4158_v5  ;;  %483 = vmatpush.msrb.mxu1 %v4169_v7 }
  0x12   :  { %762 = vmatpush.msrb.mxu2 %v4158_v5  ;;  %3576 = vmatmul.msk.f32.gmra.mxu0 %vm64_vm0, %v33_v31 }
  0x13   :  { %623 = vmatpush.msrb.mxu3 %v4169_v7  ;;  %690 = vmatpush.msra.mxu1 %v4144_v2 }
  0x14   :  { %763 = vmatpush.msrb.mxu2 %v4169_v7 }
  0x15   :  { %691 = vmatpush.msra.mxu1 %v4150_v3 }
  0x17   :  { %692 = vmatpush.msra.mxu1 %v4158_v5 }
  0x19   :  { %693 = vmatpush.msra.mxu1 %v4169_v7 }
  0x1a   :  { %3577 = vmatmul.msk.f32.gmra.mxu0 %vm64_vm0, %v34_v32 }
  0x22   :  { %3578 = vmatmul.msk.f32.gmra.mxu0 %vm64_vm0, %v35_v33 }
  0x2a   :  { %3579 = vmatmul.msk.f32.gmra.mxu0 %vm64_vm0, %v36_v36 }
  0x32   :  { %3580 = vmatmul.msk.f32.gmra.mxu0 %vm64_vm0, %v37_v38 }
  0x3a   :  { %3581 = vmatmul.msk.f32.gmra.mxu0 %vm64_vm0, %v38_v40 }
  0x42   :  { %3582 = vmatmul.msk.f32.gmra.mxu0 %vm64_vm0, %v39_v41 }
  0x4a   :  { %3583 = vmatmul.msk.f32.gmra.mxu0 %vm64_vm0, %v40_v42 }
  0x52   :  { %3584 = vmatmul.msk.f32.gmra.mxu0 %vm64_vm0, %v41_v43 }
  0x5a   :  { %3585 = vmatmul.msk.f32.gmra.mxu0 %vm64_vm0, %v42_v44 }
  0x62   :  { %3586 = vmatmul.msk.f32.gmra.mxu0 %vm64_vm0, %v43_v45 }
  0x6a   :  { %3587 = vmatmul.msk.f32.gmra.mxu0 %vm64_vm0, %v44_v46 }
  0x72   :  { %3588 = vmatmul.msk.f32.gmra.mxu0 %vm64_vm0, %v45_v47 }
  0x7a   :  { %3589 = vmatmul.msk.f32.gmra.mxu0 %vm64_vm0, %v46_v50 }
  0x82   :  { %3590 = vmatmul.msk.f32.gmra.mxu0 %vm64_vm0, %v47_v51 }
  0x86   :  { %v154_v11 = vpop.f32.mrf.mxu0 }
  0x87   :  { %v275_v12 = vpop.f32.mrf.mxu1  ;;  %v155_v13 = vadd.f32 %v4207_v10, %v154_v11 }
  0x89   :  { %v278_v14 = vadd.f32 %v275_v12, %v155_v13 }
  0x8a   :  { %3591 = vmatmul.msk.f32.gmra.mxu0 %vm64_vm0, %v48_v53 }
  0x8b   :  { %3727 = vtanh.f32 %v278_v14  ;;  %v3599_v16 = vmul.f32 -1.442695, %v278_v14 }
  0x8d   :  { %3729 = vpow2.f32 %v3599_v16 }
  0x8f   :  { %v157_v52 = vpop.f32.mrf.mxu0 }
  0x91   :  { %v3728_v15 = vpop.eup %3727 }
  0x92   :  { %301 = vrot.lane.b32.xlu0 %v3728_v15, %s4083_s28  ;;  %3592 = vmatmul.msk.f32.gmra.mxu0 %vm64_vm0, %v49_v55 }
  0x93   :  { %v3730_v17 = vpop.eup %3729 }
  0x94   :  { %v282_v18 = vadd.f32 1.0, %v3730_v17 }
  0x96   :  { %3731 = vrcp.f32 %v282_v18  ;;  %v294_v24 = vand.u32 2147483648, %v282_v18  ;;  %vm288_vm2 = vweird.f32 %v282_v18  ;;  %v292_v25 = vand.u32 2147483647, %v282_v18 }
  0x97   :  { %v4281_v54 = vpop.f32.mrf.mxu0 }
  0x98   :  { %v295_v27 = vor.u32 1.1754944e-38, %v294_v24  ;;  %vm293_vm4 = vcmp.eq.f32.partialorder %v292_v25, 8.507059e+37 }
  0x9a   :  { %3593 = vmatmul.msk.f32.gmra.mxu0 %vm64_vm0, %v50_v56 }
  0x9c   :  { %v3732_v19 = vpop.eup %3731 }
  0x9d   :  { %v284_v20 = vmul.f32 %v3732_v19, %v282_v18  ;;  %vm289_vm1 = vweird.f32 %v3732_v19 }
  0x9e   :  { %vm290_vm3 = vmor %vm288_vm2, %vm289_vm1 }
  0x9f   :  { %v285_v21 = vsub.f32 1.0, %v284_v20  ;;  %v4290_v57 = vpop.f32.mrf.mxu0 }
  0xa1   :  { %v286_v22 = vmul.f32 %v3732_v19, %v285_v21 }
  0xa2   :  { %3594 = vmatmul.msk.f32.gmra.mxu0 %vm64_vm0, %v51_v58 }
  0xa3   :  { %v287_v23 = vadd.f32 %v3732_v19, %v286_v22 }
  0xa5   :  { %v291_v26 = vsel %vm290_vm3, %v3732_v19, %v287_v23 }
  0xa6   :  { %v296_v29 = vsel %vm293_vm4, %v295_v27, %v291_v26  ;;  %v158_v26 = vadd.f32 %v4207_v10, %v157_v52 }
  0xa7   :  { %v299_v34 = vmul.f32 0.0, %v296_v29  ;;  %v4296_v59 = vpop.f32.mrf.mxu0 }
  0xaa   :  { %3595 = vmatmul.msk.f32.gmra.mxu0 %vm64_vm0, %v52_v60 }
  0xaf   :  { %v4303_v61 = vpop.f32.mrf.mxu0 }
  0xb2   :  { %3596 = vmatmul.msk.f32.gmra.mxu0 %vm64_vm0, %v53_v62 }
  0xb7   :  { %v4309_v63 = vpop.f32.mrf.mxu0 }
  0xba   :  { %3597 = vmatmul.msk.f32.gmra.mxu0 %vm64_vm0, %v54_v0 }
  0xbf   :  { %v4315_v1 = vpop.f32.mrf.mxu0 }
  0xc2   :  { %3598 = vmatmul.msk.f32.gmra.mxu0 %vm64_vm0, %v55_v4 }
  0xc7   :  { %v4321_v6 = vpop.f32.mrf.mxu0 }
  0xcf   :  { %v4323_v8 = vpop.f32.mrf.mxu0 }
  0xd7   :  { %v4325_v11 = vpop.f32.mrf.mxu0 }
  0xdf   :  { %v4327_v12 = vpop.f32.mrf.mxu0 }
  0xe7   :  { %v4331_v14 = vpop.f32.mrf.mxu0 }
  0xef   :  { %v4333_v15 = vpop.f32.mrf.mxu0 }
  0xf7   :  { %v4335_v16 = vpop.f32.mrf.mxu0 }
  0xff   :  { %v4337_v17 = vpop.f32.mrf.mxu0 }
 0x104   :  { %v302_v28 = vpop.permute.xlu0 %301 }
 0x105   :  { %v304_v30 = vmul.f32 %v302_v28, %v296_v29 }
 0x107   :  { %306 = vrot.lane.b32.xlu0 %v304_v30, %s4084_s29  ;;  %v4339_v18 = vpop.f32.mrf.mxu0 }
 0x10f   :  { %v4341_v19 = vpop.f32.mrf.mxu0 }
 0x117   :  { %v4343_v20 = vpop.f32.mrf.mxu0 }
 0x11f   :  { %v4345_v21 = vpop.f32.mrf.mxu0 }
 0x127   :  { %v4347_v22 = vpop.f32.mrf.mxu0 }
 0x12f   :  { %v4349_v23 = vpop.f32.mrf.mxu0 }
 0x137   :  { %v4351_v24 = vpop.f32.mrf.mxu0 }
 0x13f   :  { %v4353_v25 = vpop.f32.mrf.mxu0 }
 0x179   :  { %v307_v35 = vpop.permute.xlu0 %306 }
 0x17a   :  { %v4227_v37 = vadd.f32 %v307_v35, %v299_v34 }
 0x17c   :  { %3733 = vtanh.f32 %v4227_v37 }
 0x182   :  { %v3734_v39 = vpop.eup %3733 }
 0x183   :  { %312 = vrot.lane.b32.xlu1 %v3734_v39, %s4083_s28 }
 0x1f5   :  { %v313_v48 = vpop.permute.xlu1 %312 }
 0x1f6   :  { %v315_v49 = vmul.f32 %v313_v48, %v296_v29 }
 0x1f8   :  { %317 = vrot.lane.b32.xlu1 %v315_v49, %s4084_s29 }
 0x26a   :  { %v318_v13 = vpop.permute.xlu1 %317 }
 0x26b   :  { %320 = vst.msk [vmem:[#allocation3] sm:$0xff] %vm64_vm0, %v318_v13  ;;  %3600 = vmatmul.msk.f32.vlgmr.msrb.gmra.mxu0 %vm64_vm0, %v318_v13 }
 0x2e8   :  { %v345_v27 = vpop.f32.mrf.mxu0 }
 0x2e9   :  { %v348_v28 = vadd.f32 %v345_v27, %v158_v26 }
 0x2eb   :  { %3735 = vtanh.f32 %v348_v28  ;;  %v3601_v30 = vmul.f32 -1.442695, %v348_v28 }
 0x2ed   :  { %3737 = vpow2.f32 %v3601_v30 }
 0x2f1   :  { %v3736_v29 = vpop.eup %3735 }
 0x2f2   :  { %371 = vrot.lane.b32.xlu2 %v3736_v29, %s4083_s28 }
 0x2f3   :  { %v3738_v31 = vpop.eup %3737 }
 0x2f4   :  { %v352_v32 = vadd.f32 1.0, %v3738_v31 }
 0x2f6   :  { %3739 = vrcp.f32 %v352_v32  ;;  %v364_v39 = vand.u32 2147483648, %v352_v32  ;;  %vm358_vm6 = vweird.f32 %v352_v32  ;;  %v362_v40 = vand.u32 2147483647, %v352_v32 }
 0x2f8   :  { %v365_v42 = vor.u32 1.1754944e-38, %v364_v39  ;;  %vm363_vm8 = vcmp.eq.f32.partialorder %v362_v40, 8.507059e+37 }
 0x2fc   :  { %v3740_v33 = vpop.eup %3739 }
 0x2fd   :  { %v354_v34 = vmul.f32 %v3740_v33, %v352_v32  ;;  %vm359_vm5 = vweird.f32 %v3740_v33 }
 0x2fe   :  { %vm360_vm7 = vmor %vm358_vm6, %vm359_vm5 }
 0x2ff   :  { %v355_v35 = vsub.f32 1.0, %v354_v34 }
 0x301   :  { %v356_v36 = vmul.f32 %v3740_v33, %v355_v35 }
 0x303   :  { %v357_v38 = vadd.f32 %v3740_v33, %v356_v36 }
 0x305   :  { %v361_v41 = vsel %vm360_vm7, %v3740_v33, %v357_v38 }
 0x306   :  { %v366_v44 = vsel %vm363_vm8, %v365_v42, %v361_v41  ;;  %v164_v42 = vadd.f32 %v4207_v10, %v4290_v57 }
 0x307   :  { %v369_v46 = vmul.f32 %v366_v44, %v4227_v37  ;;  %v161_v37 = vadd.f32 %v4207_v10, %v4281_v54 }
 0x34c   :  { %v372_v43 = vpop.permute.xlu2 %371 }
 0x34d   :  { %v374_v45 = vmul.f32 %v372_v43, %v366_v44 }
 0x34f   :  { %376 = vrot.lane.b32.xlu2 %v374_v45, %s4084_s29 }
 0x3a9   :  { %v377_v47 = vpop.permute.xlu2 %376 }
 0x3aa   :  { %v379_v48 = vadd.f32 %v377_v47, %v369_v46 }
 0x3ac   :  { %3741 = vtanh.f32 %v379_v48 }
 0x3b2   :  { %v3742_v49 = vpop.eup %3741 }
 0x3b3   :  { %382 = vrot.lane.b32.xlu0 %v3742_v49, %s4083_s28 }
 0x425   :  { %v383_v50 = vpop.permute.xlu0 %382 }
 0x426   :  { %v385_v51 = vmul.f32 %v383_v50, %v366_v44 }
 0x428   :  { %387 = vrot.lane.b32.xlu1 %v385_v51, %s4084_s29 }
 0x49a   :  { %v388_v52 = vpop.permute.xlu1 %387 }
 0x49b   :  { %390 = vst.msk [vmem:[#allocation3 + $0x8] sm:$0xff] %vm64_vm0, %v388_v52  ;;  %3602 = vmatmul.msk.f32.vlgmr.msra.gmra.mxu3 %vm64_vm0, %v388_v52 }
 0x49c   :  { %830 = vmatpush.msra.mxu3 %v4144_v2 }
 0x49e   :  { %831 = vmatpush.msra.mxu3 %v4150_v3 }
 0x4a0   :  { %832 = vmatpush.msra.mxu3 %v4158_v5 }
 0x4a2   :  { %833 = vmatpush.msra.mxu3 %v4169_v7 }
 0x51e   :  { %v415_v53 = vpop.f32.mrf.mxu3 }
 0x51f   :  { %v418_v55 = vadd.f32 %v415_v53, %v161_v37 }
 0x521   :  { %3743 = vtanh.f32 %v418_v55  ;;  %v3603_v58 = vmul.f32 -1.442695, %v418_v55 }
 0x523   :  { %3745 = vpow2.f32 %v3603_v58 }
 0x527   :  { %v3744_v56 = vpop.eup %3743 }
 0x528   :  { %441 = vrot.lane.b32.xlu2 %v3744_v56, %s4083_s28 }
 0x529   :  { %v3746_v60 = vpop.eup %3745 }
 0x52a   :  { %v422_v62 = vadd.f32 1.0, %v3746_v60 }
 0x52c   :  { %3747 = vrcp.f32 %v422_v62  ;;  %v434_v28 = vand.u32 2147483648, %v422_v62  ;;  %vm428_vm10 = vweird.f32 %v422_v62  ;;  %v432_v54 = vand.u32 2147483647, %v422_v62 }
 0x52e   :  { %v435_v30 = vor.u32 1.1754944e-38, %v434_v28  ;;  %vm433_vm12 = vcmp.eq.f32.partialorder %v432_v54, 8.507059e+37 }
 0x532   :  { %v3748_v0 = vpop.eup %3747 }
 0x533   :  { %v424_v4 = vmul.f32 %v3748_v0, %v422_v62  ;;  %vm429_vm9 = vweird.f32 %v3748_v0 }
 0x534   :  { %vm430_vm11 = vmor %vm428_vm10, %vm429_vm9 }
 0x535   :  { %v425_v13 = vsub.f32 1.0, %v424_v4 }
 0x537   :  { %v426_v26 = vmul.f32 %v3748_v0, %v425_v13 }
 0x539   :  { %v427_v27 = vadd.f32 %v3748_v0, %v426_v26  ;;  %v167_v26 = vadd.f32 %v4207_v10, %v4296_v59 }
 0x53b   :  { %v431_v29 = vsel %vm430_vm11, %v3748_v0, %v427_v27 }
 0x53c   :  { %v436_v32 = vsel %vm433_vm12, %v435_v30, %v431_v29 }
 0x53d   :  { %v439_v34 = vmul.f32 %v436_v32, %v379_v48 }
 0x582   :  { %v442_v31 = vpop.permute.xlu2 %441 }
 0x583   :  { %v444_v33 = vmul.f32 %v442_v31, %v436_v32 }
 0x585   :  { %446 = vrot.lane.b32.xlu0 %v444_v33, %s4084_s29 }
 0x5f7   :  { %v447_v35 = vpop.permute.xlu0 %446 }
 0x5f8   :  { %v449_v36 = vadd.f32 %v447_v35, %v439_v34 }
 0x5fa   :  { %3749 = vtanh.f32 %v449_v36 }
 0x600   :  { %v3750_v38 = vpop.eup %3749 }
 0x601   :  { %452 = vrot.lane.b32.xlu1 %v3750_v38, %s4083_s28 }
 0x673   :  { %v453_v39 = vpop.permute.xlu1 %452 }
 0x674   :  { %v455_v40 = vmul.f32 %v453_v39, %v436_v32 }
 0x676   :  { %457 = vrot.lane.b32.xlu2 %v455_v40, %s4084_s29 }
 0x6d0   :  { %v458_v41 = vpop.permute.xlu2 %457 }
 0x6d1   :  { %460 = vst.msk [vmem:[#allocation3 + $0x10] sm:$0xff] %vm64_vm0, %v458_v41  ;;  %3604 = vmatmul.msk.f32.vlgmr.msrb.gmra.mxu1 %vm64_vm0, %v458_v41 }
 0x6d2   :  { %900 = vmatpush.msrb.mxu1 %v4144_v2 }
 0x6d4   :  { %901 = vmatpush.msrb.mxu1 %v4150_v3 }
 0x6d6   :  { %902 = vmatpush.msrb.mxu1 %v4158_v5 }
 0x6d8   :  { %903 = vmatpush.msrb.mxu1 %v4169_v7 }
 0x74e   :  { %v485_v43 = vpop.f32.mrf.mxu1 }
 0x74f   :  { %v488_v44 = vadd.f32 %v485_v43, %v164_v42 }
 0x751   :  { %3751 = vtanh.f32 %v488_v44  ;;  %v3605_v46 = vmul.f32 -1.442695, %v488_v44 }
 0x753   :  { %3753 = vpow2.f32 %v3605_v46 }
 0x757   :  { %v3752_v45 = vpop.eup %3751 }
 0x758   :  { %511 = vrot.lane.b32.xlu0 %v3752_v45, %s4083_s28 }
 0x759   :  { %v3754_v47 = vpop.eup %3753 }
 0x75a   :  { %v492_v48 = vadd.f32 1.0, %v3754_v47 }
 0x75c   :  { %3755 = vrcp.f32 %v492_v48  ;;  %v504_v7 = vand.u32 2147483648, %v492_v48  ;;  %vm498_vm14 = vweird.f32 %v492_v48  ;;  %v502_v57 = vand.u32 2147483647, %v492_v48 }
 0x75e   :  { %v505_v52 = vor.u32 1.1754944e-38, %v504_v7  ;;  %vm503_vm1 = vcmp.eq.f32.partialorder %v502_v57, 8.507059e+37 }
 0x762   :  { %v3756_v2 = vpop.eup %3755 }
 0x763   :  { %v494_v3 = vmul.f32 %v3756_v2, %v492_v48  ;;  %vm499_vm13 = vweird.f32 %v3756_v2 }
 0x764   :  { %vm500_vm15 = vmor %vm498_vm14, %vm499_vm13 }
 0x765   :  { %v495_v49 = vsub.f32 1.0, %v494_v3 }
 0x767   :  { %v496_v5 = vmul.f32 %v3756_v2, %v495_v49  ;;  %v170_v49 = vadd.f32 %v4207_v10, %v4303_v61 }
 0x769   :  { %v497_v50 = vadd.f32 %v3756_v2, %v496_v5 }
 0x76b   :  { %v501_v51 = vsel %vm500_vm15, %v3756_v2, %v497_v50 }
 0x76c   :  { %v506_v53 = vsel %vm503_vm1, %v505_v52, %v501_v51 }
 0x76d   :  { %v509_v56 = vmul.f32 %v506_v53, %v449_v36 }
 0x7ca   :  { %v512_v37 = vpop.permute.xlu0 %511 }
 0x7cb   :  { %v514_v55 = vmul.f32 %v512_v37, %v506_v53 }
 0x7cd   :  { %516 = vrot.lane.b32.xlu1 %v514_v55, %s4084_s29 }
 0x83f   :  { %v517_v58 = vpop.permute.xlu1 %516 }
 0x840   :  { %v519_v60 = vadd.f32 %v517_v58, %v509_v56 }
 0x842   :  { %3757 = vtanh.f32 %v519_v60 }
 0x848   :  { %v3758_v62 = vpop.eup %3757 }
 0x849   :  { %522 = vrot.lane.b32.xlu2 %v3758_v62, %s4083_s28 }
 0x8a3   :  { %v523_v0 = vpop.permute.xlu2 %522 }
 0x8a4   :  { %v525_v4 = vmul.f32 %v523_v0, %v506_v53 }
 0x8a6   :  { %527 = vrot.lane.b32.xlu0 %v525_v4, %s4084_s29 }
 0x918   :  { %v528_v13 = vpop.permute.xlu0 %527 }
 0x919   :  { %530 = vst.msk [vmem:[#allocation3 + $0x18] sm:$0xff] %vm64_vm0, %v528_v13  ;;  %3606 = vmatmul.msk.f32.vlgmr.msra.gmra.mxu2 %vm64_vm0, %v528_v13 }
 0x99c   :  { %v555_v27 = vpop.f32.mrf.mxu2 }
 0x99d   :  { %v558_v28 = vadd.f32 %v555_v27, %v167_v26 }
 0x99f   :  { %3759 = vtanh.f32 %v558_v28  ;;  %v3607_v29 = vmul.f32 -1.442695, %v558_v28 }
 0x9a1   :  { %3761 = vpow2.f32 %v3607_v29 }
 0x9a5   :  { %v3760_v54 = vpop.eup %3759 }
 0x9a6   :  { %581 = vrot.lane.b32.xlu1 %v3760_v54, %s4083_s28 }
 0x9a7   :  { %v3762_v30 = vpop.eup %3761 }
 0x9a8   :  { %v562_v31 = vadd.f32 1.0, %v3762_v30 }
 0x9aa   :  { %3763 = vrcp.f32 %v562_v31  ;;  %v574_v38 = vand.u32 2147483648, %v562_v31  ;;  %vm568_vm3 = vweird.f32 %v562_v31  ;;  %v572_v59 = vand.u32 2147483647, %v562_v31 }
 0x9ac   :  { %v575_v40 = vor.u32 1.1754944e-38, %v574_v38  ;;  %vm573_vm5 = vcmp.eq.f32.partialorder %v572_v59, 8.507059e+37 }
 0x9b0   :  { %v3764_v32 = vpop.eup %3763 }
 0x9b1   :  { %v564_v33 = vmul.f32 %v3764_v32, %v562_v31  ;;  %vm569_vm2 = vweird.f32 %v3764_v32 }
 0x9b2   :  { %vm570_vm4 = vmor %vm568_vm3, %vm569_vm2 }
 0x9b3   :  { %v565_v34 = vsub.f32 1.0, %v564_v33  ;;  %v173_v33 = vadd.f32 %v4207_v10, %v4309_v63 }
 0x9b5   :  { %v566_v35 = vmul.f32 %v3764_v32, %v565_v34 }
 0x9b7   :  { %v567_v36 = vadd.f32 %v3764_v32, %v566_v35 }
 0x9b9   :  { %v571_v39 = vsel %vm570_vm4, %v3764_v32, %v567_v36 }
 0x9ba   :  { %v576_v42 = vsel %vm573_vm5, %v575_v40, %v571_v39 }
 0x9bb   :  { %v579_v44 = vmul.f32 %v576_v42, %v519_v60 }
 0xa18   :  { %v582_v41 = vpop.permute.xlu1 %581 }
 0xa19   :  { %v584_v43 = vmul.f32 %v582_v41, %v576_v42 }
 0xa1b   :  { %586 = vrot.lane.b32.xlu2 %v584_v43, %s4084_s29 }
 0xa75   :  { %v587_v45 = vpop.permute.xlu2 %586 }
 0xa76   :  { %v589_v46 = vadd.f32 %v587_v45, %v579_v44 }
 0xa78   :  { %3765 = vtanh.f32 %v589_v46 }
 0xa7e   :  { %v3766_v47 = vpop.eup %3765 }
 0xa7f   :  { %592 = vrot.lane.b32.xlu0 %v3766_v47, %s4083_s28 }
 0xaf1   :  { %v593_v48 = vpop.permute.xlu0 %592 }
 0xaf2   :  { %v595_v2 = vmul.f32 %v593_v48, %v576_v42 }
 0xaf4   :  { %597 = vrot.lane.b32.xlu1 %v595_v2, %s4084_s29 }
 0xb66   :  { %v598_v3 = vpop.permute.xlu1 %597 }
 0xb67   :  { %600 = vst.msk [vmem:[#allocation3 + $0x20] sm:$0xff] %vm64_vm0, %v598_v3  ;;  %3608 = vmatmul.msk.f32.vlgmr.msrb.gmra.mxu3 %vm64_vm0, %v598_v3 }
 0xbea   :  { %v625_v5 = vpop.f32.mrf.mxu3 }
 0xbeb   :  { %v628_v50 = vadd.f32 %v625_v5, %v170_v49 }
 0xbed   :  { %3767 = vtanh.f32 %v628_v50  ;;  %v3609_v57 = vmul.f32 -1.442695, %v628_v50 }
 0xbef   :  { %3769 = vpow2.f32 %v3609_v57 }
 0xbf3   :  { %v3768_v7 = vpop.eup %3767 }
 0xbf4   :  { %651 = vrot.lane.b32.xlu2 %v3768_v7, %s4083_s28 }
 0xbf5   :  { %v3770_v51 = vpop.eup %3769 }
 0xbf6   :  { %v632_v52 = vadd.f32 1.0, %v3770_v51 }
 0xbf8   :  { %3771 = vrcp.f32 %v632_v52  ;;  %v644_v60 = vand.u32 2147483648, %v632_v52  ;;  %vm638_vm7 = vweird.f32 %v632_v52  ;;  %v642_v61 = vand.u32 2147483647, %v632_v52 }
 0xbfa   :  { %v645_v0 = vor.u32 1.1754944e-38, %v644_v60  ;;  %vm643_vm9 = vcmp.eq.f32.partialorder %v642_v61, 8.507059e+37 }
 0xbfe   :  { %v3772_v37 = vpop.eup %3771 }
 0xbff   :  { %v634_v53 = vmul.f32 %v3772_v37, %v632_v52  ;;  %vm639_vm6 = vweird.f32 %v3772_v37 }
 0xc00   :  { %vm640_vm8 = vmor %vm638_vm7, %vm639_vm6 }
 0xc01   :  { %v635_v55 = vsub.f32 1.0, %v634_v53 }
 0xc03   :  { %v636_v56 = vmul.f32 %v3772_v37, %v635_v55 }
 0xc05   :  { %v637_v58 = vadd.f32 %v3772_v37, %v636_v56 }
 0xc07   :  { %v641_v62 = vsel %vm640_vm8, %v3772_v37, %v637_v58  ;;  %v176_v37 = vadd.f32 %v4207_v10, %v4315_v1 }
 0xc08   :  { %v646_v13 = vsel %vm643_vm9, %v645_v0, %v641_v62 }
 0xc09   :  { %v649_v27 = vmul.f32 %v646_v13, %v589_v46 }
 0xc4e   :  { %v652_v4 = vpop.permute.xlu2 %651 }
 0xc4f   :  { %v654_v26 = vmul.f32 %v652_v4, %v646_v13 }
 0xc51   :  { %656 = vrot.lane.b32.xlu0 %v654_v26, %s4084_s29 }
 0xcc3   :  { %v657_v28 = vpop.permute.xlu0 %656 }
 0xcc4   :  { %v659_v54 = vadd.f32 %v657_v28, %v649_v27 }
 0xcc6   :  { %3773 = vtanh.f32 %v659_v54 }
 0xccc   :  { %v3774_v29 = vpop.eup %3773 }
 0xccd   :  { %662 = vrot.lane.b32.xlu1 %v3774_v29, %s4083_s28 }
 0xd3f   :  { %v663_v30 = vpop.permute.xlu1 %662 }
 0xd40   :  { %v665_v31 = vmul.f32 %v663_v30, %v646_v13 }
 0xd42   :  { %667 = vrot.lane.b32.xlu2 %v665_v31, %s4084_s29 }
 0xd9c   :  { %v668_v32 = vpop.permute.xlu2 %667 }
 0xd9d   :  { %670 = vst.msk [vmem:[#allocation3 + $0x28] sm:$0xff] %vm64_vm0, %v668_v32  ;;  %3610 = vmatmul.msk.f32.vlgmr.msra.gmra.mxu1 %vm64_vm0, %v668_v32 }
 0xe1a   :  { %v695_v34 = vpop.f32.mrf.mxu1 }
 0xe1b   :  { %v698_v35 = vadd.f32 %v695_v34, %v173_v33 }
 0xe1d   :  { %3775 = vtanh.f32 %v698_v35  ;;  %v3611_v38 = vmul.f32 -1.442695, %v698_v35 }
 0xe1f   :  { %3777 = vpow2.f32 %v3611_v38 }
 0xe23   :  { %v3776_v36 = vpop.eup %3775 }
 0xe24   :  { %721 = vrot.lane.b32.xlu0 %v3776_v36, %s4083_s28 }
 0xe25   :  { %v3778_v59 = vpop.eup %3777 }
 0xe26   :  { %v702_v39 = vadd.f32 1.0, %v3778_v59 }
 0xe28   :  { %3779 = vrcp.f32 %v702_v39  ;;  %v714_v45 = vand.u32 2147483648, %v702_v39  ;;  %vm708_vm11 = vweird.f32 %v702_v39  ;;  %v712_v63 = vand.u32 2147483647, %v702_v39 }
 0xe2a   :  { %v715_v47 = vor.u32 1.1754944e-38, %v714_v45  ;;  %vm713_vm13 = vcmp.eq.f32.partialorder %v712_v63, 8.507059e+37 }
 0xe2e   :  { %v3780_v40 = vpop.eup %3779 }
 0xe2f   :  { %v704_v41 = vmul.f32 %v3780_v40, %v702_v39  ;;  %vm709_vm10 = vweird.f32 %v3780_v40  ;;  %v179_v39 = vadd.f32 %v4207_v10, %v4321_v6 }
 0xe30   :  { %vm710_vm12 = vmor %vm708_vm11, %vm709_vm10 }
 0xe31   :  { %v705_v42 = vsub.f32 1.0, %v704_v41 }
 0xe33   :  { %v706_v43 = vmul.f32 %v3780_v40, %v705_v42 }
 0xe35   :  { %v707_v44 = vadd.f32 %v3780_v40, %v706_v43 }
 0xe37   :  { %v711_v46 = vsel %vm710_vm12, %v3780_v40, %v707_v44 }
 0xe38   :  { %v716_v2 = vsel %vm713_vm13, %v715_v47, %v711_v46 }
 0xe39   :  { %v719_v49 = vmul.f32 %v716_v2, %v659_v54 }
 0xe96   :  { %v722_v48 = vpop.permute.xlu0 %721 }
 0xe97   :  { %v724_v3 = vmul.f32 %v722_v48, %v716_v2 }
 0xe99   :  { %726 = vrot.lane.b32.xlu1 %v724_v3, %s4084_s29 }
 0xf0b   :  { %v727_v5 = vpop.permute.xlu1 %726 }
 0xf0c   :  { %v729_v50 = vadd.f32 %v727_v5, %v719_v49 }
 0xf0e   :  { %3781 = vtanh.f32 %v729_v50 }
 0xf14   :  { %v3782_v7 = vpop.eup %3781 }
 0xf15   :  { %732 = vrot.lane.b32.xlu2 %v3782_v7, %s4083_s28 }
 0xf6f   :  { %v733_v57 = vpop.permute.xlu2 %732 }
 0xf70   :  { %v735_v51 = vmul.f32 %v733_v57, %v716_v2 }
 0xf72   :  { %737 = vrot.lane.b32.xlu0 %v735_v51, %s4084_s29 }
 0xfe4   :  { %v738_v52 = vpop.permute.xlu0 %737 }
 0xfe5   :  { %740 = vst.msk [vmem:[#allocation3 + $0x30] sm:$0xff] %vm64_vm0, %v738_v52  ;;  %3612 = vmatmul.msk.f32.vlgmr.msrb.gmra.mxu2 %vm64_vm0, %v738_v52 }
0x1068   :  { %v765_v53 = vpop.f32.mrf.mxu2 }
0x1069   :  { %v768_v55 = vadd.f32 %v765_v53, %v176_v37 }
0x106b   :  { %3783 = vtanh.f32 %v768_v55  ;;  %v3613_v58 = vmul.f32 -1.442695, %v768_v55 }
0x106d   :  { %3785 = vpow2.f32 %v3613_v58 }
0x1071   :  { %v3784_v56 = vpop.eup %3783 }
0x1072   :  { %791 = vrot.lane.b32.xlu1 %v3784_v56, %s4083_s28 }
0x1073   :  { %v3786_v60 = vpop.eup %3785 }
0x1074   :  { %v772_v61 = vadd.f32 1.0, %v3786_v60  ;;  %v182_v60 = vadd.f32 %v4207_v10, %v4323_v8 }
0x1076   :  { %3787 = vrcp.f32 %v772_v61  ;;  %v784_v27 = vand.u32 2147483648, %v772_v61  ;;  %vm778_vm15 = vweird.f32 %v772_v61  ;;  %v782_v1 = vand.u32 2147483647, %v772_v61 }
0x1078   :  { %v785_v54 = vor.u32 1.1754944e-38, %v784_v27  ;;  %vm783_vm2 = vcmp.eq.f32.partialorder %v782_v1, 8.507059e+37 }
0x107c   :  { %v3788_v62 = vpop.eup %3787 }
0x107d   :  { %v774_v0 = vmul.f32 %v3788_v62, %v772_v61  ;;  %vm779_vm14 = vweird.f32 %v3788_v62 }
0x107e   :  { %vm780_vm1 = vmor %vm778_vm15, %vm779_vm14 }
0x107f   :  { %v775_v4 = vsub.f32 1.0, %v774_v0 }
0x1081   :  { %v776_v13 = vmul.f32 %v3788_v62, %v775_v4 }
0x1083   :  { %v777_v26 = vadd.f32 %v3788_v62, %v776_v13 }
0x1085   :  { %v781_v28 = vsel %vm780_vm1, %v3788_v62, %v777_v26 }
0x1086   :  { %v786_v30 = vsel %vm783_vm2, %v785_v54, %v781_v28 }
0x1087   :  { %v789_v32 = vmul.f32 %v786_v30, %v729_v50 }
0x10e4   :  { %v792_v29 = vpop.permute.xlu1 %791 }
0x10e5   :  { %v794_v31 = vmul.f32 %v792_v29, %v786_v30 }
0x10e7   :  { %796 = vrot.lane.b32.xlu2 %v794_v31, %s4084_s29 }
0x1141   :  { %v797_v33 = vpop.permute.xlu2 %796 }
0x1142   :  { %v799_v34 = vadd.f32 %v797_v33, %v789_v32 }
0x1144   :  { %3789 = vtanh.f32 %v799_v34 }
0x114a   :  { %v3790_v35 = vpop.eup %3789 }
0x114b   :  { %802 = vrot.lane.b32.xlu0 %v3790_v35, %s4083_s28 }
0x11bd   :  { %v803_v36 = vpop.permute.xlu0 %802 }
0x11be   :  { %v805_v38 = vmul.f32 %v803_v36, %v786_v30 }
0x11c0   :  { %807 = vrot.lane.b32.xlu1 %v805_v38, %s4084_s29 }
0x1232   :  { %v808_v59 = vpop.permute.xlu1 %807 }
0x1233   :  { %810 = vst.msk [vmem:[#allocation3 + $0x38] sm:$0xff] %vm64_vm0, %v808_v59  ;;  %3614 = vmatmul.msk.f32.vlgmr.msra.gmra.mxu3 %vm64_vm0, %v808_v59 }
0x12b6   :  { %v835_v40 = vpop.f32.mrf.mxu3 }
0x12b7   :  { %v838_v41 = vadd.f32 %v835_v40, %v179_v39  ;;  %v4438_v39 = vld [vmem:[%s5045_s2 + $0x18] sm:$0xff]  ;;  %v4443_v40 = vld [vmem:[%s5045_s2 + $0x10] sm:$0xff] }
0x12b8   :  { %970 = vmatpush.msra.mxu2 %v4438_v39  ;;  %1040 = vmatpush.msrb.mxu3 %v4438_v39 }
0x12b9   :  { %3791 = vtanh.f32 %v838_v41  ;;  %v3615_v43 = vmul.f32 -1.442695, %v838_v41  ;;  %v4450_v41 = vld [vmem:[%s5045_s2 + $0x8] sm:$0xff]  ;;  %1110 = vmatpush.msra.mxu1 %v4438_v39 }
0x12ba   :  { %971 = vmatpush.msra.mxu2 %v4443_v40  ;;  %1041 = vmatpush.msrb.mxu3 %v4443_v40 }
0x12bb   :  { %3793 = vpow2.f32 %v3615_v43  ;;  %1111 = vmatpush.msra.mxu1 %v4443_v40 }
0x12bc   :  { %972 = vmatpush.msra.mxu2 %v4450_v41  ;;  %1042 = vmatpush.msrb.mxu3 %v4450_v41 }
0x12bd   :  { %1112 = vmatpush.msra.mxu1 %v4450_v41 }
0x12bf   :  { %v3792_v42 = vpop.eup %3791 }
0x12c0   :  { %861 = vrot.lane.b32.xlu2 %v3792_v42, %s4083_s28  ;;  %v4458_v42 = vld [vmem:[%s5045_s2] sm:$0xff] }
0x12c1   :  { %v3794_v44 = vpop.eup %3793  ;;  %973 = vmatpush.msra.mxu2 %v4458_v42  ;;  %1043 = vmatpush.msrb.mxu3 %v4458_v42 }
0x12c2   :  { %v842_v45 = vadd.f32 1.0, %v3794_v44  ;;  %1113 = vmatpush.msra.mxu1 %v4458_v42 }
0x12c3   :  { %1180 = vmatpush.msrb.mxu2 %v4438_v39  ;;  %1250 = vmatpush.msra.mxu3 %v4438_v39 }
0x12c4   :  { %3795 = vrcp.f32 %v842_v45  ;;  %v854_v3 = vand.u32 2147483648, %v842_v45  ;;  %vm848_vm4 = vweird.f32 %v842_v45  ;;  %v852_v6 = vand.u32 2147483647, %v842_v45 }
0x12c5   :  { %1181 = vmatpush.msrb.mxu2 %v4443_v40  ;;  %1251 = vmatpush.msra.mxu3 %v4443_v40 }
0x12c6   :  { %v855_v5 = vor.u32 1.1754944e-38, %v854_v3  ;;  %vm853_vm6 = vcmp.eq.f32.partialorder %v852_v6, 8.507059e+37 }
0x12c7   :  { %1182 = vmatpush.msrb.mxu2 %v4450_v41  ;;  %1252 = vmatpush.msra.mxu3 %v4450_v41 }
0x12c9   :  { %1183 = vmatpush.msrb.mxu2 %v4458_v42  ;;  %1253 = vmatpush.msra.mxu3 %v4458_v42 }
0x12ca   :  { %v3796_v63 = vpop.eup %3795 }
0x12cb   :  { %v844_v46 = vmul.f32 %v3796_v63, %v842_v45  ;;  %vm849_vm3 = vweird.f32 %v3796_v63 }
0x12cc   :  { %vm850_vm5 = vmor %vm848_vm4, %vm849_vm3 }
0x12cd   :  { %v845_v47 = vsub.f32 1.0, %v844_v46 }
0x12cf   :  { %v846_v48 = vmul.f32 %v3796_v63, %v845_v47 }
0x12d1   :  { %v847_v2 = vadd.f32 %v3796_v63, %v846_v48 }
0x12d3   :  { %v851_v49 = vsel %vm850_vm5, %v3796_v63, %v847_v2  ;;  %v4489_v63 = vld [vmem:[%s5047_s3] ss:$0 sm:$0xff] }
0x12d4   :  { %v856_v7 = vsel %vm853_vm6, %v855_v5, %v851_v49  ;;  %v185_v46 = vadd.f32 %v4489_v63, %v4325_v11 }
0x12d5   :  { %v859_v51 = vmul.f32 %v856_v7, %v799_v34 }
0x131a   :  { %v862_v50 = vpop.permute.xlu2 %861 }
0x131b   :  { %v864_v57 = vmul.f32 %v862_v50, %v856_v7 }
0x131d   :  { %866 = vrot.lane.b32.xlu0 %v864_v57, %s4084_s29 }
0x138f   :  { %v867_v52 = vpop.permute.xlu0 %866 }
0x1390   :  { %v869_v37 = vadd.f32 %v867_v52, %v859_v51 }
0x1392   :  { %3797 = vtanh.f32 %v869_v37 }
0x1398   :  { %v3798_v53 = vpop.eup %3797 }
0x1399   :  { %872 = vrot.lane.b32.xlu1 %v3798_v53, %s4083_s28 }
0x140b   :  { %v873_v55 = vpop.permute.xlu1 %872 }
0x140c   :  { %v875_v56 = vmul.f32 %v873_v55, %v856_v7 }
0x140e   :  { %877 = vrot.lane.b32.xlu2 %v875_v56, %s4084_s29 }
0x1468   :  { %v878_v58 = vpop.permute.xlu2 %877 }
0x1469   :  { %880 = vst.msk [vmem:[#allocation3 + $0x40] sm:$0xff] %vm64_vm0, %v878_v58  ;;  %3616 = vmatmul.msk.f32.vlgmr.msrb.gmra.mxu1 %vm64_vm0, %v878_v58 }
0x146a   :  { %1320 = vmatpush.msrb.mxu1 %v4438_v39 }
0x146c   :  { %1321 = vmatpush.msrb.mxu1 %v4443_v40 }
0x146e   :  { %1322 = vmatpush.msrb.mxu1 %v4450_v41 }
0x1470   :  { %1323 = vmatpush.msrb.mxu1 %v4458_v42 }
0x14e6   :  { %v905_v61 = vpop.f32.mrf.mxu1 }
0x14e7   :  { %v908_v62 = vadd.f32 %v905_v61, %v182_v60 }
0x14e9   :  { %3799 = vtanh.f32 %v908_v62  ;;  %v3617_v4 = vmul.f32 -1.442695, %v908_v62 }
0x14eb   :  { %3801 = vpow2.f32 %v3617_v4 }
0x14ef   :  { %v3800_v0 = vpop.eup %3799 }
0x14f0   :  { %931 = vrot.lane.b32.xlu0 %v3800_v0, %s4083_s28 }
0x14f1   :  { %v3802_v13 = vpop.eup %3801 }
0x14f2   :  { %v912_v26 = vadd.f32 1.0, %v3802_v13 }
0x14f4   :  { %3803 = vrcp.f32 %v912_v26  ;;  %v924_v30 = vand.u32 2147483648, %v912_v26  ;;  %vm918_vm8 = vweird.f32 %v912_v26  ;;  %v922_v10 = vand.u32 2147483647, %v912_v26 }
0x14f6   :  { %v925_v31 = vor.u32 1.1754944e-38, %v924_v30  ;;  %vm923_vm10 = vcmp.eq.f32.partialorder %v922_v10, 8.507059e+37 }
0x14fa   :  { %v3804_v27 = vpop.eup %3803 }
0x14fb   :  { %v914_v1 = vmul.f32 %v3804_v27, %v912_v26  ;;  %vm919_vm7 = vweird.f32 %v3804_v27 }
0x14fc   :  { %vm920_vm9 = vmor %vm918_vm8, %vm919_vm7 }
0x14fd   :  { %v915_v28 = vsub.f32 1.0, %v914_v1 }
0x14ff   :  { %v916_v54 = vmul.f32 %v3804_v27, %v915_v28 }
0x1501   :  { %v917_v29 = vadd.f32 %v3804_v27, %v916_v54 }
0x1503   :  { %v921_v8 = vsel %vm920_vm9, %v3804_v27, %v917_v29  ;;  %v188_v27 = vadd.f32 %v4489_v63, %v4327_v12 }
0x1504   :  { %v926_v33 = vsel %vm923_vm10, %v925_v31, %v921_v8 }
0x1505   :  { %v929_v35 = vmul.f32 %v926_v33, %v869_v37 }
0x1562   :  { %v932_v32 = vpop.permute.xlu0 %931 }
0x1563   :  { %v934_v34 = vmul.f32 %v932_v32, %v926_v33 }
0x1565   :  { %936 = vrot.lane.b32.xlu1 %v934_v34, %s4084_s29 }
0x15d7   :  { %v937_v36 = vpop.permute.xlu1 %936 }
0x15d8   :  { %v4431_v38 = vadd.f32 %v937_v36, %v929_v35 }
0x15da   :  { %3805 = vtanh.f32 %v4431_v38 }
0x15e0   :  { %v3806_v59 = vpop.eup %3805 }
0x15e1   :  { %942 = vrot.lane.b32.xlu2 %v3806_v59, %s4083_s28 }
0x163b   :  { %v943_v43 = vpop.permute.xlu2 %942 }
0x163c   :  { %v945_v44 = vmul.f32 %v943_v43, %v926_v33 }
0x163e   :  { %947 = vrot.lane.b32.xlu0 %v945_v44, %s4084_s29 }
0x16b0   :  { %v948_v45 = vpop.permute.xlu0 %947 }
0x16b1   :  { %950 = vst.msk [vmem:[#allocation3 + $0x48] sm:$0xff] %vm64_vm0, %v948_v45  ;;  %3618 = vmatmul.msk.f32.vlgmr.msra.gmra.mxu2 %vm64_vm0, %v948_v45 }
0x16b2   :  { %1390 = vmatpush.msra.mxu2 %v4438_v39 }
0x16b4   :  { %1391 = vmatpush.msra.mxu2 %v4443_v40 }
0x16b6   :  { %1392 = vmatpush.msra.mxu2 %v4450_v41 }
0x16b8   :  { %1393 = vmatpush.msra.mxu2 %v4458_v42 }
0x1734   :  { %v975_v47 = vpop.f32.mrf.mxu2 }
0x1735   :  { %v978_v48 = vadd.f32 %v975_v47, %v185_v46 }
0x1737   :  { %3807 = vtanh.f32 %v978_v48  ;;  %v3619_v3 = vmul.f32 -1.442695, %v978_v48 }
0x1739   :  { %3809 = vpow2.f32 %v3619_v3 }
0x173d   :  { %v3808_v2 = vpop.eup %3807 }
0x173e   :  { %1001 = vrot.lane.b32.xlu1 %v3808_v2, %s4083_s28 }
0x173f   :  { %v3810_v6 = vpop.eup %3809 }
0x1740   :  { %v982_v49 = vadd.f32 1.0, %v3810_v6 }
0x1742   :  { %3811 = vrcp.f32 %v982_v49  ;;  %v994_v52 = vand.u32 2147483648, %v982_v49  ;;  %vm988_vm12 = vweird.f32 %v982_v49  ;;  %v992_v11 = vand.u32 2147483647, %v982_v49 }
0x1744   :  { %v995_v53 = vor.u32 1.1754944e-38, %v994_v52  ;;  %vm993_vm14 = vcmp.eq.f32.partialorder %v992_v11, 8.507059e+37 }
0x1748   :  { %v3812_v5 = vpop.eup %3811 }
0x1749   :  { %v984_v50 = vmul.f32 %v3812_v5, %v982_v49  ;;  %vm989_vm11 = vweird.f32 %v3812_v5  ;;  %v191_v49 = vadd.f32 %v4489_v63, %v4331_v14 }
0x174a   :  { %vm990_vm13 = vmor %vm988_vm12, %vm989_vm11 }
0x174b   :  { %v985_v7 = vsub.f32 1.0, %v984_v50 }
0x174d   :  { %v986_v57 = vmul.f32 %v3812_v5, %v985_v7 }
0x174f   :  { %v987_v51 = vadd.f32 %v3812_v5, %v986_v57 }
0x1751   :  { %v991_v37 = vsel %vm990_vm13, %v3812_v5, %v987_v51 }
0x1752   :  { %v996_v56 = vsel %vm993_vm14, %v995_v53, %v991_v37 }
0x1753   :  { %v999_v60 = vmul.f32 %v996_v56, %v4431_v38 }
0x17b0   :  { %v1002_v55 = vpop.permute.xlu1 %1001 }
0x17b1   :  { %v1004_v58 = vmul.f32 %v1002_v55, %v996_v56 }
0x17b3   :  { %1006 = vrot.lane.b32.xlu2 %v1004_v58, %s4084_s29 }
0x180d   :  { %v1007_v61 = vpop.permute.xlu2 %1006 }
0x180e   :  { %v1009_v62 = vadd.f32 %v1007_v61, %v999_v60 }
0x1810   :  { %3813 = vtanh.f32 %v1009_v62 }
0x1816   :  { %v3814_v0 = vpop.eup %3813 }
0x1817   :  { %1012 = vrot.lane.b32.xlu0 %v3814_v0, %s4083_s28 }
0x1889   :  { %v1013_v4 = vpop.permute.xlu0 %1012 }
0x188a   :  { %v1015_v13 = vmul.f32 %v1013_v4, %v996_v56 }
0x188c   :  { %1017 = vrot.lane.b32.xlu1 %v1015_v13, %s4084_s29 }
0x18fe   :  { %v1018_v26 = vpop.permute.xlu1 %1017 }
0x18ff   :  { %1020 = vst.msk [vmem:[#allocation3 + $0x50] sm:$0xff] %vm64_vm0, %v1018_v26  ;;  %3620 = vmatmul.msk.f32.vlgmr.msrb.gmra.mxu3 %vm64_vm0, %v1018_v26 }
0x1900   :  { %1460 = vmatpush.msrb.mxu3 %v4438_v39 }
0x1902   :  { %1461 = vmatpush.msrb.mxu3 %v4443_v40 }
0x1904   :  { %1462 = vmatpush.msrb.mxu3 %v4450_v41 }
0x1906   :  { %1463 = vmatpush.msrb.mxu3 %v4458_v42 }
0x1982   :  { %v1045_v1 = vpop.f32.mrf.mxu3 }
0x1983   :  { %v1048_v28 = vadd.f32 %v1045_v1, %v188_v27 }
0x1985   :  { %3815 = vtanh.f32 %v1048_v28  ;;  %v3621_v29 = vmul.f32 -1.442695, %v1048_v28 }
0x1987   :  { %3817 = vpow2.f32 %v3621_v29 }
0x198b   :  { %v3816_v54 = vpop.eup %3815 }
0x198c   :  { %1071 = vrot.lane.b32.xlu2 %v3816_v54, %s4083_s28 }
0x198d   :  { %v3818_v30 = vpop.eup %3817 }
0x198e   :  { %v1052_v10 = vadd.f32 1.0, %v3818_v30  ;;  %v194_v30 = vadd.f32 %v4489_v63, %v4333_v15 }
0x1990   :  { %3819 = vrcp.f32 %v1052_v10  ;;  %v1064_v35 = vand.u32 2147483648, %v1052_v10  ;;  %vm1058_vm1 = vweird.f32 %v1052_v10  ;;  %v1062_v12 = vand.u32 2147483647, %v1052_v10 }
0x1992   :  { %v1065_v38 = vor.u32 1.1754944e-38, %v1064_v35  ;;  %vm1063_vm3 = vcmp.eq.f32.partialorder %v1062_v12, 8.507059e+37 }
0x1996   :  { %v3820_v8 = vpop.eup %3819 }
0x1997   :  { %v1054_v31 = vmul.f32 %v3820_v8, %v1052_v10  ;;  %vm1059_vm15 = vweird.f32 %v3820_v8 }
0x1998   :  { %vm1060_vm2 = vmor %vm1058_vm1, %vm1059_vm15 }
0x1999   :  { %v1055_v32 = vsub.f32 1.0, %v1054_v31 }
0x199b   :  { %v1056_v33 = vmul.f32 %v3820_v8, %v1055_v32 }
0x199d   :  { %v1057_v34 = vadd.f32 %v3820_v8, %v1056_v33 }
0x199f   :  { %v1061_v36 = vsel %vm1060_vm2, %v3820_v8, %v1057_v34 }
0x19a0   :  { %v1066_v43 = vsel %vm1063_vm3, %v1065_v38, %v1061_v36 }
0x19a1   :  { %v1069_v45 = vmul.f32 %v1066_v43, %v1009_v62 }
0x19e6   :  { %v1072_v59 = vpop.permute.xlu2 %1071 }
0x19e7   :  { %v1074_v44 = vmul.f32 %v1072_v59, %v1066_v43 }
0x19e9   :  { %1076 = vrot.lane.b32.xlu0 %v1074_v44, %s4084_s29 }
0x1a5b   :  { %v1077_v46 = vpop.permute.xlu0 %1076 }
0x1a5c   :  { %v1079_v47 = vadd.f32 %v1077_v46, %v1069_v45 }
0x1a5e   :  { %3821 = vtanh.f32 %v1079_v47 }
0x1a64   :  { %v3822_v48 = vpop.eup %3821 }
0x1a65   :  { %1082 = vrot.lane.b32.xlu1 %v3822_v48, %s4083_s28 }
0x1ad7   :  { %v1083_v2 = vpop.permute.xlu1 %1082 }
0x1ad8   :  { %v1085_v3 = vmul.f32 %v1083_v2, %v1066_v43 }
0x1ada   :  { %1087 = vrot.lane.b32.xlu2 %v1085_v3, %s4084_s29 }
0x1b34   :  { %v1088_v6 = vpop.permute.xlu2 %1087 }
0x1b35   :  { %1090 = vst.msk [vmem:[#allocation3 + $0x58] sm:$0xff] %vm64_vm0, %v1088_v6  ;;  %3622 = vmatmul.msk.f32.vlgmr.msra.gmra.mxu1 %vm64_vm0, %v1088_v6 }
0x1b36   :  { %1530 = vmatpush.msra.mxu1 %v4438_v39 }
0x1b38   :  { %1531 = vmatpush.msra.mxu1 %v4443_v40 }
0x1b3a   :  { %1532 = vmatpush.msra.mxu1 %v4450_v41 }
0x1b3c   :  { %1533 = vmatpush.msra.mxu1 %v4458_v42 }
0x1bb2   :  { %v1115_v5 = vpop.f32.mrf.mxu1 }
0x1bb3   :  { %v1118_v50 = vadd.f32 %v1115_v5, %v191_v49 }
0x1bb5   :  { %3823 = vtanh.f32 %v1118_v50  ;;  %v3623_v57 = vmul.f32 -1.442695, %v1118_v50 }
0x1bb7   :  { %3825 = vpow2.f32 %v3623_v57  ;;  %v197_v57 = vadd.f32 %v4489_v63, %v4335_v16 }
0x1bbb   :  { %v3824_v7 = vpop.eup %3823 }
0x1bbc   :  { %1141 = vrot.lane.b32.xlu0 %v3824_v7, %s4083_s28 }
0x1bbd   :  { %v3826_v51 = vpop.eup %3825 }
0x1bbe   :  { %v1122_v52 = vadd.f32 1.0, %v3826_v51 }
0x1bc0   :  { %3827 = vrcp.f32 %v1122_v52  ;;  %v1134_v58 = vand.u32 2147483648, %v1122_v52  ;;  %vm1128_vm5 = vweird.f32 %v1122_v52  ;;  %v1132_v14 = vand.u32 2147483647, %v1122_v52 }
0x1bc2   :  { %v1135_v61 = vor.u32 1.1754944e-38, %v1134_v58  ;;  %vm1133_vm7 = vcmp.eq.f32.partialorder %v1132_v14, 8.507059e+37 }
0x1bc6   :  { %v3828_v11 = vpop.eup %3827 }
0x1bc7   :  { %v1124_v37 = vmul.f32 %v3828_v11, %v1122_v52  ;;  %vm1129_vm4 = vweird.f32 %v3828_v11 }
0x1bc8   :  { %vm1130_vm6 = vmor %vm1128_vm5, %vm1129_vm4 }
0x1bc9   :  { %v1125_v53 = vsub.f32 1.0, %v1124_v37 }
0x1bcb   :  { %v1126_v55 = vmul.f32 %v3828_v11, %v1125_v53 }
0x1bcd   :  { %v1127_v56 = vadd.f32 %v3828_v11, %v1126_v55 }
0x1bcf   :  { %v1131_v60 = vsel %vm1130_vm6, %v3828_v11, %v1127_v56 }
0x1bd0   :  { %v1136_v0 = vsel %vm1133_vm7, %v1135_v61, %v1131_v60 }
0x1bd1   :  { %v1139_v13 = vmul.f32 %v1136_v0, %v1079_v47 }
0x1c2e   :  { %v1142_v62 = vpop.permute.xlu0 %1141 }
0x1c2f   :  { %v1144_v4 = vmul.f32 %v1142_v62, %v1136_v0 }
0x1c31   :  { %1146 = vrot.lane.b32.xlu1 %v1144_v4, %s4084_s29 }
0x1ca3   :  { %v1147_v26 = vpop.permute.xlu1 %1146 }
0x1ca4   :  { %v1149_v27 = vadd.f32 %v1147_v26, %v1139_v13 }
0x1ca6   :  { %3829 = vtanh.f32 %v1149_v27 }
0x1cac   :  { %v3830_v1 = vpop.eup %3829 }
0x1cad   :  { %1152 = vrot.lane.b32.xlu2 %v3830_v1, %s4083_s28 }
0x1d07   :  { %v1153_v28 = vpop.permute.xlu2 %1152 }
0x1d08   :  { %v1155_v54 = vmul.f32 %v1153_v28, %v1136_v0 }
0x1d0a   :  { %1157 = vrot.lane.b32.xlu0 %v1155_v54, %s4084_s29 }
0x1d7c   :  { %v1158_v29 = vpop.permute.xlu0 %1157 }
0x1d7d   :  { %1160 = vst.msk [vmem:[#allocation3 + $0x60] sm:$0xff] %vm64_vm0, %v1158_v29  ;;  %3624 = vmatmul.msk.f32.vlgmr.msrb.gmra.mxu2 %vm64_vm0, %v1158_v29 }
0x1d7e   :  { %1600 = vmatpush.msrb.mxu2 %v4438_v39 }
0x1d80   :  { %1601 = vmatpush.msrb.mxu2 %v4443_v40 }
0x1d82   :  { %1602 = vmatpush.msrb.mxu2 %v4450_v41 }
0x1d84   :  { %1603 = vmatpush.msrb.mxu2 %v4458_v42 }
0x1e00   :  { %v1185_v10 = vpop.f32.mrf.mxu2 }
0x1e01   :  { %v1188_v8 = vadd.f32 %v1185_v10, %v194_v30 }
0x1e03   :  { %3831 = vtanh.f32 %v1188_v8  ;;  %v3625_v32 = vmul.f32 -1.442695, %v1188_v8 }
0x1e05   :  { %3833 = vpow2.f32 %v3625_v32 }
0x1e09   :  { %v3832_v31 = vpop.eup %3831 }
0x1e0a   :  { %1211 = vrot.lane.b32.xlu1 %v3832_v31, %s4083_s28  ;;  %v200_v31 = vadd.f32 %v4489_v63, %v4337_v17 }
0x1e0b   :  { %v3834_v33 = vpop.eup %3833 }
0x1e0c   :  { %v1192_v34 = vadd.f32 1.0, %v3834_v33 }
0x1e0e   :  { %3835 = vrcp.f32 %v1192_v34  ;;  %v1204_v43 = vand.u32 2147483648, %v1192_v34  ;;  %vm1198_vm9 = vweird.f32 %v1192_v34  ;;  %v1202_v15 = vand.u32 2147483647, %v1192_v34 }
0x1e10   :  { %v1205_v45 = vor.u32 1.1754944e-38, %v1204_v43  ;;  %vm1203_vm11 = vcmp.eq.f32.partialorder %v1202_v15, 8.507059e+37 }
0x1e14   :  { %v3836_v35 = vpop.eup %3835 }
0x1e15   :  { %v1194_v12 = vmul.f32 %v3836_v35, %v1192_v34  ;;  %vm1199_vm8 = vweird.f32 %v3836_v35 }
0x1e16   :  { %vm1200_vm10 = vmor %vm1198_vm9, %vm1199_vm8 }
0x1e17   :  { %v1195_v36 = vsub.f32 1.0, %v1194_v12 }
0x1e19   :  { %v1196_v38 = vmul.f32 %v3836_v35, %v1195_v36 }
0x1e1b   :  { %v1197_v59 = vadd.f32 %v3836_v35, %v1196_v38 }
0x1e1d   :  { %v1201_v44 = vsel %vm1200_vm10, %v3836_v35, %v1197_v59 }
0x1e1e   :  { %v1206_v47 = vsel %vm1203_vm11, %v1205_v45, %v1201_v44 }
0x1e1f   :  { %v1209_v2 = vmul.f32 %v1206_v47, %v1149_v27 }
0x1e7c   :  { %v1212_v46 = vpop.permute.xlu1 %1211 }
0x1e7d   :  { %v1214_v48 = vmul.f32 %v1212_v46, %v1206_v47 }
0x1e7f   :  { %1216 = vrot.lane.b32.xlu2 %v1214_v48, %s4084_s29 }
0x1ed9   :  { %v1217_v3 = vpop.permute.xlu2 %1216 }
0x1eda   :  { %v1219_v6 = vadd.f32 %v1217_v3, %v1209_v2 }
0x1edc   :  { %3837 = vtanh.f32 %v1219_v6 }
0x1ee2   :  { %v3838_v49 = vpop.eup %3837 }
0x1ee3   :  { %1222 = vrot.lane.b32.xlu0 %v3838_v49, %s4083_s28 }
0x1f55   :  { %v1223_v5 = vpop.permute.xlu0 %1222 }
0x1f56   :  { %v1225_v50 = vmul.f32 %v1223_v5, %v1206_v47 }
0x1f58   :  { %1227 = vrot.lane.b32.xlu1 %v1225_v50, %s4084_s29  ;;  %v203_v50 = vadd.f32 %v4489_v63, %v4339_v18 }
0x1fca   :  { %v1228_v7 = vpop.permute.xlu1 %1227 }
0x1fcb   :  { %1230 = vst.msk [vmem:[#allocation3 + $0x68] sm:$0xff] %vm64_vm0, %v1228_v7  ;;  %3626 = vmatmul.msk.f32.vlgmr.msra.gmra.mxu3 %vm64_vm0, %v1228_v7 }
0x1fcc   :  { %1670 = vmatpush.msra.mxu3 %v4438_v39 }
0x1fce   :  { %1671 = vmatpush.msra.mxu3 %v4443_v40 }
0x1fd0   :  { %1672 = vmatpush.msra.mxu3 %v4450_v41 }
0x1fd2   :  { %1673 = vmatpush.msra.mxu3 %v4458_v42 }
0x204e   :  { %v1255_v51 = vpop.f32.mrf.mxu3 }
0x204f   :  { %v1258_v52 = vadd.f32 %v1255_v51, %v197_v57 }
0x2051   :  { %3839 = vtanh.f32 %v1258_v52  ;;  %v3627_v37 = vmul.f32 -1.442695, %v1258_v52 }
0x2053   :  { %3841 = vpow2.f32 %v3627_v37 }
0x2057   :  { %v3840_v11 = vpop.eup %3839 }
0x2058   :  { %1281 = vrot.lane.b32.xlu2 %v3840_v11, %s4083_s28 }
0x2059   :  { %v3842_v53 = vpop.eup %3841 }
0x205a   :  { %v1262_v55 = vadd.f32 1.0, %v3842_v53 }
0x205c   :  { %3843 = vrcp.f32 %v1262_v55  ;;  %v1274_v62 = vand.u32 2147483648, %v1262_v55  ;;  %vm1268_vm13 = vweird.f32 %v1262_v55  ;;  %v1272_v16 = vand.u32 2147483647, %v1262_v55 }
0x205e   :  { %v1275_v4 = vor.u32 1.1754944e-38, %v1274_v62  ;;  %vm1273_vm15 = vcmp.eq.f32.partialorder %v1272_v16, 8.507059e+37 }
0x2062   :  { %v3844_v56 = vpop.eup %3843 }
0x2063   :  { %v1264_v58 = vmul.f32 %v3844_v56, %v1262_v55  ;;  %vm1269_vm12 = vweird.f32 %v3844_v56 }
0x2064   :  { %vm1270_vm14 = vmor %vm1268_vm13, %vm1269_vm12 }
0x2065   :  { %v1265_v14 = vsub.f32 1.0, %v1264_v58 }
0x2067   :  { %v1266_v60 = vmul.f32 %v3844_v56, %v1265_v14 }
0x2069   :  { %v1267_v61 = vadd.f32 %v3844_v56, %v1266_v60 }
0x206b   :  { %v1271_v0 = vsel %vm1270_vm14, %v3844_v56, %v1267_v61 }
0x206c   :  { %v1276_v26 = vsel %vm1273_vm15, %v1275_v4, %v1271_v0 }
0x206d   :  { %v1279_v1 = vmul.f32 %v1276_v26, %v1219_v6 }
0x20b2   :  { %v1282_v13 = vpop.permute.xlu2 %1281 }
0x20b3   :  { %v1284_v27 = vmul.f32 %v1282_v13, %v1276_v26 }
0x20b5   :  { %1286 = vrot.lane.b32.xlu0 %v1284_v27, %s4084_s29 }
0x2127   :  { %v1287_v28 = vpop.permute.xlu0 %1286 }
0x2128   :  { %v1289_v54 = vadd.f32 %v1287_v28, %v1279_v1 }
0x212a   :  { %3845 = vtanh.f32 %v1289_v54 }
0x2130   :  { %v3846_v29 = vpop.eup %3845 }
0x2131   :  { %1292 = vrot.lane.b32.xlu1 %v3846_v29, %s4083_s28 }
0x21a3   :  { %v1293_v30 = vpop.permute.xlu1 %1292 }
0x21a4   :  { %v1295_v10 = vmul.f32 %v1293_v30, %v1276_v26  ;;  %v206_v30 = vadd.f32 %v4489_v63, %v4341_v19 }
0x21a6   :  { %1297 = vrot.lane.b32.xlu2 %v1295_v10, %s4084_s29 }
0x2200   :  { %v1298_v8 = vpop.permute.xlu2 %1297 }
0x2201   :  { %1300 = vst.msk [vmem:[#allocation3 + $0x70] sm:$0xff] %vm64_vm0, %v1298_v8  ;;  %3628 = vmatmul.msk.f32.vlgmr.msrb.gmra.mxu1 %vm64_vm0, %v1298_v8 }
0x2202   :  { %1740 = vmatpush.msrb.mxu1 %v4438_v39 }
0x2204   :  { %1741 = vmatpush.msrb.mxu1 %v4443_v40 }
0x2206   :  { %1742 = vmatpush.msrb.mxu1 %v4450_v41 }
0x2208   :  { %1743 = vmatpush.msrb.mxu1 %v4458_v42 }
0x227e   :  { %v1325_v32 = vpop.f32.mrf.mxu1 }
0x227f   :  { %v1328_v33 = vadd.f32 %v1325_v32, %v200_v31 }
0x2281   :  { %3847 = vtanh.f32 %v1328_v33  ;;  %v3629_v35 = vmul.f32 -1.442695, %v1328_v33 }
0x2283   :  { %3849 = vpow2.f32 %v3629_v35 }
0x2287   :  { %v3848_v34 = vpop.eup %3847 }
0x2288   :  { %1351 = vrot.lane.b32.xlu0 %v3848_v34, %s4083_s28 }
0x2289   :  { %v3850_v12 = vpop.eup %3849 }
0x228a   :  { %v1332_v36 = vadd.f32 1.0, %v3850_v12 }
0x228c   :  { %3851 = vrcp.f32 %v1332_v36  ;;  %v1344_v42 = vand.u32 2147483648, %v1332_v36  ;;  %vm1338_vm2 = vweird.f32 %v1332_v36  ;;  %v1342_v17 = vand.u32 2147483647, %v1332_v36 }
0x228e   :  { %v1345_v15 = vor.u32 1.1754944e-38, %v1344_v42  ;;  %vm1343_vm4 = vcmp.eq.f32.partialorder %v1342_v17, 8.507059e+37 }
0x2292   :  { %v3852_v39 = vpop.eup %3851 }
0x2293   :  { %v1334_v40 = vmul.f32 %v3852_v39, %v1332_v36  ;;  %vm1339_vm1 = vweird.f32 %v3852_v39 }
0x2294   :  { %vm1340_vm3 = vmor %vm1338_vm2, %vm1339_vm1 }
0x2295   :  { %v1335_v38 = vsub.f32 1.0, %v1334_v40 }
0x2297   :  { %v1336_v41 = vmul.f32 %v3852_v39, %v1335_v38 }
0x2299   :  { %v1337_v59 = vadd.f32 %v3852_v39, %v1336_v41 }
0x229b   :  { %v1341_v43 = vsel %vm1340_vm3, %v3852_v39, %v1337_v59 }
0x229c   :  { %v1346_v45 = vsel %vm1343_vm4, %v1345_v15, %v1341_v43 }
0x229d   :  { %v1349_v47 = vmul.f32 %v1346_v45, %v1289_v54 }
0x22fa   :  { %v1352_v44 = vpop.permute.xlu0 %1351 }
0x22fb   :  { %v1354_v46 = vmul.f32 %v1352_v44, %v1346_v45 }
0x22fd   :  { %1356 = vrot.lane.b32.xlu1 %v1354_v46, %s4084_s29 }
0x236f   :  { %v1357_v48 = vpop.permute.xlu1 %1356 }
0x2370   :  { %v1359_v2 = vadd.f32 %v1357_v48, %v1349_v47 }
0x2372   :  { %3853 = vtanh.f32 %v1359_v2 }
0x2378   :  { %v3854_v3 = vpop.eup %3853 }
0x2379   :  { %1362 = vrot.lane.b32.xlu2 %v3854_v3, %s4083_s28  ;;  %v209_v3 = vadd.f32 %v4489_v63, %v4343_v20 }
0x23d3   :  { %v1363_v6 = vpop.permute.xlu2 %1362 }
0x23d4   :  { %v1365_v49 = vmul.f32 %v1363_v6, %v1346_v45 }
0x23d6   :  { %1367 = vrot.lane.b32.xlu0 %v1365_v49, %s4084_s29 }
0x2448   :  { %v1368_v5 = vpop.permute.xlu0 %1367 }
0x2449   :  { %1370 = vst.msk [vmem:[#allocation3 + $0x78] sm:$0xff] %vm64_vm0, %v1368_v5  ;;  %3630 = vmatmul.msk.f32.vlgmr.msra.gmra.mxu2 %vm64_vm0, %v1368_v5 }
0x24cc   :  { %v1395_v7 = vpop.f32.mrf.mxu2 }
0x24cd   :  { %v1398_v57 = vadd.f32 %v1395_v7, %v203_v50 }
0x24cf   :  { %3855 = vtanh.f32 %v1398_v57  ;;  %v3631_v52 = vmul.f32 -1.442695, %v1398_v57 }
0x24d1   :  { %3857 = vpow2.f32 %v3631_v52 }
0x24d5   :  { %v3856_v51 = vpop.eup %3855 }
0x24d6   :  { %1421 = vrot.lane.b32.xlu1 %v3856_v51, %s4083_s28 }
0x24d7   :  { %v3858_v11 = vpop.eup %3857 }
0x24d8   :  { %v1402_v37 = vadd.f32 1.0, %v3858_v11 }
0x24da   :  { %3859 = vrcp.f32 %v1402_v37  ;;  %v1414_v60 = vand.u32 2147483648, %v1402_v37  ;;  %vm1408_vm6 = vweird.f32 %v1402_v37  ;;  %v1412_v18 = vand.u32 2147483647, %v1402_v37 }
0x24dc   :  { %v1415_v62 = vor.u32 1.1754944e-38, %v1414_v60  ;;  %vm1413_vm8 = vcmp.eq.f32.partialorder %v1412_v18, 8.507059e+37 }
0x24e0   :  { %v3860_v53 = vpop.eup %3859 }
0x24e1   :  { %v1404_v55 = vmul.f32 %v3860_v53, %v1402_v37  ;;  %vm1409_vm5 = vweird.f32 %v3860_v53 }
0x24e2   :  { %vm1410_vm7 = vmor %vm1408_vm6, %vm1409_vm5 }
0x24e3   :  { %v1405_v56 = vsub.f32 1.0, %v1404_v55 }
0x24e5   :  { %v1406_v58 = vmul.f32 %v3860_v53, %v1405_v56 }
0x24e7   :  { %v1407_v14 = vadd.f32 %v3860_v53, %v1406_v58 }
0x24e9   :  { %v1411_v61 = vsel %vm1410_vm7, %v3860_v53, %v1407_v14 }
0x24ea   :  { %v1416_v0 = vsel %vm1413_vm8, %v1415_v62, %v1411_v61 }
0x24eb   :  { %v1419_v13 = vmul.f32 %v1416_v0, %v1359_v2 }
0x2548   :  { %v1422_v16 = vpop.permute.xlu1 %1421 }
0x2549   :  { %v1424_v4 = vmul.f32 %v1422_v16, %v1416_v0 }
0x254b   :  { %1426 = vrot.lane.b32.xlu2 %v1424_v4, %s4084_s29 }
0x25a5   :  { %v1427_v26 = vpop.permute.xlu2 %1426 }
0x25a6   :  { %v1429_v27 = vadd.f32 %v1427_v26, %v1419_v13 }
0x25a8   :  { %3861 = vtanh.f32 %v1429_v27 }
0x25ae   :  { %v3862_v1 = vpop.eup %3861 }
0x25af   :  { %1432 = vrot.lane.b32.xlu0 %v3862_v1, %s4083_s28 }
0x2621   :  { %v1433_v28 = vpop.permute.xlu0 %1432 }
0x2622   :  { %v1435_v54 = vmul.f32 %v1433_v28, %v1416_v0 }
0x2624   :  { %1437 = vrot.lane.b32.xlu1 %v1435_v54, %s4084_s29 }
0x2696   :  { %v1438_v29 = vpop.permute.xlu1 %1437 }
0x2697   :  { %1440 = vst.msk [vmem:[#allocation3 + $0x80] sm:$0xff] %vm64_vm0, %v1438_v29  ;;  %3632 = vmatmul.msk.f32.vlgmr.msrb.gmra.mxu3 %vm64_vm0, %v1438_v29 }
0x271a   :  { %v1465_v10 = vpop.f32.mrf.mxu3 }
0x271b   :  { %v1468_v8 = vadd.f32 %v1465_v10, %v206_v30 }
0x271d   :  { %3863 = vtanh.f32 %v1468_v8  ;;  %v3633_v32 = vmul.f32 -1.442695, %v1468_v8 }
0x271f   :  { %3865 = vpow2.f32 %v3633_v32 }
0x2723   :  { %v3864_v31 = vpop.eup %3863 }
0x2724   :  { %1491 = vrot.lane.b32.xlu2 %v3864_v31, %s4083_s28 }
0x2725   :  { %v3866_v33 = vpop.eup %3865 }
0x2726   :  { %v1472_v34 = vadd.f32 1.0, %v3866_v33 }
0x2728   :  { %3867 = vrcp.f32 %v1472_v34  ;;  %v1484_v38 = vand.u32 2147483648, %v1472_v34  ;;  %vm1478_vm10 = vweird.f32 %v1472_v34  ;;  %v1482_v19 = vand.u32 2147483647, %v1472_v34 }
0x272a   :  { %v1485_v59 = vor.u32 1.1754944e-38, %v1484_v38  ;;  %vm1483_vm12 = vcmp.eq.f32.partialorder %v1482_v19, 8.507059e+37 }
0x272e   :  { %v3868_v35 = vpop.eup %3867 }
0x272f   :  { %v1474_v12 = vmul.f32 %v3868_v35, %v1472_v34  ;;  %vm1479_vm9 = vweird.f32 %v3868_v35 }
0x2730   :  { %vm1480_vm11 = vmor %vm1478_vm10, %vm1479_vm9 }
0x2731   :  { %v1475_v36 = vsub.f32 1.0, %v1474_v12 }
0x2733   :  { %v1476_v39 = vmul.f32 %v3868_v35, %v1475_v36 }
0x2735   :  { %v1477_v40 = vadd.f32 %v3868_v35, %v1476_v39 }
0x2737   :  { %v1481_v41 = vsel %vm1480_vm11, %v3868_v35, %v1477_v40 }
0x2738   :  { %v1486_v17 = vsel %vm1483_vm12, %v1485_v59, %v1481_v41 }
0x2739   :  { %v1489_v15 = vmul.f32 %v1486_v17, %v1429_v27  ;;  %v212_v27 = vadd.f32 %v4489_v63, %v4345_v21 }
0x277e   :  { %v1492_v42 = vpop.permute.xlu2 %1491 }
0x277f   :  { %v1494_v43 = vmul.f32 %v1492_v42, %v1486_v17 }
0x2781   :  { %1496 = vrot.lane.b32.xlu0 %v1494_v43, %s4084_s29 }
0x27f3   :  { %v1497_v44 = vpop.permute.xlu0 %1496 }
0x27f4   :  { %v1499_v45 = vadd.f32 %v1497_v44, %v1489_v15  ;;  %v215_v44 = vadd.f32 %v4489_v63, %v4347_v22 }
0x27f6   :  { %3869 = vtanh.f32 %v1499_v45 }
0x27fc   :  { %v3870_v46 = vpop.eup %3869 }
0x27fd   :  { %1502 = vrot.lane.b32.xlu1 %v3870_v46, %s4083_s28 }
0x286f   :  { %v1503_v47 = vpop.permute.xlu1 %1502 }
0x2870   :  { %v1505_v48 = vmul.f32 %v1503_v47, %v1486_v17 }
0x2872   :  { %1507 = vrot.lane.b32.xlu2 %v1505_v48, %s4084_s29 }
0x28cc   :  { %v1508_v2 = vpop.permute.xlu2 %1507 }
0x28cd   :  { %1510 = vst.msk [vmem:[#allocation3 + $0x88] sm:$0xff] %vm64_vm0, %v1508_v2  ;;  %3634 = vmatmul.msk.f32.vlgmr.msra.gmra.mxu1 %vm64_vm0, %v1508_v2 }
0x294a   :  { %v1535_v6 = vpop.f32.mrf.mxu1 }
0x294b   :  { %v1538_v49 = vadd.f32 %v1535_v6, %v209_v3 }
0x294d   :  { %3871 = vtanh.f32 %v1538_v49  ;;  %v3635_v50 = vmul.f32 -1.442695, %v1538_v49 }
0x294f   :  { %3873 = vpow2.f32 %v3635_v50 }
0x2953   :  { %v3872_v5 = vpop.eup %3871 }
0x2954   :  { %1561 = vrot.lane.b32.xlu0 %v3872_v5, %s4083_s28 }
0x2955   :  { %v3874_v7 = vpop.eup %3873 }
0x2956   :  { %v1542_v57 = vadd.f32 1.0, %v3874_v7 }
0x2958   :  { %3875 = vrcp.f32 %v1542_v57  ;;  %v1554_v55 = vand.u32 2147483648, %v1542_v57  ;;  %vm1548_vm14 = vweird.f32 %v1542_v57  ;;  %v1552_v20 = vand.u32 2147483647, %v1542_v57 }
0x295a   :  { %v1555_v58 = vor.u32 1.1754944e-38, %v1554_v55  ;;  %vm1553_vm1 = vcmp.eq.f32.partialorder %v1552_v20, 8.507059e+37 }
0x295e   :  { %v3876_v51 = vpop.eup %3875 }
0x295f   :  { %v1544_v52 = vmul.f32 %v3876_v51, %v1542_v57  ;;  %vm1549_vm13 = vweird.f32 %v3876_v51 }
0x2960   :  { %vm1550_vm15 = vmor %vm1548_vm14, %vm1549_vm13 }
0x2961   :  { %v1545_v11 = vsub.f32 1.0, %v1544_v52 }
0x2963   :  { %v1546_v37 = vmul.f32 %v3876_v51, %v1545_v11 }
0x2965   :  { %v1547_v53 = vadd.f32 %v3876_v51, %v1546_v37 }
0x2967   :  { %v1551_v56 = vsel %vm1550_vm15, %v3876_v51, %v1547_v53 }
0x2968   :  { %v1556_v60 = vsel %vm1553_vm1, %v1555_v58, %v1551_v56 }
0x2969   :  { %v1559_v61 = vmul.f32 %v1556_v60, %v1499_v45 }
0x29c6   :  { %v1562_v14 = vpop.permute.xlu0 %1561 }
0x29c7   :  { %v1564_v18 = vmul.f32 %v1562_v14, %v1556_v60 }
0x29c9   :  { %1566 = vrot.lane.b32.xlu1 %v1564_v18, %s4084_s29  ;;  %v4604_v18 = vld [vmem:[%s5048_s4 + $0x18] sm:$0xff] }
0x29ca   :  { %2047 = vmatpush.msra.mxu1 %v4604_v18 }
0x2a3b   :  { %v1567_v62 = vpop.permute.xlu1 %1566 }
0x2a3c   :  { %v1569_v16 = vadd.f32 %v1567_v62, %v1559_v61  ;;  %v4609_v61 = vld [vmem:[%s5048_s4 + $0x10] sm:$0xff]  ;;  %v4615_v62 = vld [vmem:[%s5048_s4 + $0x8] sm:$0xff] }
0x2a3d   :  { %2048 = vmatpush.msra.mxu1 %v4609_v61 }
0x2a3e   :  { %3877 = vtanh.f32 %v1569_v16 }
0x2a3f   :  { %2049 = vmatpush.msra.mxu1 %v4615_v62 }
0x2a44   :  { %v3878_v0 = vpop.eup %3877 }
0x2a45   :  { %1572 = vrot.lane.b32.xlu2 %v3878_v0, %s4083_s28 }
0x2a9f   :  { %v1573_v4 = vpop.permute.xlu2 %1572 }
0x2aa0   :  { %v1575_v13 = vmul.f32 %v1573_v4, %v1556_v60  ;;  %v1931_v4 = vld [vmem:[#allocation3] sm:$0xff] }
0x2aa2   :  { %1577 = vrot.lane.b32.xlu0 %v1575_v13, %s4084_s29  ;;  %v1932_v13 = vld [vmem:[#allocation3 + $0x8] sm:$0xff] }
0x2b14   :  { %v1578_v26 = vpop.permute.xlu0 %1577 }
0x2b15   :  { %1580 = vst.msk [vmem:[#allocation3 + $0x90] sm:$0xff] %vm64_vm0, %v1578_v26  ;;  %3636 = vmatmul.msk.f32.vlgmr.msrb.gmra.mxu2 %vm64_vm0, %v1578_v26  ;;  %v1933_v26 = vld [vmem:[#allocation3 + $0x10] sm:$0xff] }
0x2b98   :  { %v1605_v1 = vpop.f32.mrf.mxu2 }
0x2b99   :  { %v1608_v28 = vadd.f32 %v1605_v1, %v212_v27  ;;  %v1934_v27 = vld [vmem:[#allocation3 + $0x18] sm:$0xff]  ;;  %v1935_v1 = vld [vmem:[#allocation3 + $0x20] sm:$0xff] }
0x2b9b   :  { %3879 = vtanh.f32 %v1608_v28  ;;  %v3637_v29 = vmul.f32 -1.442695, %v1608_v28  ;;  %v1936_v28 = vld [vmem:[#allocation3 + $0x28] sm:$0xff] }
0x2b9d   :  { %3881 = vpow2.f32 %v3637_v29  ;;  %v1938_v29 = vld [vmem:[#allocation3 + $0x38] sm:$0xff] }
0x2ba1   :  { %v3880_v54 = vpop.eup %3879 }
0x2ba2   :  { %1631 = vrot.lane.b32.xlu1 %v3880_v54, %s4083_s28  ;;  %v1937_v54 = vld [vmem:[#allocation3 + $0x30] sm:$0xff] }
0x2ba3   :  { %v3882_v30 = vpop.eup %3881 }
0x2ba4   :  { %v1612_v10 = vadd.f32 1.0, %v3882_v30  ;;  %v1939_v30 = vld [vmem:[#allocation3 + $0x40] sm:$0xff] }
0x2ba6   :  { %3883 = vrcp.f32 %v1612_v10  ;;  %v1624_v35 = vand.u32 2147483648, %v1612_v10  ;;  %vm1618_vm3 = vweird.f32 %v1612_v10  ;;  %v1622_v21 = vand.u32 2147483647, %v1612_v10 }
0x2ba8   :  { %v1625_v36 = vor.u32 1.1754944e-38, %v1624_v35  ;;  %vm1623_vm5 = vcmp.eq.f32.partialorder %v1622_v21, 8.507059e+37  ;;  %v218_v35 = vadd.f32 %v4489_v63, %v4349_v23 }
0x2bac   :  { %v3884_v8 = vpop.eup %3883 }
0x2bad   :  { %v1614_v31 = vmul.f32 %v3884_v8, %v1612_v10  ;;  %vm1619_vm2 = vweird.f32 %v3884_v8  ;;  %v1940_v10 = vld [vmem:[#allocation3 + $0x48] sm:$0xff] }
0x2bae   :  { %vm1620_vm4 = vmor %vm1618_vm3, %vm1619_vm2 }
0x2baf   :  { %v1615_v32 = vsub.f32 1.0, %v1614_v31  ;;  %v1942_v31 = vld [vmem:[#allocation3 + $0x58] sm:$0xff] }
0x2bb1   :  { %v1616_v33 = vmul.f32 %v3884_v8, %v1615_v32  ;;  %v1943_v32 = vld [vmem:[#allocation3 + $0x60] sm:$0xff] }
0x2bb3   :  { %v1617_v34 = vadd.f32 %v3884_v8, %v1616_v33  ;;  %v1944_v33 = vld [vmem:[#allocation3 + $0x68] sm:$0xff] }
0x2bb5   :  { %v1621_v12 = vsel %vm1620_vm4, %v3884_v8, %v1617_v34  ;;  %v1941_v8 = vld [vmem:[#allocation3 + $0x50] sm:$0xff] }
0x2bb6   :  { %v1626_v40 = vsel %vm1623_vm5, %v1625_v36, %v1621_v12  ;;  %v1945_v34 = vld [vmem:[#allocation3 + $0x70] sm:$0xff]  ;;  %v1946_v36 = vld [vmem:[#allocation3 + $0x78] sm:$0xff] }
0x2bb7   :  { %v1629_v19 = vmul.f32 %v1626_v40, %v1569_v16  ;;  %v4621_v16 = vld [vmem:[%s5048_s4] sm:$0xff] }
0x2bb8   :  { %2050 = vmatpush.msra.mxu1 %v4621_v16 }
0x2c14   :  { %v1632_v39 = vpop.permute.xlu1 %1631 }
0x2c15   :  { %v1634_v38 = vmul.f32 %v1632_v39, %v1626_v40 }
0x2c17   :  { %1636 = vrot.lane.b32.xlu2 %v1634_v38, %s4084_s29 }
0x2c71   :  { %v1637_v41 = vpop.permute.xlu2 %1636 }
0x2c72   :  { %v1639_v59 = vadd.f32 %v1637_v41, %v1629_v19 }
0x2c74   :  { %3885 = vtanh.f32 %v1639_v59 }
0x2c7a   :  { %v3886_v42 = vpop.eup %3885 }
0x2c7b   :  { %1642 = vrot.lane.b32.xlu0 %v3886_v42, %s4083_s28 }
0x2ced   :  { %v1643_v17 = vpop.permute.xlu0 %1642 }
0x2cee   :  { %v1645_v43 = vmul.f32 %v1643_v17, %v1626_v40  ;;  %v1947_v40 = vld [vmem:[#allocation3 + $0x80] sm:$0xff] }
0x2cf0   :  { %1647 = vrot.lane.b32.xlu1 %v1645_v43, %s4084_s29 }
0x2d62   :  { %v1648_v15 = vpop.permute.xlu1 %1647 }
0x2d63   :  { %1650 = vst.msk [vmem:[#allocation3 + $0x98] sm:$0xff] %vm64_vm0, %v1648_v15  ;;  %3638 = vmatmul.msk.f32.vlgmr.msra.gmra.mxu3 %vm64_vm0, %v1648_v15 }
0x2de6   :  { %v1675_v45 = vpop.f32.mrf.mxu3 }
0x2de7   :  { %v1678_v46 = vadd.f32 %v1675_v45, %v215_v44 }
0x2de9   :  { %3887 = vtanh.f32 %v1678_v46  ;;  %v3639_v48 = vmul.f32 -1.442695, %v1678_v46 }
0x2deb   :  { %3889 = vpow2.f32 %v3639_v48 }
0x2def   :  { %v3888_v47 = vpop.eup %3887 }
0x2df0   :  { %1701 = vrot.lane.b32.xlu2 %v3888_v47, %s4083_s28 }
0x2df1   :  { %v3890_v2 = vpop.eup %3889 }
0x2df2   :  { %v1682_v3 = vadd.f32 1.0, %v3890_v2 }
0x2df4   :  { %3891 = vrcp.f32 %v1682_v3  ;;  %v1694_v57 = vand.u32 2147483648, %v1682_v3  ;;  %vm1688_vm7 = vweird.f32 %v1682_v3  ;;  %v1692_v22 = vand.u32 2147483647, %v1682_v3 }
0x2df6   :  { %v1695_v52 = vor.u32 1.1754944e-38, %v1694_v57  ;;  %vm1693_vm9 = vcmp.eq.f32.partialorder %v1692_v22, 8.507059e+37  ;;  %v1792_v57 = vld [vmem:[%s5045_s2] sm:$0xff] }
0x2dfa   :  { %v3892_v6 = vpop.eup %3891 }
0x2dfb   :  { %v1684_v49 = vmul.f32 %v3892_v6, %v1682_v3  ;;  %vm1689_vm6 = vweird.f32 %v3892_v6 }
0x2dfc   :  { %vm1690_vm8 = vmor %vm1688_vm7, %vm1689_vm6 }
0x2dfd   :  { %v1685_v5 = vsub.f32 1.0, %v1684_v49 }
0x2dff   :  { %v1686_v50 = vmul.f32 %v3892_v6, %v1685_v5  ;;  %v1795_v5 = vld [vmem:[%s5045_s2 + $0x18] sm:$0xff] }
0x2e00   :  { %1810 = vmatpush.msra.mxu2 %v1795_v5  ;;  %1880 = vmatpush.msrb.mxu3 %v1795_v5 }
0x2e01   :  { %v1687_v7 = vadd.f32 %v3892_v6, %v1686_v50  ;;  %v1794_v50 = vld [vmem:[%s5045_s2 + $0x10] sm:$0xff] }
0x2e02   :  { %1811 = vmatpush.msra.mxu2 %v1794_v50  ;;  %1881 = vmatpush.msrb.mxu3 %v1794_v50 }
0x2e03   :  { %v1691_v51 = vsel %vm1690_vm8, %v3892_v6, %v1687_v7  ;;  %v1793_v7 = vld [vmem:[%s5045_s2 + $0x8] sm:$0xff] }
0x2e04   :  { %v1696_v37 = vsel %vm1693_vm9, %v1695_v52, %v1691_v51  ;;  %1812 = vmatpush.msra.mxu2 %v1793_v7  ;;  %1882 = vmatpush.msrb.mxu3 %v1793_v7  ;;  %v4673_v52 = vld [vmem:[%s5050_s5 + $0x18] sm:$0xff] }
0x2e05   :  { %v1699_v55 = vmul.f32 %v1696_v37, %v1639_v59 }
0x2e06   :  { %1813 = vmatpush.msra.mxu2 %v1792_v57  ;;  %1883 = vmatpush.msrb.mxu3 %v1792_v57 }
0x2e08   :  { %3717 = vmatpush.msra.mxu3 %v4604_v18  ;;  %2165 = vmatpush.msrb.mxu2 %v4673_v52 }
0x2e0a   :  { %3718 = vmatpush.msra.mxu3 %v4609_v61 }
0x2e0c   :  { %3719 = vmatpush.msra.mxu3 %v4615_v62 }
0x2e0e   :  { %3720 = vmatpush.msra.mxu3 %v4621_v16 }
0x2e4a   :  { %v1702_v11 = vpop.permute.xlu2 %1701 }
0x2e4b   :  { %v1704_v53 = vmul.f32 %v1702_v11, %v1696_v37  ;;  %v4678_v11 = vld [vmem:[%s5050_s5 + $0x10] sm:$0xff] }
0x2e4c   :  { %2166 = vmatpush.msrb.mxu2 %v4678_v11 }
0x2e4d   :  { %1706 = vrot.lane.b32.xlu0 %v1704_v53, %s4084_s29  ;;  %v4690_v53 = vld [vmem:[%s5050_s5] sm:$0xff] }
0x2ebf   :  { %v1707_v20 = vpop.permute.xlu0 %1706 }
0x2ec0   :  { %v4596_v56 = vadd.f32 %v1707_v20, %v1699_v55  ;;  %v4708_v20 = vld [vmem:[%s5047_s3] ss:$0 sm:$0xff] }
0x2ec2   :  { %3893 = vtanh.f32 %v4596_v56 }
0x2ec8   :  { %v3894_v58 = vpop.eup %3893 }
0x2ec9   :  { %1712 = vrot.lane.b32.xlu1 %v3894_v58, %s4083_s28 }
0x2f3b   :  { %v1713_v14 = vpop.permute.xlu1 %1712 }
0x2f3c   :  { %v1715_v60 = vmul.f32 %v1713_v14, %v1696_v37  ;;  %v4684_v37 = vld [vmem:[%s5050_s5 + $0x8] sm:$0xff] }
0x2f3d   :  { %2167 = vmatpush.msrb.mxu2 %v4684_v37 }
0x2f3e   :  { %1717 = vrot.lane.b32.xlu2 %v1715_v60, %s4084_s29 }
0x2f3f   :  { %2168 = vmatpush.msrb.mxu2 %v4690_v53 }
0x2f98   :  { %v1718_v0 = vpop.permute.xlu2 %1717 }
0x2f99   :  { %1720 = vst.msk [vmem:[#allocation3 + $0xa0] sm:$0xff] %vm64_vm0, %v1718_v0  ;;  %3640 = vmatmul.msk.f32.vlgmr.msrb.gmra.mxu1 %vm64_vm0, %v1718_v0 }
0x2fa1   :  { %3646 = vmatmul.msk.f32.vlgmr.msra.gmra.mxu1 %vm64_vm0, %v1931_v4 }
0x2fa9   :  { %3647 = vmatmul.msk.f32.gmra.mxu1 %vm64_vm0, %v1932_v13 }
0x2fb1   :  { %3648 = vmatmul.msk.f32.gmra.mxu1 %vm64_vm0, %v1933_v26 }
0x2fb9   :  { %3649 = vmatmul.msk.f32.gmra.mxu1 %vm64_vm0, %v1934_v27 }
0x2fc1   :  { %3650 = vmatmul.msk.f32.gmra.mxu1 %vm64_vm0, %v1935_v1 }
0x2fc9   :  { %3651 = vmatmul.msk.f32.gmra.mxu1 %vm64_vm0, %v1936_v28 }
0x2fd1   :  { %3652 = vmatmul.msk.f32.gmra.mxu1 %vm64_vm0, %v1937_v54 }
0x2fd9   :  { %3653 = vmatmul.msk.f32.gmra.mxu1 %vm64_vm0, %v1938_v29 }
0x2fe1   :  { %3654 = vmatmul.msk.f32.gmra.mxu1 %vm64_vm0, %v1939_v30 }
0x2fe9   :  { %3655 = vmatmul.msk.f32.gmra.mxu1 %vm64_vm0, %v1940_v10 }
0x2ff1   :  { %3656 = vmatmul.msk.f32.gmra.mxu1 %vm64_vm0, %v1941_v8  ;;  %v4718_v8 = vld [vmem:[%s5049_s6] ss:$0 sm:$0xff] }
0x2ff9   :  { %3657 = vmatmul.msk.f32.gmra.mxu1 %vm64_vm0, %v1942_v31 }
0x3001   :  { %3658 = vmatmul.msk.f32.gmra.mxu1 %vm64_vm0, %v1943_v32 }
0x3009   :  { %3659 = vmatmul.msk.f32.gmra.mxu1 %vm64_vm0, %v1944_v33 }
0x3011   :  { %3660 = vmatmul.msk.f32.gmra.mxu1 %vm64_vm0, %v1945_v34 }
0x3016   :  { %v1745_v21 = vpop.f32.mrf.mxu1 }
0x3017   :  { %v1748_v12 = vadd.f32 %v1745_v21, %v218_v35 }
0x3019   :  { %3895 = vtanh.f32 %v1748_v12  ;;  %3661 = vmatmul.msk.f32.gmra.mxu1 %vm64_vm0, %v1946_v36  ;;  %v3641_v38 = vmul.f32 -1.442695, %v1748_v12 }
0x301b   :  { %3897 = vpow2.f32 %v3641_v38  ;;  %v1948_v38 = vld [vmem:[#allocation3 + $0x88] sm:$0xff] }
0x301e   :  { %v2052_v32 = vpop.f32.mrf.mxu1 }
0x301f   :  { %v3896_v39 = vpop.eup %3895  ;;  %v2053_v34 = vadd.f32 %v4718_v8, %v2052_v32 }
0x3020   :  { %1771 = vrot.lane.b32.xlu0 %v3896_v39, %s4083_s28 }
0x3021   :  { %3662 = vmatmul.msk.f32.gmra.mxu1 %vm64_vm0, %v1947_v40  ;;  %v3898_v19 = vpop.eup %3897 }
0x3022   :  { %v1752_v41 = vadd.f32 1.0, %v3898_v19  ;;  %v1949_v19 = vld [vmem:[#allocation3 + $0x90] sm:$0xff] }
0x3024   :  { %3899 = vrcp.f32 %v1752_v41  ;;  %v1764_v43 = vand.u32 2147483648, %v1752_v41  ;;  %vm1758_vm11 = vweird.f32 %v1752_v41  ;;  %v1762_v15 = vand.u32 2147483647, %v1752_v41 }
0x3026   :  { %v1765_v45 = vor.u32 1.1754944e-38, %v1764_v43  ;;  %vm1763_vm13 = vcmp.eq.f32.partialorder %v1762_v15, 8.507059e+37 }
0x302a   :  { %v3900_v59 = vpop.eup %3899 }
0x302b   :  { %v1754_v42 = vmul.f32 %v3900_v59, %v1752_v41  ;;  %vm1759_vm10 = vweird.f32 %v3900_v59  ;;  %v1950_v41 = vld [vmem:[#allocation3 + $0x98] sm:$0xff] }
0x302c   :  { %vm1760_vm12 = vmor %vm1758_vm11, %vm1759_vm10 }
0x302d   :  { %v1755_v23 = vsub.f32 1.0, %v1754_v42 }
0x302f   :  { %v1756_v63 = vmul.f32 %v3900_v59, %v1755_v23 }
0x3031   :  { %v1757_v17 = vadd.f32 %v3900_v59, %v1756_v63 }
0x3033   :  { %v1761_v44 = vsel %vm1760_vm12, %v3900_v59, %v1757_v17  ;;  %v1951_v59 = vld [vmem:[#allocation3 + $0xa0] sm:$0xff] }
0x3034   :  { %v1766_v47 = vsel %vm1763_vm13, %v1765_v45, %v1761_v44  ;;  %v224_v45 = vadd.f32 %v4708_v20, %v4353_v25 }
0x3035   :  { %v1769_v2 = vmul.f32 %v1766_v47, %v4596_v56  ;;  %v221_v56 = vadd.f32 %v4708_v20, %v4351_v24 }
0x3092   :  { %v1772_v46 = vpop.permute.xlu0 %1771 }
0x3093   :  { %v1774_v48 = vmul.f32 %v1772_v46, %v1766_v47 }
0x3095   :  { %1776 = vrot.lane.b32.xlu1 %v1774_v48, %s4084_s29 }
0x3107   :  { %v1777_v3 = vpop.permute.xlu1 %1776 }
0x3108   :  { %v4649_v6 = vadd.f32 %v1777_v3, %v1769_v2 }
0x310a   :  { %3901 = vtanh.f32 %v4649_v6 }
0x3110   :  { %v3902_v49 = vpop.eup %3901 }
0x3111   :  { %1782 = vrot.lane.b32.xlu2 %v3902_v49, %s4083_s28 }
0x316b   :  { %v1783_v22 = vpop.permute.xlu2 %1782 }
0x316c   :  { %v1785_v51 = vmul.f32 %v1783_v22, %v1766_v47 }
0x316e   :  { %1787 = vrot.lane.b32.xlu0 %v1785_v51, %s4084_s29 }
0x31e0   :  { %v1788_v55 = vpop.permute.xlu0 %1787 }
0x31e1   :  { %1790 = vst.msk [vmem:[#allocation3 + $0xa8] sm:$0xff] %vm64_vm0, %v1788_v55  ;;  %3642 = vmatmul.msk.f32.vlgmr.msra.gmra.mxu2 %vm64_vm0, %v1788_v55 }
0x31e2   :  { %2293 = vmatpush.msra.mxu2 %v4673_v52 }
0x31e4   :  { %2294 = vmatpush.msra.mxu2 %v4678_v11 }
0x31e6   :  { %2295 = vmatpush.msra.mxu2 %v4684_v37 }
0x31e8   :  { %2296 = vmatpush.msra.mxu2 %v4690_v53  ;;  %v1952_v42 = vld [vmem:[#allocation3 + $0xa8] sm:$0xff] }
0x31e9   :  { %2169 = vmatmul.f32.vlgmr.msrb.gmra.mxu2 %v4082_v9 }
0x31ea   :  { %2421 = vmatpush.msrb.mxu2 %v4673_v52 }
0x31ec   :  { %2422 = vmatpush.msrb.mxu2 %v4678_v11 }
0x31ee   :  { %2423 = vmatpush.msrb.mxu2 %v4684_v37 }
0x31f0   :  { %2424 = vmatpush.msrb.mxu2 %v4690_v53 }
0x3264   :  { %v1815_v58 = vpop.f32.mrf.mxu2 }
0x3265   :  { %v1818_v14 = vadd.f32 %v1815_v58, %v221_v56 }
0x3267   :  { %3903 = vtanh.f32 %v1818_v14  ;;  %v3643_v60 = vmul.f32 -1.442695, %v1818_v14 }
0x3269   :  { %3905 = vpow2.f32 %v3643_v60 }
0x326c   :  { %v2170_v33 = vpop.f32.mrf.mxu2 }
0x326d   :  { %v3904_v9 = vpop.eup %3903  ;;  %v2173_v35 = vadd.f32 %v2170_v33, %v2053_v34 }
0x326e   :  { %1841 = vrot.lane.b32.xlu1 %v3904_v9, %s4083_s28 }
0x326f   :  { %v3906_v18 = vpop.eup %3905  ;;  %v3670_v63 = vmul.f32 -1.442695, %v2173_v35 }
0x3270   :  { %v1822_v61 = vadd.f32 1.0, %v3906_v18 }
0x3272   :  { %3907 = vrcp.f32 %v1822_v61  ;;  %v1834_v26 = vand.u32 2147483648, %v1822_v61  ;;  %vm1828_vm15 = vweird.f32 %v1822_v61  ;;  %v1832_v24 = vand.u32 2147483647, %v1822_v61 }
0x3274   :  { %v1835_v1 = vor.u32 1.1754944e-38, %v1834_v26  ;;  %vm1833_vm2 = vcmp.eq.f32.partialorder %v1832_v24, 8.507059e+37 }
0x3278   :  { %v3908_v62 = vpop.eup %3907 }
0x3279   :  { %v1824_v16 = vmul.f32 %v3908_v62, %v1822_v61  ;;  %vm1829_vm14 = vweird.f32 %v3908_v62 }
0x327a   :  { %vm1830_vm1 = vmor %vm1828_vm15, %vm1829_vm14 }
0x327b   :  { %v1825_v0 = vsub.f32 1.0, %v1824_v16 }
0x327d   :  { %v1826_v4 = vmul.f32 %v3908_v62, %v1825_v0 }
0x327f   :  { %v1827_v13 = vadd.f32 %v3908_v62, %v1826_v4 }
0x3281   :  { %v1831_v27 = vsel %vm1830_vm1, %v3908_v62, %v1827_v13 }
0x3282   :  { %v1836_v54 = vsel %vm1833_vm2, %v1835_v1, %v1831_v27 }
0x3283   :  { %v1839_v30 = vmul.f32 %v1836_v54, %v4649_v6 }
0x32e0   :  { %v1842_v28 = vpop.permute.xlu1 %1841 }
0x32e1   :  { %v1844_v29 = vmul.f32 %v1842_v28, %v1836_v54 }
0x32e3   :  { %1846 = vrot.lane.b32.xlu2 %v1844_v29, %s4084_s29 }
0x333d   :  { %v1847_v10 = vpop.permute.xlu2 %1846 }
0x333e   :  { %v4720_v31 = vadd.f32 %v1847_v10, %v1839_v30 }
0x3340   :  { %3909 = vtanh.f32 %v4720_v31 }
0x3341   :  { %3911 = vtanh.f32 %v2173_v35 }
0x3342   :  { %3913 = vpow2.f32 %v3670_v63 }
0x3346   :  { %v3910_v21 = vpop.eup %3909 }
0x3347   :  { %1852 = vrot.lane.b32.xlu0 %v3910_v21, %s4083_s28  ;;  %v3912_v12 = vpop.eup %3911 }
0x3348   :  { %v3914_v17 = vpop.eup %3913 }
0x3349   :  { %v2177_v43 = vadd.f32 1.0, %v3914_v17 }
0x334b   :  { %3915 = vrcp.f32 %v2177_v43  ;;  %v2189_v5 = vand.u32 2147483648, %v2177_v43  ;;  %vm2183_vm4 = vweird.f32 %v2177_v43  ;;  %v2187_v50 = vand.u32 2147483647, %v2177_v43 }
0x334d   :  { %v2190_v22 = vor.u32 1.1754944e-38, %v2189_v5  ;;  %vm2188_vm6 = vcmp.eq.f32.partialorder %v2187_v50, 8.507059e+37 }
0x334f   :  { %2196 = vrot.lane.b32.xlu0 %v3912_v12, %s4083_s28 }
0x3351   :  { %v3916_v15 = vpop.eup %3915 }
0x3352   :  { %v2179_v44 = vmul.f32 %v3916_v15, %v2177_v43  ;;  %vm2184_vm3 = vweird.f32 %v3916_v15 }
0x3353   :  { %vm2185_vm5 = vmor %vm2183_vm4, %vm2184_vm3 }
0x3354   :  { %v2180_v46 = vsub.f32 1.0, %v2179_v44 }
0x3356   :  { %v2181_v2 = vmul.f32 %v3916_v15, %v2180_v46 }
0x3358   :  { %v2182_v3 = vadd.f32 %v3916_v15, %v2181_v2 }
0x335a   :  { %v2186_v7 = vsel %vm2185_vm5, %v3916_v15, %v2182_v3 }
0x335b   :  { %v2191_v25 = vsel %vm2188_vm6, %v2190_v22, %v2186_v7 }
0x335c   :  { %v2194_v29 = vmul.f32 0.0, %v2191_v25 }
0x33b9   :  { %v1853_v36 = vpop.permute.xlu0 %1852 }
0x33ba   :  { %v1855_v39 = vmul.f32 %v1853_v36, %v1836_v54 }
0x33bc   :  { %1857 = vrot.lane.b32.xlu1 %v1855_v39, %s4084_s29 }
0x33c1   :  { %v2197_v57 = vpop.permute.xlu0 %2196 }
0x33c2   :  { %v2199_v51 = vmul.f32 %v2197_v57, %v2191_v25 }
0x342e   :  { %v1858_v40 = vpop.permute.xlu1 %1857 }
0x342f   :  { %1860 = vst.msk [vmem:[#allocation3 + $0xb0] sm:$0xff] %vm64_vm0, %v1858_v40  ;;  %3644 = vmatmul.msk.f32.vlgmr.msrb.gmra.mxu3 %vm64_vm0, %v1858_v40 }
0x3430   :  { %2229 = vmatpush.msrb.mxu3 %v4673_v52 }
0x3432   :  { %2230 = vmatpush.msrb.mxu3 %v4678_v11 }
0x3434   :  { %2231 = vmatpush.msrb.mxu3 %v4684_v37 }
0x3436   :  { %2232 = vmatpush.msrb.mxu3 %v4690_v53  ;;  %v1953_v23 = vld [vmem:[#allocation3 + $0xb0] sm:$0xff] }
0x3437   :  { %3663 = vmatmul.msk.f32.vlgmr.msra.gmra.mxu3 %vm64_vm0, %v1948_v38 }
0x3438   :  { %2357 = vmatpush.msra.mxu3 %v4673_v52 }
0x343a   :  { %2358 = vmatpush.msra.mxu3 %v4678_v11 }
0x343c   :  { %2359 = vmatpush.msra.mxu3 %v4684_v37 }
0x343e   :  { %2360 = vmatpush.msra.mxu3 %v4690_v53 }
0x343f   :  { %3664 = vmatmul.msk.f32.gmra.mxu3 %vm64_vm0, %v1949_v19 }
0x3447   :  { %3665 = vmatmul.msk.f32.gmra.mxu3 %vm64_vm0, %v1950_v41 }
0x344f   :  { %3666 = vmatmul.msk.f32.gmra.mxu3 %vm64_vm0, %v1951_v59  ;;  %v2055_v59 = vpop.f32.mrf.mxu1 }
0x3457   :  { %3667 = vmatmul.msk.f32.gmra.mxu3 %vm64_vm0, %v1952_v42  ;;  %v2056_v42 = vadd.f32 %v4718_v8, %v2055_v59 }
0x345f   :  { %3668 = vmatmul.msk.f32.gmra.mxu3 %vm64_vm0, %v1953_v23 }
0x34b2   :  { %v1885_v47 = vpop.f32.mrf.mxu3 }
0x34b3   :  { %v1888_v48 = vadd.f32 %v1885_v47, %v224_v45 }
0x34b5   :  { %3917 = vtanh.f32 %v1888_v48  ;;  %v3645_v9 = vmul.f32 -1.442695, %v1888_v48 }
0x34b7   :  { %3919 = vpow2.f32 %v3645_v9 }
0x34ba   :  { %v4745_v6 = vpop.f32.mrf.mxu3 }
0x34bb   :  { %v3918_v49 = vpop.eup %3917 }
0x34bc   :  { %1911 = vrot.lane.b32.xlu2 %v3918_v49, %s4083_s28 }
0x34bd   :  { %v3920_v60 = vpop.eup %3919 }
0x34be   :  { %v1892_v18 = vadd.f32 1.0, %v3920_v60 }
0x34c0   :  { %3921 = vrcp.f32 %v1892_v18  ;;  %v1904_v13 = vand.u32 2147483648, %v1892_v18  ;;  %vm1898_vm8 = vweird.f32 %v1892_v18  ;;  %v1902_v26 = vand.u32 2147483647, %v1892_v18 }
0x34c2   :  { %v4748_v55 = vpop.f32.mrf.mxu3  ;;  %v1905_v27 = vor.u32 1.1754944e-38, %v1904_v13  ;;  %vm1903_vm10 = vcmp.eq.f32.partialorder %v1902_v26, 8.507059e+37 }
0x34c4   :  { %2201 = vrot.lane.b32.xlu2 %v2199_v51, %s4084_s29 }
0x34c6   :  { %v3922_v61 = vpop.eup %3921 }
0x34c7   :  { %v1894_v62 = vmul.f32 %v3922_v61, %v1892_v18  ;;  %vm1899_vm7 = vweird.f32 %v3922_v61  ;;  %v2058_v18 = vpop.f32.mrf.mxu1 }
0x34c8   :  { %vm1900_vm9 = vmor %vm1898_vm8, %vm1899_vm7 }
0x34c9   :  { %v1895_v16 = vsub.f32 1.0, %v1894_v62 }
0x34ca   :  { %v4751_v20 = vpop.f32.mrf.mxu3 }
0x34cb   :  { %v1896_v0 = vmul.f32 %v3922_v61, %v1895_v16 }
0x34cd   :  { %v1897_v4 = vadd.f32 %v3922_v61, %v1896_v0 }
0x34cf   :  { %v1901_v24 = vsel %vm1900_vm9, %v3922_v61, %v1897_v4  ;;  %v2059_v61 = vadd.f32 %v4718_v8, %v2058_v18 }
0x34d0   :  { %v1906_v28 = vsel %vm1903_vm10, %v1905_v27, %v1901_v24 }
0x34d1   :  { %v1909_v33 = vmul.f32 %v1906_v28, %v4720_v31 }
0x34d2   :  { %v2112_v56 = vpop.f32.mrf.mxu3 }
0x34da   :  { %v2115_v58 = vpop.f32.mrf.mxu3 }
0x34e2   :  { %v2118_v14 = vpop.f32.mrf.mxu3 }
0x3516   :  { %v1912_v1 = vpop.permute.xlu2 %1911 }
0x3517   :  { %v1914_v54 = vmul.f32 %v1912_v1, %v1906_v28 }
0x3519   :  { %1916 = vrot.lane.b32.xlu1 %v1914_v54, %s4084_s29 }
0x351e   :  { %v2202_v30 = vpop.permute.xlu2 %2201 }
0x351f   :  { %v2204_v10 = vadd.f32 %v2202_v30, %v2194_v29 }
0x3521   :  { %3923 = vtanh.f32 %v2204_v10 }
0x3527   :  { %v3924_v32 = vpop.eup %3923 }
0x3528   :  { %2207 = vrot.lane.b32.xlu1 %v3924_v32, %s4083_s28 }
0x358b   :  { %v1917_v34 = vpop.permute.xlu1 %1916 }
0x358c   :  { %v1919_v35 = vadd.f32 %v1917_v34, %v1909_v33 }
0x358e   :  { %3925 = vtanh.f32 %v1919_v35 }
0x3594   :  { %v3926_v21 = vpop.eup %3925 }
0x3595   :  { %1922 = vrot.lane.b32.xlu0 %v3926_v21, %s4083_s28 }
0x359a   :  { %v2208_v12 = vpop.permute.xlu1 %2207 }
0x359b   :  { %v2210_v36 = vmul.f32 %v2208_v12, %v2191_v25 }
0x359d   :  { %2213 = vrot.lane.b32.xlu0 %v2210_v36, %s4084_s29 }
0x3607   :  { %v1923_v39 = vpop.permute.xlu0 %1922 }
0x3608   :  { %v1925_v40 = vmul.f32 %v1923_v39, %v1906_v28 }
0x360a   :  { %1927 = vrot.lane.b32.xlu2 %v1925_v40, %s4084_s29 }
0x360f   :  { %v2214_v31 = vpop.permute.xlu0 %2213 }
0x3664   :  { %v1928_v38 = vpop.permute.xlu2 %1927 }
0x3665   :  { %1930 = vst.msk [vmem:[#allocation3 + $0xb8] sm:$0xff] %vm64_vm0, %v1928_v38 }
0x366c   :  { %v1954_v19 = vld [vmem:[#allocation3 + $0xb8] sm:$0xff] }
0x366d   :  { %3669 = vmatmul.msk.f32.gmra.mxu3 %vm64_vm0, %v1954_v19 }
0x3675   :  { %3671 = vmatmul.msk.f32.vlgmr.msrb.gmra.mxu3 %vm64_vm0, %v2214_v31  ;;  %v2061_v31 = vpop.f32.mrf.mxu1 }
0x3676   :  { %2485 = vmatpush.msrb.mxu3 %v4673_v52 }
0x3678   :  { %2486 = vmatpush.msrb.mxu3 %v4678_v11 }
0x367a   :  { %2487 = vmatpush.msrb.mxu3 %v4684_v37 }
0x367c   :  { %2488 = vmatpush.msrb.mxu3 %v4690_v53 }
0x36f0   :  { %v2121_v41 = vpop.f32.mrf.mxu3 }
0x36f1   :  { %v2062_v41 = vadd.f32 %v4718_v8, %v2061_v31 }
0x36f8   :  { %v2234_v23 = vpop.f32.mrf.mxu3 }
0x36f9   :  { %v2237_v63 = vadd.f32 %v2234_v23, %v2056_v42 }
0x36fb   :  { %3927 = vtanh.f32 %v2237_v63  ;;  %v3672_v43 = vmul.f32 -1.442695, %v2237_v63 }
0x36fd   :  { %3929 = vpow2.f32 %v3672_v43 }
0x3701   :  { %v3928_v17 = vpop.eup %3927 }
0x3702   :  { %2260 = vrot.lane.b32.xlu1 %v3928_v17, %s4083_s28 }
0x3703   :  { %v3930_v15 = vpop.eup %3929 }
0x3704   :  { %v2241_v44 = vadd.f32 1.0, %v3930_v15 }
0x3706   :  { %3931 = vrcp.f32 %v2241_v44  ;;  %v2253_v3 = vand.u32 2147483648, %v2241_v44  ;;  %vm2247_vm12 = vweird.f32 %v2241_v44  ;;  %v2251_v49 = vand.u32 2147483647, %v2241_v44 }
0x3708   :  { %v2254_v50 = vor.u32 1.1754944e-38, %v2253_v3  ;;  %vm2252_vm14 = vcmp.eq.f32.partialorder %v2251_v49, 8.507059e+37 }
0x370c   :  { %v3932_v45 = vpop.eup %3931 }
0x370d   :  { %v2243_v46 = vmul.f32 %v3932_v45, %v2241_v44  ;;  %vm2248_vm11 = vweird.f32 %v3932_v45 }
0x370e   :  { %vm2249_vm13 = vmor %vm2247_vm12, %vm2248_vm11 }
0x370f   :  { %v2244_v47 = vsub.f32 1.0, %v2243_v46 }
0x3711   :  { %v2245_v48 = vmul.f32 %v3932_v45, %v2244_v47 }
0x3713   :  { %v2246_v2 = vadd.f32 %v3932_v45, %v2245_v48 }
0x3715   :  { %v2250_v5 = vsel %vm2249_vm13, %v3932_v45, %v2246_v2 }
0x3716   :  { %v2255_v57 = vsel %vm2252_vm14, %v2254_v50, %v2250_v5 }
0x3717   :  { %v2258_v25 = vmul.f32 %v2255_v57, %v2204_v10 }
0x3774   :  { %v2261_v7 = vpop.permute.xlu1 %2260 }
0x3775   :  { %v2263_v22 = vmul.f32 %v2261_v7, %v2255_v57 }
0x3777   :  { %2265 = vrot.lane.b32.xlu2 %v2263_v22, %s4084_s29 }
0x37d1   :  { %v2266_v51 = vpop.permute.xlu2 %2265 }
0x37d2   :  { %v2268_v56 = vadd.f32 %v2266_v51, %v2258_v25 }
0x37d4   :  { %3933 = vtanh.f32 %v2268_v56 }
0x37da   :  { %v3934_v58 = vpop.eup %3933 }
0x37db   :  { %2271 = vrot.lane.b32.xlu0 %v3934_v58, %s4083_s28 }
0x384d   :  { %v2272_v14 = vpop.permute.xlu0 %2271 }
0x384e   :  { %v2274_v9 = vmul.f32 %v2272_v14, %v2255_v57 }
0x3850   :  { %2277 = vrot.lane.b32.xlu1 %v2274_v9, %s4084_s29  ;;  %v2064_v9 = vpop.f32.mrf.mxu1 }
0x38c2   :  { %v2278_v60 = vpop.permute.xlu1 %2277 }
0x38c3   :  { %3673 = vmatmul.msk.f32.vlgmr.msra.gmra.mxu2 %vm64_vm0, %v2278_v60  ;;  %v2065_v60 = vadd.f32 %v4718_v8, %v2064_v9 }
0x38c4   :  { %2549 = vmatpush.msra.mxu2 %v4673_v52 }
0x38c6   :  { %2550 = vmatpush.msra.mxu2 %v4678_v11 }
0x38c8   :  { %2551 = vmatpush.msra.mxu2 %v4684_v37 }
0x38ca   :  { %2552 = vmatpush.msra.mxu2 %v4690_v53 }
0x3946   :  { %v2298_v62 = vpop.f32.mrf.mxu2 }
0x3947   :  { %v2301_v16 = vadd.f32 %v2298_v62, %v2059_v61 }
0x3949   :  { %3935 = vtanh.f32 %v2301_v16  ;;  %v3674_v4 = vmul.f32 -1.442695, %v2301_v16 }
0x394b   :  { %3937 = vpow2.f32 %v3674_v4 }
0x394f   :  { %v3936_v0 = vpop.eup %3935 }
0x3950   :  { %2324 = vrot.lane.b32.xlu2 %v3936_v0, %s4083_s28 }
0x3951   :  { %v3938_v13 = vpop.eup %3937 }
0x3952   :  { %v2305_v26 = vadd.f32 1.0, %v3938_v13 }
0x3954   :  { %3939 = vrcp.f32 %v2305_v26  ;;  %v2317_v29 = vand.u32 2147483648, %v2305_v26  ;;  %vm2311_vm1 = vweird.f32 %v2305_v26  ;;  %v2315_v30 = vand.u32 2147483647, %v2305_v26 }
0x3956   :  { %v2318_v32 = vor.u32 1.1754944e-38, %v2317_v29  ;;  %vm2316_vm3 = vcmp.eq.f32.partialorder %v2315_v30, 8.507059e+37 }
0x395a   :  { %v3940_v24 = vpop.eup %3939 }
0x395b   :  { %v2307_v27 = vmul.f32 %v3940_v24, %v2305_v26  ;;  %vm2312_vm15 = vweird.f32 %v3940_v24 }
0x395c   :  { %vm2313_vm2 = vmor %vm2311_vm1, %vm2312_vm15 }
0x395d   :  { %v2308_v1 = vsub.f32 1.0, %v2307_v27 }
0x395f   :  { %v2309_v28 = vmul.f32 %v3940_v24, %v2308_v1 }
0x3961   :  { %v2310_v54 = vadd.f32 %v3940_v24, %v2309_v28 }
0x3963   :  { %v2314_v10 = vsel %vm2313_vm2, %v3940_v24, %v2310_v54 }
0x3964   :  { %v2319_v34 = vsel %vm2316_vm3, %v2318_v32, %v2314_v10 }
0x3965   :  { %v2322_v21 = vmul.f32 %v2319_v34, %v2268_v56 }
0x39aa   :  { %v2325_v33 = vpop.permute.xlu2 %2324 }
0x39ab   :  { %v2327_v35 = vmul.f32 %v2325_v33, %v2319_v34 }
0x39ad   :  { %2329 = vrot.lane.b32.xlu0 %v2327_v35, %s4084_s29 }
0x3a1f   :  { %v2330_v12 = vpop.permute.xlu0 %2329 }
0x3a20   :  { %v2332_v36 = vadd.f32 %v2330_v12, %v2322_v21 }
0x3a22   :  { %3941 = vtanh.f32 %v2332_v36 }
0x3a28   :  { %v3942_v39 = vpop.eup %3941 }
0x3a29   :  { %2335 = vrot.lane.b32.xlu1 %v3942_v39, %s4083_s28 }
0x3a9b   :  { %v2336_v40 = vpop.permute.xlu1 %2335 }
0x3a9c   :  { %v2338_v38 = vmul.f32 %v2336_v40, %v2319_v34 }
0x3a9e   :  { %2341 = vrot.lane.b32.xlu2 %v2338_v38, %s4084_s29  ;;  %v2067_v38 = vpop.f32.mrf.mxu1 }
0x3af8   :  { %v2342_v19 = vpop.permute.xlu2 %2341 }
0x3af9   :  { %3675 = vmatmul.msk.f32.vlgmr.msra.gmra.mxu3 %vm64_vm0, %v2342_v19  ;;  %v2068_v19 = vadd.f32 %v4718_v8, %v2067_v38 }
0x3afa   :  { %2613 = vmatpush.msra.mxu3 %v4673_v52 }
0x3afc   :  { %2614 = vmatpush.msra.mxu3 %v4678_v11 }
0x3afe   :  { %2615 = vmatpush.msra.mxu3 %v4684_v37 }
0x3b00   :  { %2616 = vmatpush.msra.mxu3 %v4690_v53 }
0x3b7c   :  { %v2362_v59 = vpop.f32.mrf.mxu3 }
0x3b7d   :  { %v2365_v42 = vadd.f32 %v2362_v59, %v2062_v41 }
0x3b7f   :  { %3943 = vtanh.f32 %v2365_v42  ;;  %v3676_v63 = vmul.f32 -1.442695, %v2365_v42 }
0x3b81   :  { %3945 = vpow2.f32 %v3676_v63 }
0x3b85   :  { %v3944_v23 = vpop.eup %3943 }
0x3b86   :  { %2388 = vrot.lane.b32.xlu0 %v3944_v23, %s4083_s28 }
0x3b87   :  { %v3946_v17 = vpop.eup %3945 }
0x3b88   :  { %v2369_v43 = vadd.f32 1.0, %v3946_v17 }
0x3b8a   :  { %3947 = vrcp.f32 %v2369_v43  ;;  %v2381_v48 = vand.u32 2147483648, %v2369_v43  ;;  %vm2375_vm5 = vweird.f32 %v2369_v43  ;;  %v2379_v2 = vand.u32 2147483647, %v2369_v43 }
0x3b8c   :  { %v2382_v49 = vor.u32 1.1754944e-38, %v2381_v48  ;;  %vm2380_vm7 = vcmp.eq.f32.partialorder %v2379_v2, 8.507059e+37 }
0x3b90   :  { %v3948_v15 = vpop.eup %3947 }
0x3b91   :  { %v2371_v44 = vmul.f32 %v3948_v15, %v2369_v43  ;;  %vm2376_vm4 = vweird.f32 %v3948_v15 }
0x3b92   :  { %vm2377_vm6 = vmor %vm2375_vm5, %vm2376_vm4 }
0x3b93   :  { %v2372_v45 = vsub.f32 1.0, %v2371_v44 }
0x3b95   :  { %v2373_v46 = vmul.f32 %v3948_v15, %v2372_v45 }
0x3b97   :  { %v2374_v47 = vadd.f32 %v3948_v15, %v2373_v46 }
0x3b99   :  { %v2378_v3 = vsel %vm2377_vm6, %v3948_v15, %v2374_v47 }
0x3b9a   :  { %v2383_v50 = vsel %vm2380_vm7, %v2382_v49, %v2378_v3 }
0x3b9b   :  { %v2386_v57 = vmul.f32 %v2383_v50, %v2332_v36 }
0x3bf8   :  { %v2389_v5 = vpop.permute.xlu0 %2388 }
0x3bf9   :  { %v2391_v7 = vmul.f32 %v2389_v5, %v2383_v50 }
0x3bfb   :  { %2393 = vrot.lane.b32.xlu1 %v2391_v7, %s4084_s29 }
0x3c6d   :  { %v2394_v22 = vpop.permute.xlu1 %2393 }
0x3c6e   :  { %v2396_v25 = vadd.f32 %v2394_v22, %v2386_v57 }
0x3c70   :  { %3949 = vtanh.f32 %v2396_v25 }
0x3c76   :  { %v3950_v51 = vpop.eup %3949 }
0x3c77   :  { %2399 = vrot.lane.b32.xlu2 %v3950_v51, %s4083_s28 }
0x3cd1   :  { %v2400_v56 = vpop.permute.xlu2 %2399 }
0x3cd2   :  { %v2402_v58 = vmul.f32 %v2400_v56, %v2383_v50 }
0x3cd4   :  { %2405 = vrot.lane.b32.xlu0 %v2402_v58, %s4084_s29  ;;  %v2070_v58 = vpop.f32.mrf.mxu1 }
0x3d46   :  { %v2406_v14 = vpop.permute.xlu0 %2405 }
0x3d47   :  { %3677 = vmatmul.msk.f32.vlgmr.msrb.gmra.mxu2 %vm64_vm0, %v2406_v14  ;;  %v2071_v14 = vadd.f32 %v4718_v8, %v2070_v58 }
0x3d48   :  { %2677 = vmatpush.msrb.mxu2 %v4673_v52 }
0x3d4a   :  { %2678 = vmatpush.msrb.mxu2 %v4678_v11 }
0x3d4c   :  { %2679 = vmatpush.msrb.mxu2 %v4684_v37 }
0x3d4e   :  { %2680 = vmatpush.msrb.mxu2 %v4690_v53 }
0x3dca   :  { %v2426_v18 = vpop.f32.mrf.mxu2 }
0x3dcb   :  { %v2429_v61 = vadd.f32 %v2426_v18, %v2065_v60 }
0x3dcd   :  { %3951 = vtanh.f32 %v2429_v61  ;;  %v3678_v16 = vmul.f32 -1.442695, %v2429_v61 }
0x3dcf   :  { %3953 = vpow2.f32 %v3678_v16 }
0x3dd3   :  { %v3952_v62 = vpop.eup %3951 }
0x3dd4   :  { %2452 = vrot.lane.b32.xlu1 %v3952_v62, %s4083_s28 }
0x3dd5   :  { %v3954_v0 = vpop.eup %3953 }
0x3dd6   :  { %v2433_v4 = vadd.f32 1.0, %v3954_v0 }
0x3dd8   :  { %3955 = vrcp.f32 %v2433_v4  ;;  %v2445_v28 = vand.u32 2147483648, %v2433_v4  ;;  %vm2439_vm9 = vweird.f32 %v2433_v4  ;;  %v2443_v54 = vand.u32 2147483647, %v2433_v4 }
0x3dda   :  { %v2446_v30 = vor.u32 1.1754944e-38, %v2445_v28  ;;  %vm2444_vm11 = vcmp.eq.f32.partialorder %v2443_v54, 8.507059e+37 }
0x3dde   :  { %v3956_v13 = vpop.eup %3955 }
0x3ddf   :  { %v2435_v26 = vmul.f32 %v3956_v13, %v2433_v4  ;;  %vm2440_vm8 = vweird.f32 %v3956_v13 }
0x3de0   :  { %vm2441_vm10 = vmor %vm2439_vm9, %vm2440_vm8 }
0x3de1   :  { %v2436_v24 = vsub.f32 1.0, %v2435_v26 }
0x3de3   :  { %v2437_v27 = vmul.f32 %v3956_v13, %v2436_v24 }
0x3de5   :  { %v2438_v1 = vadd.f32 %v3956_v13, %v2437_v27 }
0x3de7   :  { %v2442_v29 = vsel %vm2441_vm10, %v3956_v13, %v2438_v1 }
0x3de8   :  { %v2447_v32 = vsel %vm2444_vm11, %v2446_v30, %v2442_v29 }
0x3de9   :  { %v2450_v34 = vmul.f32 %v2447_v32, %v2396_v25 }
0x3e46   :  { %v2453_v10 = vpop.permute.xlu1 %2452 }
0x3e47   :  { %v2455_v33 = vmul.f32 %v2453_v10, %v2447_v32 }
0x3e49   :  { %2457 = vrot.lane.b32.xlu2 %v2455_v33, %s4084_s29 }
0x3ea3   :  { %v2458_v35 = vpop.permute.xlu2 %2457 }
0x3ea4   :  { %v2460_v21 = vadd.f32 %v2458_v35, %v2450_v34 }
0x3ea6   :  { %3957 = vtanh.f32 %v2460_v21 }
0x3eac   :  { %v3958_v12 = vpop.eup %3957 }
0x3ead   :  { %2463 = vrot.lane.b32.xlu0 %v3958_v12, %s4083_s28 }
0x3f1f   :  { %v2464_v36 = vpop.permute.xlu0 %2463 }
0x3f20   :  { %v2466_v39 = vmul.f32 %v2464_v36, %v2447_v32 }
0x3f22   :  { %2469 = vrot.lane.b32.xlu1 %v2466_v39, %s4084_s29  ;;  %v2073_v39 = vpop.f32.mrf.mxu1 }
0x3f94   :  { %v2470_v40 = vpop.permute.xlu1 %2469 }
0x3f95   :  { %3679 = vmatmul.msk.f32.vlgmr.msrb.gmra.mxu3 %vm64_vm0, %v2470_v40  ;;  %v2074_v40 = vadd.f32 %v4718_v8, %v2073_v39 }
0x3f96   :  { %2741 = vmatpush.msrb.mxu3 %v4673_v52 }
0x3f98   :  { %2742 = vmatpush.msrb.mxu3 %v4678_v11 }
0x3f9a   :  { %2743 = vmatpush.msrb.mxu3 %v4684_v37 }
0x3f9c   :  { %2744 = vmatpush.msrb.mxu3 %v4690_v53 }
0x4018   :  { %v2490_v31 = vpop.f32.mrf.mxu3 }
0x4019   :  { %v2493_v41 = vadd.f32 %v2490_v31, %v2068_v19 }
0x401b   :  { %3959 = vtanh.f32 %v2493_v41  ;;  %v3680_v42 = vmul.f32 -1.442695, %v2493_v41 }
0x401d   :  { %3961 = vpow2.f32 %v3680_v42 }
0x4021   :  { %v3960_v59 = vpop.eup %3959 }
0x4022   :  { %2516 = vrot.lane.b32.xlu2 %v3960_v59, %s4083_s28 }
0x4023   :  { %v3962_v23 = vpop.eup %3961 }
0x4024   :  { %v2497_v63 = vadd.f32 1.0, %v3962_v23 }
0x4026   :  { %3963 = vrcp.f32 %v2497_v63  ;;  %v2509_v46 = vand.u32 2147483648, %v2497_v63  ;;  %vm2503_vm13 = vweird.f32 %v2497_v63  ;;  %v2507_v47 = vand.u32 2147483647, %v2497_v63 }
0x4028   :  { %v2510_v2 = vor.u32 1.1754944e-38, %v2509_v46  ;;  %vm2508_vm15 = vcmp.eq.f32.partialorder %v2507_v47, 8.507059e+37 }
0x402c   :  { %v3964_v17 = vpop.eup %3963 }
0x402d   :  { %v2499_v43 = vmul.f32 %v3964_v17, %v2497_v63  ;;  %vm2504_vm12 = vweird.f32 %v3964_v17 }
0x402e   :  { %vm2505_vm14 = vmor %vm2503_vm13, %vm2504_vm12 }
0x402f   :  { %v2500_v15 = vsub.f32 1.0, %v2499_v43 }
0x4031   :  { %v2501_v44 = vmul.f32 %v3964_v17, %v2500_v15 }
0x4033   :  { %v2502_v45 = vadd.f32 %v3964_v17, %v2501_v44 }
0x4035   :  { %v2506_v48 = vsel %vm2505_vm14, %v3964_v17, %v2502_v45 }
0x4036   :  { %v2511_v49 = vsel %vm2508_vm15, %v2510_v2, %v2506_v48 }
0x4037   :  { %v2514_v50 = vmul.f32 %v2511_v49, %v2460_v21 }
0x407c   :  { %v2517_v3 = vpop.permute.xlu2 %2516 }
0x407d   :  { %v2519_v5 = vmul.f32 %v2517_v3, %v2511_v49 }
0x407f   :  { %2521 = vrot.lane.b32.xlu0 %v2519_v5, %s4084_s29 }
0x40f1   :  { %v2522_v7 = vpop.permute.xlu0 %2521 }
0x40f2   :  { %v2524_v57 = vadd.f32 %v2522_v7, %v2514_v50 }
0x40f4   :  { %3965 = vtanh.f32 %v2524_v57 }
0x40fa   :  { %v3966_v22 = vpop.eup %3965 }
0x40fb   :  { %2527 = vrot.lane.b32.xlu1 %v3966_v22, %s4083_s28 }
0x416d   :  { %v2528_v25 = vpop.permute.xlu1 %2527 }
0x416e   :  { %v2530_v51 = vmul.f32 %v2528_v25, %v2511_v49 }
0x4170   :  { %2533 = vrot.lane.b32.xlu2 %v2530_v51, %s4084_s29  ;;  %v2076_v51 = vpop.f32.mrf.mxu1 }
0x41ca   :  { %v2534_v56 = vpop.permute.xlu2 %2533 }
0x41cb   :  { %3681 = vmatmul.msk.f32.vlgmr.msra.gmra.mxu2 %vm64_vm0, %v2534_v56  ;;  %v2077_v56 = vadd.f32 %v4718_v8, %v2076_v51 }
0x41cc   :  { %2805 = vmatpush.msra.mxu2 %v4673_v52 }
0x41ce   :  { %2806 = vmatpush.msra.mxu2 %v4678_v11 }
0x41d0   :  { %2807 = vmatpush.msra.mxu2 %v4684_v37 }
0x41d2   :  { %2808 = vmatpush.msra.mxu2 %v4690_v53 }
0x424e   :  { %v2554_v9 = vpop.f32.mrf.mxu2 }
0x424f   :  { %v2557_v60 = vadd.f32 %v2554_v9, %v2071_v14 }
0x4251   :  { %3967 = vtanh.f32 %v2557_v60  ;;  %v3682_v61 = vmul.f32 -1.442695, %v2557_v60 }
0x4253   :  { %3969 = vpow2.f32 %v3682_v61 }
0x4257   :  { %v3968_v18 = vpop.eup %3967 }
0x4258   :  { %2580 = vrot.lane.b32.xlu0 %v3968_v18, %s4083_s28 }
0x4259   :  { %v3970_v62 = vpop.eup %3969 }
0x425a   :  { %v2561_v16 = vadd.f32 1.0, %v3970_v62 }
0x425c   :  { %3971 = vrcp.f32 %v2561_v16  ;;  %v2573_v27 = vand.u32 2147483648, %v2561_v16  ;;  %vm2567_vm2 = vweird.f32 %v2561_v16  ;;  %v2571_v1 = vand.u32 2147483647, %v2561_v16 }
0x425e   :  { %v2574_v54 = vor.u32 1.1754944e-38, %v2573_v27  ;;  %vm2572_vm4 = vcmp.eq.f32.partialorder %v2571_v1, 8.507059e+37 }
0x4262   :  { %v3972_v0 = vpop.eup %3971 }
0x4263   :  { %v2563_v4 = vmul.f32 %v3972_v0, %v2561_v16  ;;  %vm2568_vm1 = vweird.f32 %v3972_v0 }
0x4264   :  { %vm2569_vm3 = vmor %vm2567_vm2, %vm2568_vm1 }
0x4265   :  { %v2564_v13 = vsub.f32 1.0, %v2563_v4 }
0x4267   :  { %v2565_v26 = vmul.f32 %v3972_v0, %v2564_v13 }
0x4269   :  { %v2566_v24 = vadd.f32 %v3972_v0, %v2565_v26 }
0x426b   :  { %v2570_v28 = vsel %vm2569_vm3, %v3972_v0, %v2566_v24 }
0x426c   :  { %v2575_v30 = vsel %vm2572_vm4, %v2574_v54, %v2570_v28 }
0x426d   :  { %v2578_v32 = vmul.f32 %v2575_v30, %v2524_v57 }
0x42ca   :  { %v2581_v29 = vpop.permute.xlu0 %2580 }
0x42cb   :  { %v2583_v10 = vmul.f32 %v2581_v29, %v2575_v30 }
0x42cd   :  { %2585 = vrot.lane.b32.xlu1 %v2583_v10, %s4084_s29 }
0x433f   :  { %v2586_v33 = vpop.permute.xlu1 %2585 }
0x4340   :  { %v2588_v34 = vadd.f32 %v2586_v33, %v2578_v32  ;;  %v2079_v33 = vpop.f32.mrf.mxu1 }
0x4342   :  { %3973 = vtanh.f32 %v2588_v34 }
0x4348   :  { %v3974_v35 = vpop.eup %3973 }
0x4349   :  { %2591 = vrot.lane.b32.xlu2 %v3974_v35, %s4083_s28 }
0x43a3   :  { %v2592_v21 = vpop.permute.xlu2 %2591 }
0x43a4   :  { %v2594_v12 = vmul.f32 %v2592_v21, %v2575_v30 }
0x43a6   :  { %2597 = vrot.lane.b32.xlu0 %v2594_v12, %s4084_s29 }
0x4418   :  { %v2598_v36 = vpop.permute.xlu0 %2597 }
0x4419   :  { %3683 = vmatmul.msk.f32.vlgmr.msra.gmra.mxu3 %vm64_vm0, %v2598_v36 }
0x441a   :  { %2869 = vmatpush.msra.mxu3 %v4673_v52 }
0x441c   :  { %2870 = vmatpush.msra.mxu3 %v4678_v11 }
0x441e   :  { %2871 = vmatpush.msra.mxu3 %v4684_v37 }
0x4420   :  { %2872 = vmatpush.msra.mxu3 %v4690_v53 }
0x449c   :  { %v2618_v38 = vpop.f32.mrf.mxu3 }
0x449d   :  { %v2621_v19 = vadd.f32 %v2618_v38, %v2074_v40 }
0x449f   :  { %3975 = vtanh.f32 %v2621_v19  ;;  %v3684_v41 = vmul.f32 -1.442695, %v2621_v19 }
0x44a1   :  { %3977 = vpow2.f32 %v3684_v41 }
0x44a5   :  { %v3976_v31 = vpop.eup %3975 }
0x44a6   :  { %2644 = vrot.lane.b32.xlu1 %v3976_v31, %s4083_s28 }
0x44a7   :  { %v3978_v59 = vpop.eup %3977 }
0x44a8   :  { %v2625_v42 = vadd.f32 1.0, %v3978_v59 }
0x44aa   :  { %3979 = vrcp.f32 %v2625_v42  ;;  %v2637_v44 = vand.u32 2147483648, %v2625_v42  ;;  %vm2631_vm6 = vweird.f32 %v2625_v42  ;;  %v2635_v45 = vand.u32 2147483647, %v2625_v42 }
0x44ac   :  { %v2638_v47 = vor.u32 1.1754944e-38, %v2637_v44  ;;  %vm2636_vm8 = vcmp.eq.f32.partialorder %v2635_v45, 8.507059e+37 }
0x44b0   :  { %v3980_v23 = vpop.eup %3979 }
0x44b1   :  { %v2627_v63 = vmul.f32 %v3980_v23, %v2625_v42  ;;  %vm2632_vm5 = vweird.f32 %v3980_v23 }
0x44b2   :  { %vm2633_vm7 = vmor %vm2631_vm6, %vm2632_vm5 }
0x44b3   :  { %v2628_v17 = vsub.f32 1.0, %v2627_v63 }
0x44b5   :  { %v2629_v43 = vmul.f32 %v3980_v23, %v2628_v17 }
0x44b7   :  { %v2630_v15 = vadd.f32 %v3980_v23, %v2629_v43 }
0x44b9   :  { %v2634_v46 = vsel %vm2633_vm7, %v3980_v23, %v2630_v15 }
0x44ba   :  { %v2639_v2 = vsel %vm2636_vm8, %v2638_v47, %v2634_v46 }
0x44bb   :  { %v2642_v49 = vmul.f32 %v2639_v2, %v2588_v34  ;;  %v2080_v34 = vadd.f32 %v4718_v8, %v2079_v33 }
0x4518   :  { %v2645_v48 = vpop.permute.xlu1 %2644 }
0x4519   :  { %v2647_v3 = vmul.f32 %v2645_v48, %v2639_v2 }
0x451b   :  { %2649 = vrot.lane.b32.xlu2 %v2647_v3, %s4084_s29 }
0x4575   :  { %v2650_v5 = vpop.permute.xlu2 %2649 }
0x4576   :  { %v2652_v50 = vadd.f32 %v2650_v5, %v2642_v49  ;;  %v2082_v49 = vpop.f32.mrf.mxu1  ;;  %v4851_v5 = vld [vmem:[%s5049_s6] ss:$0 sm:$0xff] }
0x4578   :  { %3981 = vtanh.f32 %v2652_v50 }
0x457e   :  { %v3982_v7 = vpop.eup %3981 }
0x457f   :  { %2655 = vrot.lane.b32.xlu0 %v3982_v7, %s4083_s28 }
0x45f1   :  { %v2656_v57 = vpop.permute.xlu0 %2655 }
0x45f2   :  { %v2658_v22 = vmul.f32 %v2656_v57, %v2639_v2 }
0x45f4   :  { %2661 = vrot.lane.b32.xlu1 %v2658_v22, %s4084_s29 }
0x4666   :  { %v2662_v25 = vpop.permute.xlu1 %2661 }
0x4667   :  { %3685 = vmatmul.msk.f32.vlgmr.msrb.gmra.mxu2 %vm64_vm0, %v2662_v25 }
0x4668   :  { %2933 = vmatpush.msrb.mxu2 %v4673_v52 }
0x466a   :  { %2934 = vmatpush.msrb.mxu2 %v4678_v11 }
0x466c   :  { %2935 = vmatpush.msrb.mxu2 %v4684_v37 }
0x466e   :  { %2936 = vmatpush.msrb.mxu2 %v4690_v53 }
0x46ea   :  { %v2682_v58 = vpop.f32.mrf.mxu2 }
0x46eb   :  { %v2685_v14 = vadd.f32 %v2682_v58, %v2077_v56 }
0x46ed   :  { %3983 = vtanh.f32 %v2685_v14  ;;  %v3686_v60 = vmul.f32 -1.442695, %v2685_v14 }
0x46ef   :  { %3985 = vpow2.f32 %v3686_v60 }
0x46f3   :  { %v3984_v9 = vpop.eup %3983 }
0x46f4   :  { %2708 = vrot.lane.b32.xlu2 %v3984_v9, %s4083_s28 }
0x46f5   :  { %v3986_v18 = vpop.eup %3985 }
0x46f6   :  { %v2689_v61 = vadd.f32 1.0, %v3986_v18 }
0x46f8   :  { %3987 = vrcp.f32 %v2689_v61  ;;  %v2701_v53 = vand.u32 2147483648, %v2689_v61  ;;  %vm2695_vm10 = vweird.f32 %v2689_v61  ;;  %v2699_v0 = vand.u32 2147483647, %v2689_v61 }
0x46fa   :  { %v2702_v13 = vor.u32 1.1754944e-38, %v2701_v53  ;;  %vm2700_vm12 = vcmp.eq.f32.partialorder %v2699_v0, 8.507059e+37 }
0x46fe   :  { %v3988_v52 = vpop.eup %3987 }
0x46ff   :  { %v2691_v11 = vmul.f32 %v3988_v52, %v2689_v61  ;;  %vm2696_vm9 = vweird.f32 %v3988_v52 }
0x4700   :  { %vm2697_vm11 = vmor %vm2695_vm10, %vm2696_vm9 }
0x4701   :  { %v2692_v62 = vsub.f32 1.0, %v2691_v11 }
0x4703   :  { %v2693_v37 = vmul.f32 %v3988_v52, %v2692_v62 }
0x4705   :  { %v2694_v16 = vadd.f32 %v3988_v52, %v2693_v37 }
0x4707   :  { %v2698_v4 = vsel %vm2697_vm11, %v3988_v52, %v2694_v16 }
0x4708   :  { %v2703_v24 = vsel %vm2700_vm12, %v2702_v13, %v2698_v4 }
0x4709   :  { %v2706_v1 = vmul.f32 %v2703_v24, %v2652_v50  ;;  %v2083_v50 = vadd.f32 %v4851_v5, %v2082_v49 }
0x474e   :  { %v2709_v26 = vpop.permute.xlu2 %2708 }
0x474f   :  { %v2711_v27 = vmul.f32 %v2709_v26, %v2703_v24 }
0x4751   :  { %2713 = vrot.lane.b32.xlu0 %v2711_v27, %s4084_s29 }
0x47c3   :  { %v2714_v28 = vpop.permute.xlu0 %2713 }
0x47c4   :  { %v2716_v54 = vadd.f32 %v2714_v28, %v2706_v1  ;;  %v2085_v28 = vpop.f32.mrf.mxu1 }
0x47c6   :  { %3989 = vtanh.f32 %v2716_v54 }
0x47cc   :  { %v3990_v29 = vpop.eup %3989 }
0x47cd   :  { %2719 = vrot.lane.b32.xlu1 %v3990_v29, %s4083_s28 }
0x483f   :  { %v2720_v30 = vpop.permute.xlu1 %2719 }
0x4840   :  { %v2722_v10 = vmul.f32 %v2720_v30, %v2703_v24 }
0x4842   :  { %2725 = vrot.lane.b32.xlu2 %v2722_v10, %s4084_s29 }
0x489c   :  { %v2726_v32 = vpop.permute.xlu2 %2725 }
0x489d   :  { %3687 = vmatmul.msk.f32.vlgmr.msrb.gmra.mxu3 %vm64_vm0, %v2726_v32 }
0x4920   :  { %v2746_v35 = vpop.f32.mrf.mxu3 }
0x4921   :  { %v2749_v21 = vadd.f32 %v2746_v35, %v2080_v34 }
0x4923   :  { %3991 = vtanh.f32 %v2749_v21  ;;  %v3688_v36 = vmul.f32 -1.442695, %v2749_v21 }
0x4925   :  { %3993 = vpow2.f32 %v3688_v36 }
0x4929   :  { %v3992_v12 = vpop.eup %3991 }
0x492a   :  { %2772 = vrot.lane.b32.xlu0 %v3992_v12, %s4083_s28 }
0x492b   :  { %v3994_v39 = vpop.eup %3993 }
0x492c   :  { %v2753_v40 = vadd.f32 1.0, %v3994_v39 }
0x492e   :  { %3995 = vrcp.f32 %v2753_v40  ;;  %v2765_v42 = vand.u32 2147483648, %v2753_v40  ;;  %vm2759_vm14 = vweird.f32 %v2753_v40  ;;  %v2763_v8 = vand.u32 2147483647, %v2753_v40 }
0x4930   :  { %v2766_v63 = vor.u32 1.1754944e-38, %v2765_v42  ;;  %vm2764_vm1 = vcmp.eq.f32.partialorder %v2763_v8, 8.507059e+37 }
0x4934   :  { %v3996_v38 = vpop.eup %3995 }
0x4935   :  { %v2755_v19 = vmul.f32 %v3996_v38, %v2753_v40  ;;  %vm2760_vm13 = vweird.f32 %v3996_v38 }
0x4936   :  { %vm2761_vm15 = vmor %vm2759_vm14, %vm2760_vm13 }
0x4937   :  { %v2756_v31 = vsub.f32 1.0, %v2755_v19 }
0x4939   :  { %v2757_v41 = vmul.f32 %v3996_v38, %v2756_v31 }
0x493b   :  { %v2758_v59 = vadd.f32 %v3996_v38, %v2757_v41 }
0x493d   :  { %v2762_v23 = vsel %vm2761_vm15, %v3996_v38, %v2758_v59 }
0x493e   :  { %v2767_v43 = vsel %vm2764_vm1, %v2766_v63, %v2762_v23 }
0x493f   :  { %v2770_v44 = vmul.f32 %v2767_v43, %v2716_v54  ;;  %v2086_v54 = vadd.f32 %v4851_v5, %v2085_v28 }
0x499c   :  { %v2773_v17 = vpop.permute.xlu0 %2772 }
0x499d   :  { %v2775_v15 = vmul.f32 %v2773_v17, %v2767_v43 }
0x499f   :  { %2777 = vrot.lane.b32.xlu1 %v2775_v15, %s4084_s29 }
0x4a11   :  { %v2778_v45 = vpop.permute.xlu1 %2777 }
0x4a12   :  { %v2780_v46 = vadd.f32 %v2778_v45, %v2770_v44  ;;  %v2088_v45 = vpop.f32.mrf.mxu1 }
0x4a14   :  { %3997 = vtanh.f32 %v2780_v46 }
0x4a1a   :  { %v3998_v47 = vpop.eup %3997 }
0x4a1b   :  { %2783 = vrot.lane.b32.xlu2 %v3998_v47, %s4083_s28 }
0x4a75   :  { %v2784_v48 = vpop.permute.xlu2 %2783 }
0x4a76   :  { %v2786_v2 = vmul.f32 %v2784_v48, %v2767_v43 }
0x4a78   :  { %2789 = vrot.lane.b32.xlu0 %v2786_v2, %s4084_s29 }
0x4aea   :  { %v2790_v3 = vpop.permute.xlu0 %2789 }
0x4aeb   :  { %3689 = vmatmul.msk.f32.vlgmr.msra.gmra.mxu2 %vm64_vm0, %v2790_v3 }
0x4b6e   :  { %v2810_v7 = vpop.f32.mrf.mxu2 }
0x4b6f   :  { %v2813_v57 = vadd.f32 %v2810_v7, %v2083_v50 }
0x4b71   :  { %3999 = vtanh.f32 %v2813_v57  ;;  %v3690_v25 = vmul.f32 -1.442695, %v2813_v57 }
0x4b73   :  { %4001 = vpow2.f32 %v3690_v25 }
0x4b77   :  { %v4000_v22 = vpop.eup %3999 }
0x4b78   :  { %2836 = vrot.lane.b32.xlu1 %v4000_v22, %s4083_s28 }
0x4b79   :  { %v4002_v51 = vpop.eup %4001 }
0x4b7a   :  { %v2817_v56 = vadd.f32 1.0, %v4002_v51 }
0x4b7c   :  { %4003 = vrcp.f32 %v2817_v56  ;;  %v2829_v61 = vand.u32 2147483648, %v2817_v56  ;;  %vm2823_vm3 = vweird.f32 %v2817_v56  ;;  %v2827_v52 = vand.u32 2147483647, %v2817_v56 }
0x4b7e   :  { %v2830_v62 = vor.u32 1.1754944e-38, %v2829_v61  ;;  %vm2828_vm5 = vcmp.eq.f32.partialorder %v2827_v52, 8.507059e+37 }
0x4b82   :  { %v4004_v58 = vpop.eup %4003 }
0x4b83   :  { %v2819_v14 = vmul.f32 %v4004_v58, %v2817_v56  ;;  %vm2824_vm2 = vweird.f32 %v4004_v58 }
0x4b84   :  { %vm2825_vm4 = vmor %vm2823_vm3, %vm2824_vm2 }
0x4b85   :  { %v2820_v9 = vsub.f32 1.0, %v2819_v14 }
0x4b87   :  { %v2821_v60 = vmul.f32 %v4004_v58, %v2820_v9 }
0x4b89   :  { %v2822_v18 = vadd.f32 %v4004_v58, %v2821_v60 }
0x4b8b   :  { %v2826_v11 = vsel %vm2825_vm4, %v4004_v58, %v2822_v18 }
0x4b8c   :  { %v2831_v16 = vsel %vm2828_vm5, %v2830_v62, %v2826_v11 }
0x4b8d   :  { %v2834_v0 = vmul.f32 %v2831_v16, %v2780_v46  ;;  %v2089_v46 = vadd.f32 %v4851_v5, %v2088_v45 }
0x4bea   :  { %v2837_v37 = vpop.permute.xlu1 %2836 }
0x4beb   :  { %v2839_v53 = vmul.f32 %v2837_v37, %v2831_v16 }
0x4bed   :  { %2841 = vrot.lane.b32.xlu2 %v2839_v53, %s4084_s29  ;;  %v4880_v53 = vld [vmem:[%s5050_s5 + $0x10] sm:$0xff] }
0x4c47   :  { %v2842_v4 = vpop.permute.xlu2 %2841 }
0x4c48   :  { %v2844_v13 = vadd.f32 %v2842_v4, %v2834_v0  ;;  %v4887_v0 = vld [vmem:[%s5050_s5 + $0x8] sm:$0xff]  ;;  %v4894_v4 = vld [vmem:[%s5050_s5] sm:$0xff] }
0x4c4a   :  { %4005 = vtanh.f32 %v2844_v13 }
0x4c50   :  { %v4006_v26 = vpop.eup %4005 }
0x4c51   :  { %2847 = vrot.lane.b32.xlu0 %v4006_v26, %s4083_s28 }
0x4cc3   :  { %v2848_v24 = vpop.permute.xlu0 %2847 }
0x4cc4   :  { %v2850_v27 = vmul.f32 %v2848_v24, %v2831_v16  ;;  %v4875_v16 = vld [vmem:[%s5050_s5 + $0x18] sm:$0xff] }
0x4cc5   :  { %3003 = vmatpush.msrb.mxu3 %v4875_v16  ;;  %3073 = vmatpush.msra.mxu2 %v4875_v16 }
0x4cc6   :  { %2853 = vrot.lane.b32.xlu1 %v2850_v27, %s4084_s29  ;;  %v2091_v27 = vpop.f32.mrf.mxu1 }
0x4cc7   :  { %3004 = vmatpush.msrb.mxu3 %v4880_v53  ;;  %3074 = vmatpush.msra.mxu2 %v4880_v53 }
0x4cc9   :  { %3005 = vmatpush.msrb.mxu3 %v4887_v0  ;;  %3075 = vmatpush.msra.mxu2 %v4887_v0 }
0x4ccb   :  { %3006 = vmatpush.msrb.mxu3 %v4894_v4  ;;  %3076 = vmatpush.msra.mxu2 %v4894_v4 }
0x4d38   :  { %v2854_v1 = vpop.permute.xlu1 %2853 }
0x4d39   :  { %3691 = vmatmul.msk.f32.vlgmr.msra.gmra.mxu3 %vm64_vm0, %v2854_v1  ;;  %v2092_v1 = vadd.f32 %v4851_v5, %v2091_v27 }
0x4d3a   :  { %3143 = vmatpush.msra.mxu3 %v4875_v16 }
0x4d3c   :  { %3144 = vmatpush.msra.mxu3 %v4880_v53 }
0x4d3e   :  { %3145 = vmatpush.msra.mxu3 %v4887_v0 }
0x4d40   :  { %3146 = vmatpush.msra.mxu3 %v4894_v4 }
0x4dbc   :  { %v2874_v29 = vpop.f32.mrf.mxu3 }
0x4dbd   :  { %v2877_v30 = vadd.f32 %v2874_v29, %v2086_v54 }
0x4dbf   :  { %4007 = vtanh.f32 %v2877_v30  ;;  %v3692_v32 = vmul.f32 -1.442695, %v2877_v30 }
0x4dc1   :  { %4009 = vpow2.f32 %v3692_v32 }
0x4dc5   :  { %v4008_v10 = vpop.eup %4007 }
0x4dc6   :  { %2900 = vrot.lane.b32.xlu2 %v4008_v10, %s4083_s28 }
0x4dc7   :  { %v4010_v33 = vpop.eup %4009 }
0x4dc8   :  { %v2881_v34 = vadd.f32 1.0, %v4010_v33 }
0x4dca   :  { %4011 = vrcp.f32 %v2881_v34  ;;  %v2893_v40 = vand.u32 2147483648, %v2881_v34  ;;  %vm2887_vm7 = vweird.f32 %v2881_v34  ;;  %v2891_v38 = vand.u32 2147483647, %v2881_v34 }
0x4dcc   :  { %v2894_v31 = vor.u32 1.1754944e-38, %v2893_v40  ;;  %vm2892_vm9 = vcmp.eq.f32.partialorder %v2891_v38, 8.507059e+37 }
0x4dd0   :  { %v4012_v35 = vpop.eup %4011 }
0x4dd1   :  { %v2883_v21 = vmul.f32 %v4012_v35, %v2881_v34  ;;  %vm2888_vm6 = vweird.f32 %v4012_v35 }
0x4dd2   :  { %vm2889_vm8 = vmor %vm2887_vm7, %vm2888_vm6 }
0x4dd3   :  { %v2884_v12 = vsub.f32 1.0, %v2883_v21 }
0x4dd5   :  { %v2885_v36 = vmul.f32 %v4012_v35, %v2884_v12 }
0x4dd7   :  { %v2886_v39 = vadd.f32 %v4012_v35, %v2885_v36 }
0x4dd9   :  { %v2890_v19 = vsel %vm2889_vm8, %v4012_v35, %v2886_v39 }
0x4dda   :  { %v2895_v59 = vsel %vm2892_vm9, %v2894_v31, %v2890_v19 }
0x4ddb   :  { %v2898_v8 = vmul.f32 %v2895_v59, %v2844_v13 }
0x4e20   :  { %v2901_v41 = vpop.permute.xlu2 %2900 }
0x4e21   :  { %v2903_v42 = vmul.f32 %v2901_v41, %v2895_v59 }
0x4e23   :  { %2905 = vrot.lane.b32.xlu0 %v2903_v42, %s4084_s29 }
0x4e95   :  { %v2906_v23 = vpop.permute.xlu0 %2905 }
0x4e96   :  { %v2908_v63 = vadd.f32 %v2906_v23, %v2898_v8 }
0x4e98   :  { %4013 = vtanh.f32 %v2908_v63 }
0x4e9e   :  { %v4014_v17 = vpop.eup %4013 }
0x4e9f   :  { %2911 = vrot.lane.b32.xlu1 %v4014_v17, %s4083_s28 }
0x4f11   :  { %v2912_v43 = vpop.permute.xlu1 %2911 }
0x4f12   :  { %v2914_v15 = vmul.f32 %v2912_v43, %v2895_v59 }
0x4f14   :  { %2917 = vrot.lane.b32.xlu2 %v2914_v15, %s4084_s29  ;;  %v2094_v15 = vpop.f32.mrf.mxu1 }
0x4f6e   :  { %v2918_v44 = vpop.permute.xlu2 %2917 }
0x4f6f   :  { %3693 = vmatmul.msk.f32.vlgmr.msrb.gmra.mxu2 %vm64_vm0, %v2918_v44  ;;  %v2095_v44 = vadd.f32 %v4851_v5, %v2094_v15 }
0x4f70   :  { %3213 = vmatpush.msrb.mxu2 %v4875_v16 }
0x4f72   :  { %3214 = vmatpush.msrb.mxu2 %v4880_v53 }
0x4f74   :  { %3215 = vmatpush.msrb.mxu2 %v4887_v0 }
0x4f76   :  { %3216 = vmatpush.msrb.mxu2 %v4894_v4 }
0x4ff2   :  { %v2938_v47 = vpop.f32.mrf.mxu2 }
0x4ff3   :  { %v2941_v48 = vadd.f32 %v2938_v47, %v2089_v46 }
0x4ff5   :  { %4015 = vtanh.f32 %v2941_v48  ;;  %v3694_v3 = vmul.f32 -1.442695, %v2941_v48 }
0x4ff7   :  { %4017 = vpow2.f32 %v3694_v3 }
0x4ffb   :  { %v4016_v2 = vpop.eup %4015 }
0x4ffc   :  { %2964 = vrot.lane.b32.xlu0 %v4016_v2, %s4083_s28 }
0x4ffd   :  { %v4018_v49 = vpop.eup %4017 }
0x4ffe   :  { %v2945_v50 = vadd.f32 1.0, %v4018_v49 }
0x5000   :  { %4019 = vrcp.f32 %v2945_v50  ;;  %v2957_v56 = vand.u32 2147483648, %v2945_v50  ;;  %vm2951_vm11 = vweird.f32 %v2945_v50  ;;  %v2955_v58 = vand.u32 2147483647, %v2945_v50 }
0x5002   :  { %v2958_v9 = vor.u32 1.1754944e-38, %v2957_v56  ;;  %vm2956_vm13 = vcmp.eq.f32.partialorder %v2955_v58, 8.507059e+37 }
0x5006   :  { %v4020_v7 = vpop.eup %4019 }
0x5007   :  { %v2947_v57 = vmul.f32 %v4020_v7, %v2945_v50  ;;  %vm2952_vm10 = vweird.f32 %v4020_v7 }
0x5008   :  { %vm2953_vm12 = vmor %vm2951_vm11, %vm2952_vm10 }
0x5009   :  { %v2948_v22 = vsub.f32 1.0, %v2947_v57 }
0x500b   :  { %v2949_v25 = vmul.f32 %v4020_v7, %v2948_v22 }
0x500d   :  { %v2950_v51 = vadd.f32 %v4020_v7, %v2949_v25 }
0x500f   :  { %v2954_v14 = vsel %vm2953_vm12, %v4020_v7, %v2950_v51 }
0x5010   :  { %v2959_v18 = vsel %vm2956_vm13, %v2958_v9, %v2954_v14 }
0x5011   :  { %v2962_v52 = vmul.f32 %v2959_v18, %v2908_v63 }
0x506e   :  { %v2965_v60 = vpop.permute.xlu0 %2964 }
0x506f   :  { %v2967_v61 = vmul.f32 %v2965_v60, %v2959_v18 }
0x5071   :  { %2969 = vrot.lane.b32.xlu1 %v2967_v61, %s4084_s29 }
0x50e3   :  { %v2970_v11 = vpop.permute.xlu1 %2969 }
0x50e4   :  { %v4868_v62 = vadd.f32 %v2970_v11, %v2962_v52 }
0x50e6   :  { %4021 = vtanh.f32 %v4868_v62 }
0x50ec   :  { %v4022_v37 = vpop.eup %4021 }
0x50ed   :  { %2975 = vrot.lane.b32.xlu2 %v4022_v37, %s4083_s28 }
0x5147   :  { %v2976_v13 = vpop.permute.xlu2 %2975 }
0x5148   :  { %v2978_v26 = vmul.f32 %v2976_v13, %v2959_v18 }
0x514a   :  { %2980 = vrot.lane.b32.xlu0 %v2978_v26, %s4084_s29  ;;  %v2097_v26 = vpop.f32.mrf.mxu1 }
0x51bc   :  { %v2981_v24 = vpop.permute.xlu0 %2980 }
0x51bd   :  { %2983 = vst.msk [vmem:[#allocation3] sm:$0xff] %vm64_vm0, %v2981_v24  ;;  %3695 = vmatmul.msk.f32.vlgmr.msrb.gmra.mxu3 %vm64_vm0, %v2981_v24  ;;  %v2098_v24 = vadd.f32 %v4851_v5, %v2097_v26 }
0x51be   :  { %3283 = vmatpush.msrb.mxu3 %v4875_v16 }
0x51c0   :  { %3284 = vmatpush.msrb.mxu3 %v4880_v53 }
0x51c2   :  { %3285 = vmatpush.msrb.mxu3 %v4887_v0 }
0x51c4   :  { %3286 = vmatpush.msrb.mxu3 %v4894_v4 }
0x5240   :  { %v3008_v28 = vpop.f32.mrf.mxu3 }
0x5241   :  { %v3011_v54 = vadd.f32 %v3008_v28, %v2092_v1 }
0x5243   :  { %4023 = vtanh.f32 %v3011_v54  ;;  %v3696_v30 = vmul.f32 -1.442695, %v3011_v54 }
0x5245   :  { %4025 = vpow2.f32 %v3696_v30 }
0x5249   :  { %v4024_v29 = vpop.eup %4023 }
0x524a   :  { %3034 = vrot.lane.b32.xlu1 %v4024_v29, %s4083_s28 }
0x524b   :  { %v4026_v10 = vpop.eup %4025 }
0x524c   :  { %v3015_v32 = vadd.f32 1.0, %v4026_v10 }
0x524e   :  { %4027 = vrcp.f32 %v3015_v32  ;;  %v3027_v36 = vand.u32 2147483648, %v3015_v32  ;;  %vm3021_vm15 = vweird.f32 %v3015_v32  ;;  %v3025_v39 = vand.u32 2147483647, %v3015_v32 }
0x5250   :  { %v3028_v38 = vor.u32 1.1754944e-38, %v3027_v36  ;;  %vm3026_vm2 = vcmp.eq.f32.partialorder %v3025_v39, 8.507059e+37 }
0x5254   :  { %v4028_v33 = vpop.eup %4027 }
0x5255   :  { %v3017_v34 = vmul.f32 %v4028_v33, %v3015_v32  ;;  %vm3022_vm14 = vweird.f32 %v4028_v33 }
0x5256   :  { %vm3023_vm1 = vmor %vm3021_vm15, %vm3022_vm14 }
0x5257   :  { %v3018_v35 = vsub.f32 1.0, %v3017_v34 }
0x5259   :  { %v3019_v21 = vmul.f32 %v4028_v33, %v3018_v35 }
0x525b   :  { %v3020_v12 = vadd.f32 %v4028_v33, %v3019_v21 }
0x525d   :  { %v3024_v40 = vsel %vm3023_vm1, %v4028_v33, %v3020_v12 }
0x525e   :  { %v3029_v31 = vsel %vm3026_vm2, %v3028_v38, %v3024_v40 }
0x525f   :  { %v3032_v59 = vmul.f32 %v3029_v31, %v4868_v62 }
0x52bc   :  { %v3035_v19 = vpop.permute.xlu1 %3034 }
0x52bd   :  { %v3037_v41 = vmul.f32 %v3035_v19, %v3029_v31 }
0x52bf   :  { %3039 = vrot.lane.b32.xlu2 %v3037_v41, %s4084_s29 }
0x5319   :  { %v3040_v42 = vpop.permute.xlu2 %3039 }
0x531a   :  { %v3042_v8 = vadd.f32 %v3040_v42, %v3032_v59  ;;  %v2100_v42 = vpop.f32.mrf.mxu1 }
0x531c   :  { %4029 = vtanh.f32 %v3042_v8 }
0x5322   :  { %v4030_v23 = vpop.eup %4029 }
0x5323   :  { %3045 = vrot.lane.b32.xlu0 %v4030_v23, %s4083_s28 }
0x5395   :  { %v3046_v63 = vpop.permute.xlu0 %3045 }
0x5396   :  { %v3048_v17 = vmul.f32 %v3046_v63, %v3029_v31 }
0x5398   :  { %3050 = vrot.lane.b32.xlu1 %v3048_v17, %s4084_s29 }
0x540a   :  { %v3051_v43 = vpop.permute.xlu1 %3050 }
0x540b   :  { %3053 = vst.msk [vmem:[#allocation3 + $0x8] sm:$0xff] %vm64_vm0, %v3051_v43  ;;  %3697 = vmatmul.msk.f32.vlgmr.msra.gmra.mxu2 %vm64_vm0, %v3051_v43 }
0x540c   :  { %3353 = vmatpush.msra.mxu2 %v4875_v16 }
0x540e   :  { %3354 = vmatpush.msra.mxu2 %v4880_v53 }
0x5410   :  { %3355 = vmatpush.msra.mxu2 %v4887_v0 }
0x5412   :  { %3356 = vmatpush.msra.mxu2 %v4894_v4 }
0x548e   :  { %v3078_v45 = vpop.f32.mrf.mxu2 }
0x548f   :  { %v3081_v46 = vadd.f32 %v3078_v45, %v2095_v44 }
0x5491   :  { %4031 = vtanh.f32 %v3081_v46  ;;  %v3698_v48 = vmul.f32 -1.442695, %v3081_v46 }
0x5493   :  { %4033 = vpow2.f32 %v3698_v48 }
0x5497   :  { %v4032_v47 = vpop.eup %4031 }
0x5498   :  { %3104 = vrot.lane.b32.xlu2 %v4032_v47, %s4083_s28 }
0x5499   :  { %v4034_v2 = vpop.eup %4033 }
0x549a   :  { %v3085_v3 = vadd.f32 1.0, %v4034_v2 }
0x549c   :  { %4035 = vrcp.f32 %v3085_v3  ;;  %v3097_v25 = vand.u32 2147483648, %v3085_v3  ;;  %vm3091_vm4 = vweird.f32 %v3085_v3  ;;  %v3095_v51 = vand.u32 2147483647, %v3085_v3 }
0x549e   :  { %v3098_v58 = vor.u32 1.1754944e-38, %v3097_v25  ;;  %vm3096_vm6 = vcmp.eq.f32.partialorder %v3095_v51, 8.507059e+37 }
0x54a2   :  { %v4036_v49 = vpop.eup %4035 }
0x54a3   :  { %v3087_v50 = vmul.f32 %v4036_v49, %v3085_v3  ;;  %vm3092_vm3 = vweird.f32 %v4036_v49 }
0x54a4   :  { %vm3093_vm5 = vmor %vm3091_vm4, %vm3092_vm3 }
0x54a5   :  { %v3088_v7 = vsub.f32 1.0, %v3087_v50 }
0x54a7   :  { %v3089_v57 = vmul.f32 %v4036_v49, %v3088_v7 }
0x54a9   :  { %v3090_v22 = vadd.f32 %v4036_v49, %v3089_v57 }
0x54ab   :  { %v3094_v56 = vsel %vm3093_vm5, %v4036_v49, %v3090_v22 }
0x54ac   :  { %v3099_v9 = vsel %vm3096_vm6, %v3098_v58, %v3094_v56 }
0x54ad   :  { %v3102_v18 = vmul.f32 %v3099_v9, %v3042_v8  ;;  %v2101_v8 = vadd.f32 %v4851_v5, %v2100_v42 }
0x54f2   :  { %v3105_v14 = vpop.permute.xlu2 %3104 }
0x54f3   :  { %v3107_v60 = vmul.f32 %v3105_v14, %v3099_v9 }
0x54f5   :  { %3109 = vrot.lane.b32.xlu0 %v3107_v60, %s4084_s29 }
0x5567   :  { %v3110_v61 = vpop.permute.xlu0 %3109 }
0x5568   :  { %v3112_v52 = vadd.f32 %v3110_v61, %v3102_v18  ;;  %v2104_v61 = vadd.f32 %v4851_v5, %v4745_v6 }
0x556a   :  { %4037 = vtanh.f32 %v3112_v52 }
0x5570   :  { %v4038_v11 = vpop.eup %4037 }
0x5571   :  { %3115 = vrot.lane.b32.xlu1 %v4038_v11, %s4083_s28 }
0x55e3   :  { %v3116_v62 = vpop.permute.xlu1 %3115 }
0x55e4   :  { %v3118_v37 = vmul.f32 %v3116_v62, %v3099_v9 }
0x55e6   :  { %3120 = vrot.lane.b32.xlu2 %v3118_v37, %s4084_s29 }
0x5640   :  { %v3121_v13 = vpop.permute.xlu2 %3120 }
0x5641   :  { %3123 = vst.msk [vmem:[#allocation3 + $0x10] sm:$0xff] %vm64_vm0, %v3121_v13  ;;  %3699 = vmatmul.msk.f32.vlgmr.msra.gmra.mxu3 %vm64_vm0, %v3121_v13 }
0x5642   :  { %3423 = vmatpush.msra.mxu3 %v4875_v16 }
0x5644   :  { %3424 = vmatpush.msra.mxu3 %v4880_v53 }
0x5646   :  { %3425 = vmatpush.msra.mxu3 %v4887_v0 }
0x5648   :  { %3426 = vmatpush.msra.mxu3 %v4894_v4 }
0x56c4   :  { %v3148_v27 = vpop.f32.mrf.mxu3 }
0x56c5   :  { %v3151_v1 = vadd.f32 %v3148_v27, %v2098_v24 }
0x56c7   :  { %4039 = vtanh.f32 %v3151_v1  ;;  %v3700_v54 = vmul.f32 -1.442695, %v3151_v1 }
0x56c9   :  { %4041 = vpow2.f32 %v3700_v54 }
0x56cd   :  { %v4040_v28 = vpop.eup %4039 }
0x56ce   :  { %3174 = vrot.lane.b32.xlu0 %v4040_v28, %s4083_s28 }
0x56cf   :  { %v4042_v29 = vpop.eup %4041 }
0x56d0   :  { %v3155_v30 = vadd.f32 1.0, %v4042_v29 }
0x56d2   :  { %4043 = vrcp.f32 %v3155_v30  ;;  %v3167_v4 = vand.u32 2147483648, %v3155_v30  ;;  %vm3161_vm8 = vweird.f32 %v3155_v30  ;;  %v3165_v33 = vand.u32 2147483647, %v3155_v30 }
0x56d4   :  { %v3168_v35 = vor.u32 1.1754944e-38, %v3167_v4  ;;  %vm3166_vm10 = vcmp.eq.f32.partialorder %v3165_v33, 8.507059e+37 }
0x56d8   :  { %v4044_v16 = vpop.eup %4043 }
0x56d9   :  { %v3157_v53 = vmul.f32 %v4044_v16, %v3155_v30  ;;  %vm3162_vm7 = vweird.f32 %v4044_v16 }
0x56da   :  { %vm3163_vm9 = vmor %vm3161_vm8, %vm3162_vm7 }
0x56db   :  { %v3158_v10 = vsub.f32 1.0, %v3157_v53 }
0x56dd   :  { %v3159_v0 = vmul.f32 %v4044_v16, %v3158_v10 }
0x56df   :  { %v3160_v32 = vadd.f32 %v4044_v16, %v3159_v0 }
0x56e1   :  { %v3164_v34 = vsel %vm3163_vm9, %v4044_v16, %v3160_v32 }
0x56e2   :  { %v3169_v12 = vsel %vm3166_vm10, %v3168_v35, %v3164_v34 }
0x56e3   :  { %v3172_v39 = vmul.f32 %v3169_v12, %v3112_v52 }
0x5740   :  { %v3175_v21 = vpop.permute.xlu0 %3174 }
0x5741   :  { %v3177_v36 = vmul.f32 %v3175_v21, %v3169_v12 }
0x5743   :  { %3179 = vrot.lane.b32.xlu1 %v3177_v36, %s4084_s29  ;;  %v3484_v36 = vld [vmem:[%s5051_s7 + $0x10] sm:$0xff] }
0x57b5   :  { %v3180_v40 = vpop.permute.xlu1 %3179 }
0x57b6   :  { %v3182_v38 = vadd.f32 %v3180_v40, %v3172_v39  ;;  %v3483_v39 = vld [vmem:[%s5051_s7 + $0x8] sm:$0xff]  ;;  %v3482_v40 = vld [vmem:[%s5051_s7] sm:$0xff] }
0x57b8   :  { %4045 = vtanh.f32 %v3182_v38 }
0x57be   :  { %v4046_v19 = vpop.eup %4045 }
0x57bf   :  { %3185 = vrot.lane.b32.xlu2 %v4046_v19, %s4083_s28  ;;  %v3474_v19 = vld [vmem:[#allocation3] sm:$0xff] }
0x5819   :  { %v3186_v31 = vpop.permute.xlu2 %3185 }
0x581a   :  { %v3188_v41 = vmul.f32 %v3186_v31, %v3169_v12  ;;  %v3485_v12 = vld [vmem:[%s5051_s7 + $0x18] sm:$0xff]  ;;  %v3475_v31 = vld [vmem:[#allocation3 + $0x8] sm:$0xff] }
0x581c   :  { %3190 = vrot.lane.b32.xlu0 %v3188_v41, %s4084_s29  ;;  %v3476_v41 = vld [vmem:[#allocation3 + $0x10] sm:$0xff] }
0x588e   :  { %v3191_v59 = vpop.permute.xlu0 %3190 }
0x588f   :  { %3193 = vst.msk [vmem:[#allocation3 + $0x18] sm:$0xff] %vm64_vm0, %v3191_v59  ;;  %3701 = vmatmul.msk.f32.vlgmr.msrb.gmra.mxu2 %vm64_vm0, %v3191_v59 }
0x5890   :  { %3526 = vmatpush.msrb.mxu2 %v3485_v12 }
0x5892   :  { %3527 = vmatpush.msrb.mxu2 %v3484_v36 }
0x5894   :  { %3528 = vmatpush.msrb.mxu2 %v3483_v39 }
0x5896   :  { %3529 = vmatpush.msrb.mxu2 %v3482_v40  ;;  %v3477_v59 = vld [vmem:[#allocation3 + $0x18] sm:$0xff] }
0x5912   :  { %v3218_v23 = vpop.f32.mrf.mxu2 }
0x5913   :  { %v3221_v63 = vadd.f32 %v3218_v23, %v2101_v8  ;;  %v2107_v23 = vadd.f32 %v4851_v5, %v4748_v55 }
0x5915   :  { %4047 = vtanh.f32 %v3221_v63  ;;  %v3702_v43 = vmul.f32 -1.442695, %v3221_v63 }
0x5917   :  { %4049 = vpow2.f32 %v3702_v43  ;;  %v4986_v43 = vld [vmem:[%s5052_s8] ss:$0 sm:$0xff] }
0x591b   :  { %v4048_v17 = vpop.eup %4047 }
0x591c   :  { %3244 = vrot.lane.b32.xlu1 %v4048_v17, %s4083_s28 }
0x591d   :  { %v4050_v15 = vpop.eup %4049 }
0x591e   :  { %v3225_v44 = vadd.f32 1.0, %v4050_v15 }
0x5920   :  { %4051 = vrcp.f32 %v3225_v44  ;;  %v3237_v3 = vand.u32 2147483648, %v3225_v44  ;;  %vm3231_vm12 = vweird.f32 %v3225_v44  ;;  %v3235_v49 = vand.u32 2147483647, %v3225_v44 }
0x5922   :  { %v3238_v7 = vor.u32 1.1754944e-38, %v3237_v3  ;;  %vm3236_vm14 = vcmp.eq.f32.partialorder %v3235_v49, 8.507059e+37 }
0x5926   :  { %v4052_v45 = vpop.eup %4051 }
0x5927   :  { %v3227_v46 = vmul.f32 %v4052_v45, %v3225_v44  ;;  %vm3232_vm11 = vweird.f32 %v4052_v45 }
0x5928   :  { %vm3233_vm13 = vmor %vm3231_vm12, %vm3232_vm11 }
0x5929   :  { %v3228_v47 = vsub.f32 1.0, %v3227_v46 }
0x592b   :  { %v3229_v48 = vmul.f32 %v4052_v45, %v3228_v47 }
0x592d   :  { %v3230_v2 = vadd.f32 %v4052_v45, %v3229_v48 }
0x592f   :  { %v3234_v50 = vsel %vm3233_vm13, %v4052_v45, %v3230_v2 }
0x5930   :  { %v3239_v22 = vsel %vm3236_vm14, %v3238_v7, %v3234_v50 }
0x5931   :  { %v3242_v51 = vmul.f32 %v3239_v22, %v3182_v38 }
0x598e   :  { %v3245_v57 = vpop.permute.xlu1 %3244 }
0x598f   :  { %v3247_v25 = vmul.f32 %v3245_v57, %v3239_v22 }
0x5991   :  { %3249 = vrot.lane.b32.xlu2 %v3247_v25, %s4084_s29 }
0x59eb   :  { %v3250_v56 = vpop.permute.xlu2 %3249 }
0x59ec   :  { %v3252_v58 = vadd.f32 %v3250_v56, %v3242_v51 }
0x59ee   :  { %4053 = vtanh.f32 %v3252_v58 }
0x59f4   :  { %v4054_v14 = vpop.eup %4053 }
0x59f5   :  { %3255 = vrot.lane.b32.xlu0 %v4054_v14, %s4083_s28 }
0x5a67   :  { %v3256_v9 = vpop.permute.xlu0 %3255 }
0x5a68   :  { %v3258_v60 = vmul.f32 %v3256_v9, %v3239_v22 }
0x5a6a   :  { %3260 = vrot.lane.b32.xlu1 %v3258_v60, %s4084_s29 }
0x5adc   :  { %v3261_v18 = vpop.permute.xlu1 %3260 }
0x5add   :  { %3263 = vst.msk [vmem:[#allocation3 + $0x20] sm:$0xff] %vm64_vm0, %v3261_v18  ;;  %3703 = vmatmul.msk.f32.vlgmr.msrb.gmra.mxu3 %vm64_vm0, %v3261_v18 }
0x5ae4   :  { %v3478_v42 = vld [vmem:[#allocation3 + $0x20] sm:$0xff] }
0x5b60   :  { %v3288_v52 = vpop.f32.mrf.mxu3 }
0x5b61   :  { %v3291_v11 = vadd.f32 %v3288_v52, %v2104_v61 }
0x5b63   :  { %4055 = vtanh.f32 %v3291_v11  ;;  %v3704_v37 = vmul.f32 -1.442695, %v3291_v11 }
0x5b65   :  { %4057 = vpow2.f32 %v3704_v37 }
0x5b69   :  { %v4056_v62 = vpop.eup %4055 }
0x5b6a   :  { %3314 = vrot.lane.b32.xlu2 %v4056_v62, %s4083_s28 }
0x5b6b   :  { %v4058_v13 = vpop.eup %4057 }
0x5b6c   :  { %v3295_v26 = vadd.f32 1.0, %v4058_v13 }
0x5b6e   :  { %4059 = vrcp.f32 %v3295_v26  ;;  %v3307_v29 = vand.u32 2147483648, %v3295_v26  ;;  %vm3301_vm1 = vweird.f32 %v3295_v26  ;;  %v3305_v6 = vand.u32 2147483647, %v3295_v26 }
0x5b70   :  { %v3308_v16 = vor.u32 1.1754944e-38, %v3307_v29  ;;  %vm3306_vm3 = vcmp.eq.f32.partialorder %v3305_v6, 8.507059e+37 }
0x5b74   :  { %v4060_v24 = vpop.eup %4059 }
0x5b75   :  { %v3297_v27 = vmul.f32 %v4060_v24, %v3295_v26  ;;  %vm3302_vm15 = vweird.f32 %v4060_v24 }
0x5b76   :  { %vm3303_vm2 = vmor %vm3301_vm1, %vm3302_vm15 }
0x5b77   :  { %v3298_v1 = vsub.f32 1.0, %v3297_v27 }
0x5b79   :  { %v3299_v28 = vmul.f32 %v4060_v24, %v3298_v1 }
0x5b7b   :  { %v3300_v54 = vadd.f32 %v4060_v24, %v3299_v28 }
0x5b7d   :  { %v3304_v30 = vsel %vm3303_vm2, %v4060_v24, %v3300_v54 }
0x5b7e   :  { %v3309_v10 = vsel %vm3306_vm3, %v3308_v16, %v3304_v30 }
0x5b7f   :  { %v3312_v32 = vmul.f32 %v3309_v10, %v3252_v58 }
0x5bc4   :  { %v3315_v53 = vpop.permute.xlu2 %3314 }
0x5bc5   :  { %v3317_v0 = vmul.f32 %v3315_v53, %v3309_v10 }
0x5bc7   :  { %3319 = vrot.lane.b32.xlu0 %v3317_v0, %s4084_s29 }
0x5c39   :  { %v3320_v4 = vpop.permute.xlu0 %3319 }
0x5c3a   :  { %v4956_v33 = vadd.f32 %v3320_v4, %v3312_v32  ;;  %v2110_v4 = vadd.f32 %v4851_v5, %v4751_v20 }
0x5c3c   :  { %4061 = vtanh.f32 %v4956_v33 }
0x5c42   :  { %v4062_v34 = vpop.eup %4061 }
0x5c43   :  { %3325 = vrot.lane.b32.xlu1 %v4062_v34, %s4083_s28 }
0x5cb5   :  { %v3326_v35 = vpop.permute.xlu1 %3325 }
0x5cb6   :  { %v3328_v21 = vmul.f32 %v3326_v35, %v3309_v10 }
0x5cb8   :  { %3330 = vrot.lane.b32.xlu2 %v3328_v21, %s4084_s29 }
0x5d12   :  { %v3331_v38 = vpop.permute.xlu2 %3330 }
0x5d13   :  { %3333 = vst.msk [vmem:[#allocation3 + $0x28] sm:$0xff] %vm64_vm0, %v3331_v38  ;;  %3705 = vmatmul.msk.f32.vlgmr.msra.gmra.mxu2 %vm64_vm0, %v3331_v38 }
0x5d1a   :  { %v3479_v8 = vld [vmem:[#allocation3 + $0x28] sm:$0xff] }
0x5d1b   :  { %3709 = vmatmul.msk.f32.vlgmr.msrb.gmra.mxu2 %vm64_vm0, %v3474_v19 }
0x5d23   :  { %3710 = vmatmul.msk.f32.gmra.mxu2 %vm64_vm0, %v3475_v31 }
0x5d2b   :  { %3711 = vmatmul.msk.f32.gmra.mxu2 %vm64_vm0, %v3476_v41 }
0x5d33   :  { %3712 = vmatmul.msk.f32.gmra.mxu2 %vm64_vm0, %v3477_v59 }
0x5d3b   :  { %3713 = vmatmul.msk.f32.gmra.mxu2 %vm64_vm0, %v3478_v42 }
0x5d43   :  { %3714 = vmatmul.msk.f32.gmra.mxu2 %vm64_vm0, %v3479_v8 }
0x5d96   :  { %v3358_v63 = vpop.f32.mrf.mxu2 }
0x5d97   :  { %v3361_v17 = vadd.f32 %v3358_v63, %v2107_v23 }
0x5d99   :  { %4063 = vtanh.f32 %v3361_v17  ;;  %v3706_v9 = vmul.f32 -1.442695, %v3361_v17 }
0x5d9b   :  { %4065 = vpow2.f32 %v3706_v9 }
0x5d9e   :  { %v3531_v15 = vpop.f32.mrf.mxu2 }
0x5d9f   :  { %v4064_v44 = vpop.eup %4063  ;;  %v3532_v45 = vadd.f32 %v4986_v43, %v3531_v15 }
0x5da0   :  { %3384 = vrot.lane.b32.xlu0 %v4064_v44, %s4083_s28 }
0x5da1   :  { %v3555_v46 = vmax.f32 %v3532_v45, 0.0  ;;  %v4066_v60 = vpop.eup %4065 }
0x5da2   :  { %v3365_v18 = vadd.f32 1.0, %v4066_v60 }
0x5da3   :  { %3563 = vst.msk [vmem:[%s5053_s9] sm:$0xff] %vm64_vm0, %v3555_v46 }
0x5da4   :  { %4067 = vrcp.f32 %v3365_v18  ;;  %v3377_v13 = vand.u32 2147483648, %v3365_v18  ;;  %vm3371_vm5 = vweird.f32 %v3365_v18  ;;  %v3375_v26 = vand.u32 2147483647, %v3365_v18 }
0x5da6   :  { %v3534_v55 = vpop.f32.mrf.mxu2  ;;  %v3378_v27 = vor.u32 1.1754944e-38, %v3377_v13  ;;  %vm3376_vm7 = vcmp.eq.f32.partialorder %v3375_v26, 8.507059e+37 }
0x5da7   :  { %v3535_v47 = vadd.f32 %v4986_v43, %v3534_v55 }
0x5da9   :  { %v3556_v48 = vmax.f32 %v3535_v47, 0.0 }
0x5daa   :  { %v4068_v61 = vpop.eup %4067 }
0x5dab   :  { %3564 = vst.msk [vmem:[%s5053_s9 + $0x8] sm:$0xff] %vm64_vm0, %v3556_v48  ;;  %v3367_v52 = vmul.f32 %v4068_v61, %v3365_v18  ;;  %vm3372_vm4 = vweird.f32 %v4068_v61 }
0x5dac   :  { %vm3373_vm6 = vmor %vm3371_vm5, %vm3372_vm4 }
0x5dad   :  { %v3368_v11 = vsub.f32 1.0, %v3367_v52 }
0x5dae   :  { %v3537_v2 = vpop.f32.mrf.mxu2 }
0x5daf   :  { %v3538_v3 = vadd.f32 %v4986_v43, %v3537_v2  ;;  %v3369_v62 = vmul.f32 %v4068_v61, %v3368_v11 }
0x5db1   :  { %v3557_v49 = vmax.f32 %v3538_v3, 0.0  ;;  %v3370_v37 = vadd.f32 %v4068_v61, %v3369_v62 }
0x5db3   :  { %3565 = vst.msk [vmem:[%s5053_s9 + $0x10] sm:$0xff] %vm64_vm0, %v3557_v49  ;;  %v3374_v24 = vsel %vm3373_vm6, %v4068_v61, %v3370_v37 }
0x5db4   :  { %v3379_v28 = vsel %vm3376_vm7, %v3378_v27, %v3374_v24 }
0x5db5   :  { %v3382_v29 = vmul.f32 %v3379_v28, %v4956_v33 }
0x5db6   :  { %v3540_v50 = vpop.f32.mrf.mxu2 }
0x5db7   :  { %v3541_v7 = vadd.f32 %v4986_v43, %v3540_v50 }
0x5db9   :  { %v3558_v57 = vmax.f32 %v3541_v7, 0.0 }
0x5dbb   :  { %3566 = vst.msk [vmem:[%s5053_s9 + $0x18] sm:$0xff] %vm64_vm0, %v3558_v57 }
0x5dbe   :  { %v3543_v22 = vpop.f32.mrf.mxu2 }
0x5dbf   :  { %v3544_v25 = vadd.f32 %v4986_v43, %v3543_v22 }
0x5dc1   :  { %v3559_v51 = vmax.f32 %v3544_v25, 0.0 }
0x5dc3   :  { %3567 = vst.msk [vmem:[%s5053_s9 + $0x20] sm:$0xff] %vm64_vm0, %v3559_v51 }
0x5dc6   :  { %v3546_v56 = vpop.f32.mrf.mxu2 }
0x5dc7   :  { %v3547_v58 = vadd.f32 %v4986_v43, %v3546_v56 }
0x5dc9   :  { %v3560_v14 = vmax.f32 %v3547_v58, 0.0 }
0x5dcb   :  { %3568 = vst.msk [vmem:[%s5053_s9 + $0x28] sm:$0xff] %vm64_vm0, %v3560_v14 }
0x5e12   :  { %v3385_v1 = vpop.permute.xlu0 %3384 }
0x5e13   :  { %v3387_v54 = vmul.f32 %v3385_v1, %v3379_v28 }
0x5e15   :  { %3389 = vrot.lane.b32.xlu1 %v3387_v54, %s4084_s29 }
0x5e87   :  { %v3390_v6 = vpop.permute.xlu1 %3389 }
0x5e88   :  { %v3392_v30 = vadd.f32 %v3390_v6, %v3382_v29 }
0x5e8a   :  { %4069 = vtanh.f32 %v3392_v30 }
0x5e90   :  { %v4070_v16 = vpop.eup %4069 }
0x5e91   :  { %3395 = vrot.lane.b32.xlu2 %v4070_v16, %s4083_s28 }
0x5eeb   :  { %v3396_v53 = vpop.permute.xlu2 %3395 }
0x5eec   :  { %v3398_v10 = vmul.f32 %v3396_v53, %v3379_v28 }
0x5eee   :  { %3400 = vrot.lane.b32.xlu0 %v3398_v10, %s4084_s29 }
0x5f60   :  { %v3401_v0 = vpop.permute.xlu0 %3400 }
0x5f61   :  { %3403 = vst.msk [vmem:[#allocation3 + $0x30] sm:$0xff] %vm64_vm0, %v3401_v0  ;;  %3707 = vmatmul.msk.f32.vlgmr.msra.gmra.mxu3 %vm64_vm0, %v3401_v0 }
0x5f68   :  { %v3480_v32 = vld [vmem:[#allocation3 + $0x30] sm:$0xff] }
0x5f69   :  { %3715 = vmatmul.msk.f32.gmra.mxu2 %vm64_vm0, %v3480_v32 }
0x5fe4   :  { %v3428_v33 = vpop.f32.mrf.mxu3 }
0x5fe5   :  { %v3431_v34 = vadd.f32 %v3428_v33, %v2110_v4 }
0x5fe7   :  { %4071 = vtanh.f32 %v3431_v34  ;;  %v3708_v39 = vmul.f32 -1.442695, %v3431_v34 }
0x5fe9   :  { %4073 = vpow2.f32 %v3708_v39 }
0x5fec   :  { %v3549_v35 = vpop.f32.mrf.mxu2 }
0x5fed   :  { %v4072_v21 = vpop.eup %4071  ;;  %v3550_v12 = vadd.f32 %v4986_v43, %v3549_v35 }
0x5fee   :  { %3454 = vrot.lane.b32.xlu1 %v4072_v21, %s4083_s28 }
0x5fef   :  { %v3561_v36 = vmax.f32 %v3550_v12, 0.0  ;;  %v4074_v40 = vpop.eup %4073 }
0x5ff0   :  { %v3435_v38 = vadd.f32 1.0, %v4074_v40 }
0x5ff1   :  { %3569 = vst.msk [vmem:[%s5053_s9 + $0x30] sm:$0xff] %vm64_vm0, %v3561_v36 }
0x5ff2   :  { %4075 = vrcp.f32 %v3435_v38  ;;  %v3447_v59 = vand.u32 2147483648, %v3435_v38  ;;  %vm3441_vm9 = vweird.f32 %v3435_v38  ;;  %v3445_v42 = vand.u32 2147483647, %v3435_v38 }
0x5ff4   :  { %v3448_v23 = vor.u32 1.1754944e-38, %v3447_v59  ;;  %vm3446_vm11 = vcmp.eq.f32.partialorder %v3445_v42, 8.507059e+37 }
0x5ff8   :  { %v4076_v20 = vpop.eup %4075 }
0x5ff9   :  { %v3437_v5 = vmul.f32 %v4076_v20, %v3435_v38  ;;  %vm3442_vm8 = vweird.f32 %v4076_v20 }
0x5ffa   :  { %vm3443_vm10 = vmor %vm3441_vm9, %vm3442_vm8 }
0x5ffb   :  { %v3438_v19 = vsub.f32 1.0, %v3437_v5 }
0x5ffd   :  { %v3439_v31 = vmul.f32 %v4076_v20, %v3438_v19 }
0x5fff   :  { %v3440_v41 = vadd.f32 %v4076_v20, %v3439_v31 }
0x6001   :  { %v3444_v8 = vsel %vm3443_vm10, %v4076_v20, %v3440_v41 }
0x6002   :  { %v3449_v17 = vsel %vm3446_vm11, %v3448_v23, %v3444_v8 }
0x6003   :  { %v3452_v44 = vmul.f32 %v3449_v17, %v3392_v30 }
0x6060   :  { %v3455_v63 = vpop.permute.xlu1 %3454 }
0x6061   :  { %v3457_v15 = vmul.f32 %v3455_v63, %v3449_v17 }
0x6063   :  { %3459 = vrot.lane.b32.xlu2 %v3457_v15, %s4084_s29 }
0x60bd   :  { %v3460_v45 = vpop.permute.xlu2 %3459 }
0x60be   :  { %v3462_v46 = vadd.f32 %v3460_v45, %v3452_v44 }
0x60c0   :  { %4077 = vtanh.f32 %v3462_v46 }
0x60c6   :  { %v4078_v55 = vpop.eup %4077 }
0x60c7   :  { %3465 = vrot.lane.b32.xlu0 %v4078_v55, %s4083_s28 }
0x6139   :  { %v3466_v47 = vpop.permute.xlu0 %3465 }
0x613a   :  { %v3468_v48 = vmul.f32 %v3466_v47, %v3449_v17 }
0x613c   :  { %3470 = vrot.lane.b32.xlu1 %v3468_v48, %s4084_s29 }
0x61ae   :  { %v3471_v2 = vpop.permute.xlu1 %3470 }
0x61af   :  { %3473 = vst.msk [vmem:[#allocation3 + $0x38] sm:$0xff] %vm64_vm0, %v3471_v2 }
0x61b6   :  { %v3481_v3 = vld [vmem:[#allocation3 + $0x38] sm:$0xff] }
0x61b7   :  { %3716 = vmatmul.msk.f32.gmra.mxu2 %vm64_vm0, %v3481_v3 }
0x623a   :  { %v3552_v49 = vpop.f32.mrf.mxu2 }
0x623b   :  { %v3553_v50 = vadd.f32 %v4986_v43, %v3552_v49 }
0x623d   :  { %v3562_v7 = vmax.f32 %v3553_v50, 0.0 }
0x623f   :  { %3570 = vst.msk [vmem:[%s5053_s9 + $0x38] sm:$0xff] %vm64_vm0, %v3562_v7 }

</bundles_post_ra>
